<compile_context>
chip_gen: v6e
topology: v6e:2x2x1
jax: 0.10.0
libtpu: 0.0.40
codegen_flags: <defaults>
</compile_context>

<pallas_src>
import functools

import jax
import jax.numpy as jnp
from jax import lax
from jax.experimental import pallas as pl
from jax.experimental.pallas import tpu as pltpu

MXU_DTYPE = jnp.bfloat16      # MXU operand dtype (accumulation stays f32)


# ----------------------------------------------------------------------------
# Fused Pallas kernel: 4 x (PReLU -> Conv KxK 'same' -> BN affine) + Maxouts
# ----------------------------------------------------------------------------
def _cdb_fused_kernel(x_ref, b_ref, shift_ref, alpha_ref, out_ref, apad_ref,
                      *, Nb, H, WC, K, n_seq):
    # x_ref     : (Nb, H, WC)            lane-dense input rows (WC = W*C)
    # b_ref     : (n_seq, K*WC, WC)      bf16 banded conv weights (BN scale folded in)
    # shift_ref : (n_seq, 1, WC)         f32 per-lane shift = (bias - mean)*scale + beta
    # alpha_ref : (n_seq,) in SMEM       PReLU slopes
    # out_ref   : (Nb, H, WC)
    # apad_ref  : (Nb*(H+2p), WC) f32    VMEM scratch: stacked H-padded activations
    p = (K - 1) // 2
    Hp = H + 2 * p
    M = Nb * Hp - 2 * p                  # rows of the stacked shifted matmul

    # Zero only the halo rows once per grid step; interiors are fully overwritten
    # every sequence and halos are never written inside the sequence loop.
    zhalo = jnp.zeros((p, WC), jnp.float32)
    for i in range(Nb):
        apad_ref[i * Hp:i * Hp + p, :] = zhalo
        apad_ref[i * Hp + p + H:(i + 1) * Hp, :] = zhalo

    cur = x_ref[...].astype(jnp.float32)                    # (Nb, H, WC)
    for s in range(n_seq):
        alpha = alpha_ref[s]
        # PReLU (prelu(0) == 0, so the zero halo rows act as the 'same' padding).
        a = jnp.maximum(cur, 0.0) + alpha * jnp.minimum(cur, 0.0)
        for i in range(Nb):                                  # interior rows per image
            apad_ref[i * Hp + p:i * Hp + p + H, :] = a[i]

        # im2col over kh: (M, K*WC), then ONE MXU matmul (contraction K*WC).
        lhs = jnp.concatenate([apad_ref[kh:kh + M, :] for kh in range(K)], axis=1)
        acc = jnp.dot(lhs.astype(MXU_DTYPE), b_ref[s],
                      preferred_element_type=jnp.float32)    # (M, WC) f32
        yfull = acc + shift_ref[s]                           # fused bias + BN affine

        # Valid output rows for image i sit at [i*Hp, i*Hp + H); separator rows are
        # garbage and are never read.
        y = jnp.stack([yfull[i * Hp:i * Hp + H, :] for i in range(Nb)], axis=0)

        # Maxout with the sequence input for seq1..seq3; seq4 has no Maxout.
        cur = jnp.maximum(cur, y) if s < n_seq - 1 else y

    out_ref[...] = cur.astype(out_ref.dtype)


# ----------------------------------------------------------------------------
# Wrapper: one pallas_call, Nb images per grid step
# ----------------------------------------------------------------------------
def _pick_images_per_block(n_images, h, target_rows=256, min_grid_steps=2):
    """Largest divisor of n_images with Nb*h <= target_rows and >= min_grid_steps."""
    best = 1
    for nb in range(1, n_images + 1):
        if n_images % nb == 0 and nb * h <= target_rows and n_images // nb >= min_grid_steps:
            best = nb
    return best


def competitive_dense_block(x_nhwc, banded_w, shift, alpha, images_per_block=None):
    """Regular CDB forward (is_input=False). x_nhwc: (N, H, W, C)."""
    N, H, W, C = x_nhwc.shape
    WC = W * C
    n_seq = banded_w.shape[0]
    K = banded_w.shape[1] // WC
    p = (K - 1) // 2
    Hp = H + 2 * p

    Nb = images_per_block if images_per_block is not None else _pick_images_per_block(N, H)
    assert N % Nb == 0, "batch must be divisible by images_per_block"

    x2 = x_nhwc.reshape(N, H, WC)        # contiguous: (h, w, c) -> (h, w*C + c)

    kernel = functools.partial(_cdb_fused_kernel, Nb=Nb, H=H, WC=WC, K=K, n_seq=n_seq)
    out2 = pl.pallas_call(
        kernel,
        out_shape=jax.ShapeDtypeStruct((N, H, WC), x_nhwc.dtype),
        grid=(N // Nb,),
        in_specs=[
            pl.BlockSpec((Nb, H, WC), lambda n: (n, 0, 0)),
            # Constant block index -> DMA'd once across the whole grid.
            pl.BlockSpec((n_seq, K * WC, WC), lambda n: (0, 0, 0)),
            pl.BlockSpec((n_seq, 1, WC), lambda n: (0, 0, 0)),
            pl.BlockSpec(memory_space=pltpu.MemorySpace.SMEM),
        ],
        out_specs=pl.BlockSpec((Nb, H, WC), lambda n: (n, 0, 0)),
        scratch_shapes=[pltpu.VMEM((Nb * Hp, WC), jnp.float32)],
        compiler_params=pltpu.CompilerParams(
            dimension_semantics=("parallel",)),
    )(x2, banded_w, shift, alpha)
    return out2.reshape(N, H, W, C)


# ----------------------------------------------------------------------------
# Parameter construction (deterministic, synthetic) and wrapper-side folding
# ----------------------------------------------------------------------------
def make_params(key, in_channels, filters, kernel):
    """4 sequences of {PReLU alpha, conv W (HWIO)/b, BN gamma/beta/mean/var}."""
    assert in_channels == filters, "Maxout in the regular CDB needs in_channels == filters"
    seqs = []
    cin = in_channels
    for _ in range(4):
        key, kw_, kb_, kg_, kbt_, km_, kv_ = jax.random.split(key, 7)
        w = jax.random.normal(kw_, (kernel, kernel, cin, filters), jnp.float32) * 0.1
        b = jax.random.normal(kb_, (filters,), jnp.float32) * 0.1
        gamma = 1.0 + 0.1 * jax.random.normal(kg_, (filters,), jnp.float32)
        beta = 0.1 * jax.random.normal(kbt_, (filters,), jnp.float32)
        mean = 0.1 * jax.random.normal(km_, (filters,), jnp.float32)
        var = jax.random.uniform(kv_, (filters,), jnp.float32, 0.5, 1.5)
        alpha = jnp.float32(0.25)           # nn.PReLU() default init
        seqs.append(dict(w=w, b=b, gamma=gamma, beta=beta, mean=mean, var=var,
                         alpha=alpha))
        cin = filters
    return seqs


def fold_params(seqs, W, eps=1e-5):
    """Fold conv bias + inference-mode BN into the weights and lower the KxK 'same'
    conv to a single (K*W*C, W*C) banded matrix per sequence acting on im2col'd
    lane-dense rows.  Weights are emitted in bf16 for the MXU."""
    K = seqs[0]["w"].shape[0]
    C = seqs[0]["w"].shape[-1]
    p = (K - 1) // 2
    WC = W * C

    w_in = jnp.arange(W)
    w_out = jnp.arange(W)
    kw_needed = w_in[:, None] - w_out[None, :] + p          # (W, W): kw for each pair
    valid = (kw_needed >= 0) & (kw_needed < K)
    kw_idx = jnp.clip(kw_needed, 0, K - 1)

    banded, shifts, alphas = [], [], []
    for s in seqs:
        scale = s["gamma"] / jnp.sqrt(s["var"] + eps)                    # (C,)
        w_folded = s["w"] * scale                                        # (K,K,C,C)
        shift = (s["b"] - s["mean"]) * scale + s["beta"]                 # (C,)
        # B5[kh, w_in, w_out, ci, co] = w_folded[kh, kw_idx[w_in,w_out], ci, co]
        B5 = w_folded[:, kw_idx, :, :]                                   # (K,W,W,C,C)
        B5 = jnp.where(valid[None, :, :, None, None], B5, 0.0)
        # -> (kh, w_in, ci, w_out, co) -> (K, W*C, W*C) -> stacked (K*W*C, W*C)
        B = jnp.transpose(B5, (0, 1, 3, 2, 4)).reshape(K, WC, WC)
        banded.append(B.reshape(K * WC, WC))
        shifts.append(jnp.tile(shift, W)[None, :])                       # (1, W*C)
        alphas.append(s["alpha"])
    return (jnp.stack(banded).astype(MXU_DTYPE),        # (4, K*W*C, W*C) bf16
            jnp.stack(shifts),                          # (4, 1, W*C)     f32
            jnp.stack(alphas).astype(jnp.float32))      # (4,)


# ----------------------------------------------------------------------------
# Pure-JAX reference (for correctness check)
# ----------------------------------------------------------------------------
def _ref_seq(x, s, do_max, eps=1e-5):
    a = jnp.maximum(x, 0.0) + s["alpha"] * jnp.minimum(x, 0.0)
    K = s["w"].shape[0]
    p = (K - 1) // 2
    y = lax.conv_general_dilated(
        a, s["w"], window_strides=(1, 1), padding=[(p, p), (p, p)],
        dimension_numbers=("NHWC", "HWIO", "NHWC"))
    y = y + s["b"]
    y = (y - s["mean"]) / jnp.sqrt(s["var"] + eps) * s["gamma"] + s["beta"]
    return jnp.maximum(x, y) if do_max else y


def competitive_dense_block_ref(x, seqs):
    o1 = _ref_seq(x, seqs[0], True)
    o2 = _ref_seq(o1, seqs[1], True)
    o3 = _ref_seq(o2, seqs[2], True)
    return _ref_seq(o3, seqs[3], False)


# ----------------------------------------------------------------------------
if __name__ == "__main__":
    # params of the PyTorch module: in_channels == filters (required by Maxout)
    IN_CHANNELS = 8
    FILTERS = 8
    KERNEL = 5
    N, H, W = 8, 16, 16          # W * FILTERS == 128 -> full-lane rows; N=8 -> Nb=4, 2 grid steps

    key = jax.random.PRNGKey(0)
    key, kx = jax.random.split(key)
    # PyTorch input is NCHW; generate NCHW and transpose to the kernel's NHWC layout.
    x_nchw = jax.random.normal(kx, (N, IN_CHANNELS, H, W), jnp.float32)
    x_nhwc = jnp.transpose(x_nchw, (0, 2, 3, 1))

    seqs = make_params(key, IN_CHANNELS, FILTERS, KERNEL)
    banded_w, shift, alpha = fold_params(seqs, W)

    out = competitive_dense_block(x_nhwc, banded_w, shift, alpha)
    out = jax.block_until_ready(out)

    ref = jax.block_until_ready(competitive_dense_block_ref(x_nhwc, seqs))
    assert out.shape == (N, H, W, FILTERS)
    err = jnp.max(jnp.abs(out - ref))
    # bf16 MXU operands with f32 accumulation through 4 chained conv stages:
    # expected max |err| ~ 3e-2 vs. the f32 reference.
    assert jnp.allclose(out, ref, atol=5e-2, rtol=5e-2), f"max err {err}"

    print("KERNEL_OK")
</pallas_src>

<mosaic_0001>
module attributes {stable_mosaic.version = 11 : i64} {
  func.func @_cdb_fused_kernel(%arg0: i32, %arg1: memref<4x16x128xf32, #tpu.memory_space<vmem>>, %arg2: memref<4x640x128xbf16, #tpu.memory_space<vmem>>, %arg3: memref<4x1x128xf32, #tpu.memory_space<vmem>>, %arg4: memref<4xf32, #tpu.memory_space<smem>>, %arg5: memref<4x16x128xf32, #tpu.memory_space<vmem>>, %arg6: memref<80x128xf32, #tpu.memory_space<vmem>>) attributes {dimension_semantics = [#tpu.dimension_semantics<parallel>], iteration_bounds = array<i64: 2>, scalar_prefetch = 0 : i64, scratch_operands = 1 : i64, tpu.core_type = #tpu.core_type<tc>, window_params = [{transform_indices = @transform_0, window_bounds = array<i64: 4, 16, 128>}, {pipeline_mode = #tpu.pipeline_mode<synchronous>, transform_indices = @transform_1, window_bounds = array<i64: 4, 640, 128>}, {pipeline_mode = #tpu.pipeline_mode<synchronous>, transform_indices = @transform_2, window_bounds = array<i64: 4, 1, 128>}, {transform_indices = @transform_3, window_bounds = array<i64: 4>}, {transform_indices = @transform_4, window_bounds = array<i64: 4, 16, 128>}]} {
    %cst = arith.constant 0.000000e+00 : f32
    %0 = vector.broadcast %cst : f32 to vector<2x128xf32>
    %c0 = arith.constant 0 : index
    %c0_0 = arith.constant 0 : index
    %1 = vector.load %arg6[%c0, %c0_0] : memref<80x128xf32, #tpu.memory_space<vmem>>, vector<2x128xf32>
    tpu.vector_store %arg6[%c0, %c0_0], %0 {strides = array<i32>} : memref<80x128xf32, #tpu.memory_space<vmem>>, vector<2x128xf32>,
    %c18 = arith.constant 18 : index
    %c0_1 = arith.constant 0 : index
    %2 = vector.load %arg6[%c18, %c0_1] : memref<80x128xf32, #tpu.memory_space<vmem>>, vector<2x128xf32>
    tpu.vector_store %arg6[%c18, %c0_1], %0 {strides = array<i32>} : memref<80x128xf32, #tpu.memory_space<vmem>>, vector<2x128xf32>,
    %c20 = arith.constant 20 : index
    %c0_2 = arith.constant 0 : index
    %3 = vector.load %arg6[%c20, %c0_2] : memref<80x128xf32, #tpu.memory_space<vmem>>, vector<2x128xf32>
    tpu.vector_store %arg6[%c20, %c0_2], %0 {strides = array<i32>} : memref<80x128xf32, #tpu.memory_space<vmem>>, vector<2x128xf32>,
    %c38 = arith.constant 38 : index
    %c0_3 = arith.constant 0 : index
    %4 = vector.load %arg6[%c38, %c0_3] : memref<80x128xf32, #tpu.memory_space<vmem>>, vector<2x128xf32>
    tpu.vector_store %arg6[%c38, %c0_3], %0 {strides = array<i32>} : memref<80x128xf32, #tpu.memory_space<vmem>>, vector<2x128xf32>,
    %c40 = arith.constant 40 : index
    %c0_4 = arith.constant 0 : index
    %5 = vector.load %arg6[%c40, %c0_4] : memref<80x128xf32, #tpu.memory_space<vmem>>, vector<2x128xf32>
    tpu.vector_store %arg6[%c40, %c0_4], %0 {strides = array<i32>} : memref<80x128xf32, #tpu.memory_space<vmem>>, vector<2x128xf32>,
    %c58 = arith.constant 58 : index
    %c0_5 = arith.constant 0 : index
    %6 = vector.load %arg6[%c58, %c0_5] : memref<80x128xf32, #tpu.memory_space<vmem>>, vector<2x128xf32>
    tpu.vector_store %arg6[%c58, %c0_5], %0 {strides = array<i32>} : memref<80x128xf32, #tpu.memory_space<vmem>>, vector<2x128xf32>,
    %c60 = arith.constant 60 : index
    %c0_6 = arith.constant 0 : index
    %7 = vector.load %arg6[%c60, %c0_6] : memref<80x128xf32, #tpu.memory_space<vmem>>, vector<2x128xf32>
    tpu.vector_store %arg6[%c60, %c0_6], %0 {strides = array<i32>} : memref<80x128xf32, #tpu.memory_space<vmem>>, vector<2x128xf32>,
    %c78 = arith.constant 78 : index
    %c0_7 = arith.constant 0 : index
    %8 = vector.load %arg6[%c78, %c0_7] : memref<80x128xf32, #tpu.memory_space<vmem>>, vector<2x128xf32>
    tpu.vector_store %arg6[%c78, %c0_7], %0 {strides = array<i32>} : memref<80x128xf32, #tpu.memory_space<vmem>>, vector<2x128xf32>,
    %c0_8 = arith.constant 0 : index
    %c0_9 = arith.constant 0 : index
    %c0_10 = arith.constant 0 : index
    %9 = vector.load %arg1[%c0_8, %c0_9, %c0_10] : memref<4x16x128xf32, #tpu.memory_space<vmem>>, vector<4x16x128xf32>
    %c0_11 = arith.constant 0 : index
    %10 = memref.load %arg4[%c0_11] : memref<4xf32, #tpu.memory_space<smem>>
    %cst_12 = arith.constant 0.000000e+00 : f32
    %11 = vector.broadcast %cst_12 : f32 to vector<4x16x128xf32>
    %12 = arith.maximumf %9, %11 : vector<4x16x128xf32>
    %cst_13 = arith.constant 0.000000e+00 : f32
    %13 = vector.broadcast %cst_13 : f32 to vector<4x16x128xf32>
    %14 = arith.minimumf %9, %13 : vector<4x16x128xf32>
    %15 = vector.broadcast %10 : f32 to vector<4x16x128xf32>
    %16 = arith.mulf %15, %14 : vector<4x16x128xf32>
    %17 = arith.addf %12, %16 : vector<4x16x128xf32>
    %18 = vector.extract_strided_slice %17 {offsets = [0, 0, 0], sizes = [1, 16, 128], strides = [1, 1, 1]} : vector<4x16x128xf32> to vector<1x16x128xf32>
    %19 = vector.shape_cast %18 : vector<1x16x128xf32> to vector<16x128xf32>
    %c2 = arith.constant 2 : index
    %c0_14 = arith.constant 0 : index
    %20 = vector.load %arg6[%c2, %c0_14] : memref<80x128xf32, #tpu.memory_space<vmem>>, vector<16x128xf32>
    tpu.vector_store %arg6[%c2, %c0_14], %19 {strides = array<i32>} : memref<80x128xf32, #tpu.memory_space<vmem>>, vector<16x128xf32>,
    %21 = vector.extract_strided_slice %17 {offsets = [1, 0, 0], sizes = [1, 16, 128], strides = [1, 1, 1]} : vector<4x16x128xf32> to vector<1x16x128xf32>
    %22 = vector.shape_cast %21 : vector<1x16x128xf32> to vector<16x128xf32>
    %c22 = arith.constant 22 : index
    %c0_15 = arith.constant 0 : index
    %23 = vector.load %arg6[%c22, %c0_15] : memref<80x128xf32, #tpu.memory_space<vmem>>, vector<16x128xf32>
    tpu.vector_store %arg6[%c22, %c0_15], %22 {strides = array<i32>} : memref<80x128xf32, #tpu.memory_space<vmem>>, vector<16x128xf32>,
    %24 = vector.extract_strided_slice %17 {offsets = [2, 0, 0], sizes = [1, 16, 128], strides = [1, 1, 1]} : vector<4x16x128xf32> to vector<1x16x128xf32>
    %25 = vector.shape_cast %24 : vector<1x16x128xf32> to vector<16x128xf32>
    %c42 = arith.constant 42 : index
    %c0_16 = arith.constant 0 : index
    %26 = vector.load %arg6[%c42, %c0_16] : memref<80x128xf32, #tpu.memory_space<vmem>>, vector<16x128xf32>
    tpu.vector_store %arg6[%c42, %c0_16], %25 {strides = array<i32>} : memref<80x128xf32, #tpu.memory_space<vmem>>, vector<16x128xf32>,
    %27 = vector.extract_strided_slice %17 {offsets = [3, 0, 0], sizes = [1, 16, 128], strides = [1, 1, 1]} : vector<4x16x128xf32> to vector<1x16x128xf32>
    %28 = vector.shape_cast %27 : vector<1x16x128xf32> to vector<16x128xf32>
    %c62 = arith.constant 62 : index
    %c0_17 = arith.constant 0 : index
    %29 = vector.load %arg6[%c62, %c0_17] : memref<80x128xf32, #tpu.memory_space<vmem>>, vector<16x128xf32>
    tpu.vector_store %arg6[%c62, %c0_17], %28 {strides = array<i32>} : memref<80x128xf32, #tpu.memory_space<vmem>>, vector<16x128xf32>,
    %c0_18 = arith.constant 0 : index
    %c0_19 = arith.constant 0 : index
    %30 = vector.load %arg6[%c0_18, %c0_19] : memref<80x128xf32, #tpu.memory_space<vmem>>, vector<76x128xf32>
    %c1 = arith.constant 1 : index
    %c0_20 = arith.constant 0 : index
    %31 = vector.load %arg6[%c1, %c0_20] : memref<80x128xf32, #tpu.memory_space<vmem>>, vector<76x128xf32>
    %c2_21 = arith.constant 2 : index
    %c0_22 = arith.constant 0 : index
    %32 = vector.load %arg6[%c2_21, %c0_22] : memref<80x128xf32, #tpu.memory_space<vmem>>, vector<76x128xf32>
    %c3 = arith.constant 3 : index
    %c0_23 = arith.constant 0 : index
    %33 = vector.load %arg6[%c3, %c0_23] : memref<80x128xf32, #tpu.memory_space<vmem>>, vector<76x128xf32>
    %c4 = arith.constant 4 : index
    %c0_24 = arith.constant 0 : index
    %34 = vector.load %arg6[%c4, %c0_24] : memref<80x128xf32, #tpu.memory_space<vmem>>, vector<76x128xf32>
    %35 = tpu.concatenate %30, %31, %32, %33, %34 in 1 : vector<76x128xf32>, vector<76x128xf32>, vector<76x128xf32>, vector<76x128xf32>, vector<76x128xf32> -> vector<76x640xf32>
    %36 = arith.truncf %35 : vector<76x640xf32> to vector<76x640xbf16>
    %c0_25 = arith.constant 0 : index
    %c0_26 = arith.constant 0 : index
    %c0_27 = arith.constant 0 : index
    %37 = vector.load %arg2[%c0_25, %c0_26, %c0_27] : memref<4x640x128xbf16, #tpu.memory_space<vmem>>, vector<1x640x128xbf16>
    %38 = vector.shape_cast %37 : vector<1x640x128xbf16> to vector<640x128xbf16>
    %cst_28 = arith.constant dense<0.000000e+00> : vector<76x128xf32>
    %39 = tpu.matmul %36, %38, %cst_28 {dimension_numbers = #tpu.dot_dimension_numbers<[1], [0], [0], [1], [0, 0, 1, 1], [], []>} : vector<76x640xbf16>, vector<640x128xbf16>, vector<76x128xf32> -> vector<76x128xf32>
    %c0_29 = arith.constant 0 : index
    %c0_30 = arith.constant 0 : index
    %c0_31 = arith.constant 0 : index
    %40 = vector.load %arg3[%c0_29, %c0_30, %c0_31] : memref<4x1x128xf32, #tpu.memory_space<vmem>>, vector<1x1x128xf32>
    %41 = vector.shape_cast %40 : vector<1x1x128xf32> to vector<1x128xf32>
    %42 = vector.broadcast %41 : vector<1x128xf32> to vector<76x128xf32>
    %43 = arith.addf %39, %42 : vector<76x128xf32>
    %44 = vector.extract_strided_slice %43 {offsets = [0, 0], sizes = [16, 128], strides = [1, 1]} : vector<76x128xf32> to vector<16x128xf32>
    %45 = vector.extract_strided_slice %43 {offsets = [20, 0], sizes = [16, 128], strides = [1, 1]} : vector<76x128xf32> to vector<16x128xf32>
    %46 = vector.extract_strided_slice %43 {offsets = [40, 0], sizes = [16, 128], strides = [1, 1]} : vector<76x128xf32> to vector<16x128xf32>
    %47 = vector.extract_strided_slice %43 {offsets = [60, 0], sizes = [16, 128], strides = [1, 1]} : vector<76x128xf32> to vector<16x128xf32>
    %48 = vector.shape_cast %44 : vector<16x128xf32> to vector<1x16x128xf32>
    %49 = vector.shape_cast %45 : vector<16x128xf32> to vector<1x16x128xf32>
    %50 = vector.shape_cast %46 : vector<16x128xf32> to vector<1x16x128xf32>
    %51 = vector.shape_cast %47 : vector<16x128xf32> to vector<1x16x128xf32>
    %52 = tpu.concatenate %48, %49, %50, %51 in 0 : vector<1x16x128xf32>, vector<1x16x128xf32>, vector<1x16x128xf32>, vector<1x16x128xf32> -> vector<4x16x128xf32>
    %53 = arith.maximumf %9, %52 : vector<4x16x128xf32>
    %c1_32 = arith.constant 1 : index
    %54 = memref.load %arg4[%c1_32] : memref<4xf32, #tpu.memory_space<smem>>
    %cst_33 = arith.constant 0.000000e+00 : f32
    %55 = vector.broadcast %cst_33 : f32 to vector<4x16x128xf32>
    %56 = arith.maximumf %53, %55 : vector<4x16x128xf32>
    %cst_34 = arith.constant 0.000000e+00 : f32
    %57 = vector.broadcast %cst_34 : f32 to vector<4x16x128xf32>
    %58 = arith.minimumf %53, %57 : vector<4x16x128xf32>
    %59 = vector.broadcast %54 : f32 to vector<4x16x128xf32>
    %60 = arith.mulf %59, %58 : vector<4x16x128xf32>
    %61 = arith.addf %56, %60 : vector<4x16x128xf32>
    %62 = vector.extract_strided_slice %61 {offsets = [0, 0, 0], sizes = [1, 16, 128], strides = [1, 1, 1]} : vector<4x16x128xf32> to vector<1x16x128xf32>
    %63 = vector.shape_cast %62 : vector<1x16x128xf32> to vector<16x128xf32>
    %c2_35 = arith.constant 2 : index
    %c0_36 = arith.constant 0 : index
    %64 = vector.load %arg6[%c2_35, %c0_36] : memref<80x128xf32, #tpu.memory_space<vmem>>, vector<16x128xf32>
    tpu.vector_store %arg6[%c2_35, %c0_36], %63 {strides = array<i32>} : memref<80x128xf32, #tpu.memory_space<vmem>>, vector<16x128xf32>,
    %65 = vector.extract_strided_slice %61 {offsets = [1, 0, 0], sizes = [1, 16, 128], strides = [1, 1, 1]} : vector<4x16x128xf32> to vector<1x16x128xf32>
    %66 = vector.shape_cast %65 : vector<1x16x128xf32> to vector<16x128xf32>
    %c22_37 = arith.constant 22 : index
    %c0_38 = arith.constant 0 : index
    %67 = vector.load %arg6[%c22_37, %c0_38] : memref<80x128xf32, #tpu.memory_space<vmem>>, vector<16x128xf32>
    tpu.vector_store %arg6[%c22_37, %c0_38], %66 {strides = array<i32>} : memref<80x128xf32, #tpu.memory_space<vmem>>, vector<16x128xf32>,
    %68 = vector.extract_strided_slice %61 {offsets = [2, 0, 0], sizes = [1, 16, 128], strides = [1, 1, 1]} : vector<4x16x128xf32> to vector<1x16x128xf32>
    %69 = vector.shape_cast %68 : vector<1x16x128xf32> to vector<16x128xf32>
    %c42_39 = arith.constant 42 : index
    %c0_40 = arith.constant 0 : index
    %70 = vector.load %arg6[%c42_39, %c0_40] : memref<80x128xf32, #tpu.memory_space<vmem>>, vector<16x128xf32>
    tpu.vector_store %arg6[%c42_39, %c0_40], %69 {strides = array<i32>} : memref<80x128xf32, #tpu.memory_space<vmem>>, vector<16x128xf32>,
    %71 = vector.extract_strided_slice %61 {offsets = [3, 0, 0], sizes = [1, 16, 128], strides = [1, 1, 1]} : vector<4x16x128xf32> to vector<1x16x128xf32>
    %72 = vector.shape_cast %71 : vector<1x16x128xf32> to vector<16x128xf32>
    %c62_41 = arith.constant 62 : index
    %c0_42 = arith.constant 0 : index
    %73 = vector.load %arg6[%c62_41, %c0_42] : memref<80x128xf32, #tpu.memory_space<vmem>>, vector<16x128xf32>
    tpu.vector_store %arg6[%c62_41, %c0_42], %72 {strides = array<i32>} : memref<80x128xf32, #tpu.memory_space<vmem>>, vector<16x128xf32>,
    %c0_43 = arith.constant 0 : index
    %c0_44 = arith.constant 0 : index
    %74 = vector.load %arg6[%c0_43, %c0_44] : memref<80x128xf32, #tpu.memory_space<vmem>>, vector<76x128xf32>
    %c1_45 = arith.constant 1 : index
    %c0_46 = arith.constant 0 : index
    %75 = vector.load %arg6[%c1_45, %c0_46] : memref<80x128xf32, #tpu.memory_space<vmem>>, vector<76x128xf32>
    %c2_47 = arith.constant 2 : index
    %c0_48 = arith.constant 0 : index
    %76 = vector.load %arg6[%c2_47, %c0_48] : memref<80x128xf32, #tpu.memory_space<vmem>>, vector<76x128xf32>
    %c3_49 = arith.constant 3 : index
    %c0_50 = arith.constant 0 : index
    %77 = vector.load %arg6[%c3_49, %c0_50] : memref<80x128xf32, #tpu.memory_space<vmem>>, vector<76x128xf32>
    %c4_51 = arith.constant 4 : index
    %c0_52 = arith.constant 0 : index
    %78 = vector.load %arg6[%c4_51, %c0_52] : memref<80x128xf32, #tpu.memory_space<vmem>>, vector<76x128xf32>
    %79 = tpu.concatenate %74, %75, %76, %77, %78 in 1 : vector<76x128xf32>, vector<76x128xf32>, vector<76x128xf32>, vector<76x128xf32>, vector<76x128xf32> -> vector<76x640xf32>
    %80 = arith.truncf %79 : vector<76x640xf32> to vector<76x640xbf16>
    %c1_53 = arith.constant 1 : index
    %c0_54 = arith.constant 0 : index
    %c0_55 = arith.constant 0 : index
    %81 = vector.load %arg2[%c1_53, %c0_54, %c0_55] : memref<4x640x128xbf16, #tpu.memory_space<vmem>>, vector<1x640x128xbf16>
    %82 = vector.shape_cast %81 : vector<1x640x128xbf16> to vector<640x128xbf16>
    %cst_56 = arith.constant dense<0.000000e+00> : vector<76x128xf32>
    %83 = tpu.matmul %80, %82, %cst_56 {dimension_numbers = #tpu.dot_dimension_numbers<[1], [0], [0], [1], [0, 0, 1, 1], [], []>} : vector<76x640xbf16>, vector<640x128xbf16>, vector<76x128xf32> -> vector<76x128xf32>
    %c1_57 = arith.constant 1 : index
    %c0_58 = arith.constant 0 : index
    %c0_59 = arith.constant 0 : index
    %84 = vector.load %arg3[%c1_57, %c0_58, %c0_59] : memref<4x1x128xf32, #tpu.memory_space<vmem>>, vector<1x1x128xf32>
    %85 = vector.shape_cast %84 : vector<1x1x128xf32> to vector<1x128xf32>
    %86 = vector.broadcast %85 : vector<1x128xf32> to vector<76x128xf32>
    %87 = arith.addf %83, %86 : vector<76x128xf32>
    %88 = vector.extract_strided_slice %87 {offsets = [0, 0], sizes = [16, 128], strides = [1, 1]} : vector<76x128xf32> to vector<16x128xf32>
    %89 = vector.extract_strided_slice %87 {offsets = [20, 0], sizes = [16, 128], strides = [1, 1]} : vector<76x128xf32> to vector<16x128xf32>
    %90 = vector.extract_strided_slice %87 {offsets = [40, 0], sizes = [16, 128], strides = [1, 1]} : vector<76x128xf32> to vector<16x128xf32>
    %91 = vector.extract_strided_slice %87 {offsets = [60, 0], sizes = [16, 128], strides = [1, 1]} : vector<76x128xf32> to vector<16x128xf32>
    %92 = vector.shape_cast %88 : vector<16x128xf32> to vector<1x16x128xf32>
    %93 = vector.shape_cast %89 : vector<16x128xf32> to vector<1x16x128xf32>
    %94 = vector.shape_cast %90 : vector<16x128xf32> to vector<1x16x128xf32>
    %95 = vector.shape_cast %91 : vector<16x128xf32> to vector<1x16x128xf32>
    %96 = tpu.concatenate %92, %93, %94, %95 in 0 : vector<1x16x128xf32>, vector<1x16x128xf32>, vector<1x16x128xf32>, vector<1x16x128xf32> -> vector<4x16x128xf32>
    %97 = arith.maximumf %53, %96 : vector<4x16x128xf32>
    %c2_60 = arith.constant 2 : index
    %98 = memref.load %arg4[%c2_60] : memref<4xf32, #tpu.memory_space<smem>>
    %cst_61 = arith.constant 0.000000e+00 : f32
    %99 = vector.broadcast %cst_61 : f32 to vector<4x16x128xf32>
    %100 = arith.maximumf %97, %99 : vector<4x16x128xf32>
    %cst_62 = arith.constant 0.000000e+00 : f32
    %101 = vector.broadcast %cst_62 : f32 to vector<4x16x128xf32>
    %102 = arith.minimumf %97, %101 : vector<4x16x128xf32>
    %103 = vector.broadcast %98 : f32 to vector<4x16x128xf32>
    %104 = arith.mulf %103, %102 : vector<4x16x128xf32>
    %105 = arith.addf %100, %104 : vector<4x16x128xf32>
    %106 = vector.extract_strided_slice %105 {offsets = [0, 0, 0], sizes = [1, 16, 128], strides = [1, 1, 1]} : vector<4x16x128xf32> to vector<1x16x128xf32>
    %107 = vector.shape_cast %106 : vector<1x16x128xf32> to vector<16x128xf32>
    %c2_63 = arith.constant 2 : index
    %c0_64 = arith.constant 0 : index
    %108 = vector.load %arg6[%c2_63, %c0_64] : memref<80x128xf32, #tpu.memory_space<vmem>>, vector<16x128xf32>
    tpu.vector_store %arg6[%c2_63, %c0_64], %107 {strides = array<i32>} : memref<80x128xf32, #tpu.memory_space<vmem>>, vector<16x128xf32>,
    %109 = vector.extract_strided_slice %105 {offsets = [1, 0, 0], sizes = [1, 16, 128], strides = [1, 1, 1]} : vector<4x16x128xf32> to vector<1x16x128xf32>
    %110 = vector.shape_cast %109 : vector<1x16x128xf32> to vector<16x128xf32>
    %c22_65 = arith.constant 22 : index
    %c0_66 = arith.constant 0 : index
    %111 = vector.load %arg6[%c22_65, %c0_66] : memref<80x128xf32, #tpu.memory_space<vmem>>, vector<16x128xf32>
    tpu.vector_store %arg6[%c22_65, %c0_66], %110 {strides = array<i32>} : memref<80x128xf32, #tpu.memory_space<vmem>>, vector<16x128xf32>,
    %112 = vector.extract_strided_slice %105 {offsets = [2, 0, 0], sizes = [1, 16, 128], strides = [1, 1, 1]} : vector<4x16x128xf32> to vector<1x16x128xf32>
    %113 = vector.shape_cast %112 : vector<1x16x128xf32> to vector<16x128xf32>
    %c42_67 = arith.constant 42 : index
    %c0_68 = arith.constant 0 : index
    %114 = vector.load %arg6[%c42_67, %c0_68] : memref<80x128xf32, #tpu.memory_space<vmem>>, vector<16x128xf32>
    tpu.vector_store %arg6[%c42_67, %c0_68], %113 {strides = array<i32>} : memref<80x128xf32, #tpu.memory_space<vmem>>, vector<16x128xf32>,
    %115 = vector.extract_strided_slice %105 {offsets = [3, 0, 0], sizes = [1, 16, 128], strides = [1, 1, 1]} : vector<4x16x128xf32> to vector<1x16x128xf32>
    %116 = vector.shape_cast %115 : vector<1x16x128xf32> to vector<16x128xf32>
    %c62_69 = arith.constant 62 : index
    %c0_70 = arith.constant 0 : index
    %117 = vector.load %arg6[%c62_69, %c0_70] : memref<80x128xf32, #tpu.memory_space<vmem>>, vector<16x128xf32>
    tpu.vector_store %arg6[%c62_69, %c0_70], %116 {strides = array<i32>} : memref<80x128xf32, #tpu.memory_space<vmem>>, vector<16x128xf32>,
    %c0_71 = arith.constant 0 : index
    %c0_72 = arith.constant 0 : index
    %118 = vector.load %arg6[%c0_71, %c0_72] : memref<80x128xf32, #tpu.memory_space<vmem>>, vector<76x128xf32>
    %c1_73 = arith.constant 1 : index
    %c0_74 = arith.constant 0 : index
    %119 = vector.load %arg6[%c1_73, %c0_74] : memref<80x128xf32, #tpu.memory_space<vmem>>, vector<76x128xf32>
    %c2_75 = arith.constant 2 : index
    %c0_76 = arith.constant 0 : index
    %120 = vector.load %arg6[%c2_75, %c0_76] : memref<80x128xf32, #tpu.memory_space<vmem>>, vector<76x128xf32>
    %c3_77 = arith.constant 3 : index
    %c0_78 = arith.constant 0 : index
    %121 = vector.load %arg6[%c3_77, %c0_78] : memref<80x128xf32, #tpu.memory_space<vmem>>, vector<76x128xf32>
    %c4_79 = arith.constant 4 : index
    %c0_80 = arith.constant 0 : index
    %122 = vector.load %arg6[%c4_79, %c0_80] : memref<80x128xf32, #tpu.memory_space<vmem>>, vector<76x128xf32>
    %123 = tpu.concatenate %118, %119, %120, %121, %122 in 1 : vector<76x128xf32>, vector<76x128xf32>, vector<76x128xf32>, vector<76x128xf32>, vector<76x128xf32> -> vector<76x640xf32>
    %124 = arith.truncf %123 : vector<76x640xf32> to vector<76x640xbf16>
    %c2_81 = arith.constant 2 : index
    %c0_82 = arith.constant 0 : index
    %c0_83 = arith.constant 0 : index
    %125 = vector.load %arg2[%c2_81, %c0_82, %c0_83] : memref<4x640x128xbf16, #tpu.memory_space<vmem>>, vector<1x640x128xbf16>
    %126 = vector.shape_cast %125 : vector<1x640x128xbf16> to vector<640x128xbf16>
    %cst_84 = arith.constant dense<0.000000e+00> : vector<76x128xf32>
    %127 = tpu.matmul %124, %126, %cst_84 {dimension_numbers = #tpu.dot_dimension_numbers<[1], [0], [0], [1], [0, 0, 1, 1], [], []>} : vector<76x640xbf16>, vector<640x128xbf16>, vector<76x128xf32> -> vector<76x128xf32>
    %c2_85 = arith.constant 2 : index
    %c0_86 = arith.constant 0 : index
    %c0_87 = arith.constant 0 : index
    %128 = vector.load %arg3[%c2_85, %c0_86, %c0_87] : memref<4x1x128xf32, #tpu.memory_space<vmem>>, vector<1x1x128xf32>
    %129 = vector.shape_cast %128 : vector<1x1x128xf32> to vector<1x128xf32>
    %130 = vector.broadcast %129 : vector<1x128xf32> to vector<76x128xf32>
    %131 = arith.addf %127, %130 : vector<76x128xf32>
    %132 = vector.extract_strided_slice %131 {offsets = [0, 0], sizes = [16, 128], strides = [1, 1]} : vector<76x128xf32> to vector<16x128xf32>
    %133 = vector.extract_strided_slice %131 {offsets = [20, 0], sizes = [16, 128], strides = [1, 1]} : vector<76x128xf32> to vector<16x128xf32>
    %134 = vector.extract_strided_slice %131 {offsets = [40, 0], sizes = [16, 128], strides = [1, 1]} : vector<76x128xf32> to vector<16x128xf32>
    %135 = vector.extract_strided_slice %131 {offsets = [60, 0], sizes = [16, 128], strides = [1, 1]} : vector<76x128xf32> to vector<16x128xf32>
    %136 = vector.shape_cast %132 : vector<16x128xf32> to vector<1x16x128xf32>
    %137 = vector.shape_cast %133 : vector<16x128xf32> to vector<1x16x128xf32>
    %138 = vector.shape_cast %134 : vector<16x128xf32> to vector<1x16x128xf32>
    %139 = vector.shape_cast %135 : vector<16x128xf32> to vector<1x16x128xf32>
    %140 = tpu.concatenate %136, %137, %138, %139 in 0 : vector<1x16x128xf32>, vector<1x16x128xf32>, vector<1x16x128xf32>, vector<1x16x128xf32> -> vector<4x16x128xf32>
    %141 = arith.maximumf %97, %140 : vector<4x16x128xf32>
    %c3_88 = arith.constant 3 : index
    %142 = memref.load %arg4[%c3_88] : memref<4xf32, #tpu.memory_space<smem>>
    %cst_89 = arith.constant 0.000000e+00 : f32
    %143 = vector.broadcast %cst_89 : f32 to vector<4x16x128xf32>
    %144 = arith.maximumf %141, %143 : vector<4x16x128xf32>
    %cst_90 = arith.constant 0.000000e+00 : f32
    %145 = vector.broadcast %cst_90 : f32 to vector<4x16x128xf32>
    %146 = arith.minimumf %141, %145 : vector<4x16x128xf32>
    %147 = vector.broadcast %142 : f32 to vector<4x16x128xf32>
    %148 = arith.mulf %147, %146 : vector<4x16x128xf32>
    %149 = arith.addf %144, %148 : vector<4x16x128xf32>
    %150 = vector.extract_strided_slice %149 {offsets = [0, 0, 0], sizes = [1, 16, 128], strides = [1, 1, 1]} : vector<4x16x128xf32> to vector<1x16x128xf32>
    %151 = vector.shape_cast %150 : vector<1x16x128xf32> to vector<16x128xf32>
    %c2_91 = arith.constant 2 : index
    %c0_92 = arith.constant 0 : index
    %152 = vector.load %arg6[%c2_91, %c0_92] : memref<80x128xf32, #tpu.memory_space<vmem>>, vector<16x128xf32>
    tpu.vector_store %arg6[%c2_91, %c0_92], %151 {strides = array<i32>} : memref<80x128xf32, #tpu.memory_space<vmem>>, vector<16x128xf32>,
    %153 = vector.extract_strided_slice %149 {offsets = [1, 0, 0], sizes = [1, 16, 128], strides = [1, 1, 1]} : vector<4x16x128xf32> to vector<1x16x128xf32>
    %154 = vector.shape_cast %153 : vector<1x16x128xf32> to vector<16x128xf32>
    %c22_93 = arith.constant 22 : index
    %c0_94 = arith.constant 0 : index
    %155 = vector.load %arg6[%c22_93, %c0_94] : memref<80x128xf32, #tpu.memory_space<vmem>>, vector<16x128xf32>
    tpu.vector_store %arg6[%c22_93, %c0_94], %154 {strides = array<i32>} : memref<80x128xf32, #tpu.memory_space<vmem>>, vector<16x128xf32>,
    %156 = vector.extract_strided_slice %149 {offsets = [2, 0, 0], sizes = [1, 16, 128], strides = [1, 1, 1]} : vector<4x16x128xf32> to vector<1x16x128xf32>
    %157 = vector.shape_cast %156 : vector<1x16x128xf32> to vector<16x128xf32>
    %c42_95 = arith.constant 42 : index
    %c0_96 = arith.constant 0 : index
    %158 = vector.load %arg6[%c42_95, %c0_96] : memref<80x128xf32, #tpu.memory_space<vmem>>, vector<16x128xf32>
    tpu.vector_store %arg6[%c42_95, %c0_96], %157 {strides = array<i32>} : memref<80x128xf32, #tpu.memory_space<vmem>>, vector<16x128xf32>,
    %159 = vector.extract_strided_slice %149 {offsets = [3, 0, 0], sizes = [1, 16, 128], strides = [1, 1, 1]} : vector<4x16x128xf32> to vector<1x16x128xf32>
    %160 = vector.shape_cast %159 : vector<1x16x128xf32> to vector<16x128xf32>
    %c62_97 = arith.constant 62 : index
    %c0_98 = arith.constant 0 : index
    %161 = vector.load %arg6[%c62_97, %c0_98] : memref<80x128xf32, #tpu.memory_space<vmem>>, vector<16x128xf32>
    tpu.vector_store %arg6[%c62_97, %c0_98], %160 {strides = array<i32>} : memref<80x128xf32, #tpu.memory_space<vmem>>, vector<16x128xf32>,
    %c0_99 = arith.constant 0 : index
    %c0_100 = arith.constant 0 : index
    %162 = vector.load %arg6[%c0_99, %c0_100] : memref<80x128xf32, #tpu.memory_space<vmem>>, vector<76x128xf32>
    %c1_101 = arith.constant 1 : index
    %c0_102 = arith.constant 0 : index
    %163 = vector.load %arg6[%c1_101, %c0_102] : memref<80x128xf32, #tpu.memory_space<vmem>>, vector<76x128xf32>
    %c2_103 = arith.constant 2 : index
    %c0_104 = arith.constant 0 : index
    %164 = vector.load %arg6[%c2_103, %c0_104] : memref<80x128xf32, #tpu.memory_space<vmem>>, vector<76x128xf32>
    %c3_105 = arith.constant 3 : index
    %c0_106 = arith.constant 0 : index
    %165 = vector.load %arg6[%c3_105, %c0_106] : memref<80x128xf32, #tpu.memory_space<vmem>>, vector<76x128xf32>
    %c4_107 = arith.constant 4 : index
    %c0_108 = arith.constant 0 : index
    %166 = vector.load %arg6[%c4_107, %c0_108] : memref<80x128xf32, #tpu.memory_space<vmem>>, vector<76x128xf32>
    %167 = tpu.concatenate %162, %163, %164, %165, %166 in 1 : vector<76x128xf32>, vector<76x128xf32>, vector<76x128xf32>, vector<76x128xf32>, vector<76x128xf32> -> vector<76x640xf32>
    %168 = arith.truncf %167 : vector<76x640xf32> to vector<76x640xbf16>
    %c3_109 = arith.constant 3 : index
    %c0_110 = arith.constant 0 : index
    %c0_111 = arith.constant 0 : index
    %169 = vector.load %arg2[%c3_109, %c0_110, %c0_111] : memref<4x640x128xbf16, #tpu.memory_space<vmem>>, vector<1x640x128xbf16>
    %170 = vector.shape_cast %169 : vector<1x640x128xbf16> to vector<640x128xbf16>
    %cst_112 = arith.constant dense<0.000000e+00> : vector<76x128xf32>
    %171 = tpu.matmul %168, %170, %cst_112 {dimension_numbers = #tpu.dot_dimension_numbers<[1], [0], [0], [1], [0, 0, 1, 1], [], []>} : vector<76x640xbf16>, vector<640x128xbf16>, vector<76x128xf32> -> vector<76x128xf32>
    %c3_113 = arith.constant 3 : index
    %c0_114 = arith.constant 0 : index
    %c0_115 = arith.constant 0 : index
    %172 = vector.load %arg3[%c3_113, %c0_114, %c0_115] : memref<4x1x128xf32, #tpu.memory_space<vmem>>, vector<1x1x128xf32>
    %173 = vector.shape_cast %172 : vector<1x1x128xf32> to vector<1x128xf32>
    %174 = vector.broadcast %173 : vector<1x128xf32> to vector<76x128xf32>
    %175 = arith.addf %171, %174 : vector<76x128xf32>
    %176 = vector.extract_strided_slice %175 {offsets = [0, 0], sizes = [16, 128], strides = [1, 1]} : vector<76x128xf32> to vector<16x128xf32>
    %177 = vector.extract_strided_slice %175 {offsets = [20, 0], sizes = [16, 128], strides = [1, 1]} : vector<76x128xf32> to vector<16x128xf32>
    %178 = vector.extract_strided_slice %175 {offsets = [40, 0], sizes = [16, 128], strides = [1, 1]} : vector<76x128xf32> to vector<16x128xf32>
    %179 = vector.extract_strided_slice %175 {offsets = [60, 0], sizes = [16, 128], strides = [1, 1]} : vector<76x128xf32> to vector<16x128xf32>
    %180 = vector.shape_cast %176 : vector<16x128xf32> to vector<1x16x128xf32>
    %181 = vector.shape_cast %177 : vector<16x128xf32> to vector<1x16x128xf32>
    %182 = vector.shape_cast %178 : vector<16x128xf32> to vector<1x16x128xf32>
    %183 = vector.shape_cast %179 : vector<16x128xf32> to vector<1x16x128xf32>
    %184 = tpu.concatenate %180, %181, %182, %183 in 0 : vector<1x16x128xf32>, vector<1x16x128xf32>, vector<1x16x128xf32>, vector<1x16x128xf32> -> vector<4x16x128xf32>
    %c0_116 = arith.constant 0 : index
    %c0_117 = arith.constant 0 : index
    %c0_118 = arith.constant 0 : index
    %185 = vector.load %arg5[%c0_116, %c0_117, %c0_118] : memref<4x16x128xf32, #tpu.memory_space<vmem>>, vector<4x16x128xf32>
    tpu.vector_store %arg5[%c0_116, %c0_117, %c0_118], %184 {strides = array<i32>} : memref<4x16x128xf32, #tpu.memory_space<vmem>>, vector<4x16x128xf32>,
    return
  }
  func.func @transform_0(%arg0: i32) -> (i32, i32, i32) {
    %c0_i32 = arith.constant 0 : i32
    %c0_i32_0 = arith.constant 0 : i32
    %c0_i32_1 = arith.constant 0 : i32
    return %arg0, %c0_i32, %c0_i32_0 : i32, i32, i32
  }
  func.func @transform_1(%arg0: i32) -> (i32, i32, i32) {
    %c0_i32 = arith.constant 0 : i32
    %c0_i32_0 = arith.constant 0 : i32
    %c0_i32_1 = arith.constant 0 : i32
    %c0_i32_2 = arith.constant 0 : i32
    return %c0_i32, %c0_i32_0, %c0_i32_1 : i32, i32, i32
  }
  func.func @transform_2(%arg0: i32) -> (i32, i32, i32) {
    %c0_i32 = arith.constant 0 : i32
    %c0_i32_0 = arith.constant 0 : i32
    %c0_i32_1 = arith.constant 0 : i32
    %c0_i32_2 = arith.constant 0 : i32
    return %c0_i32, %c0_i32_0, %c0_i32_1 : i32, i32, i32
  }
  func.func @transform_3(%arg0: i32) -> i32 {
    %c0_i32 = arith.constant 0 : i32
    %c0_i32_0 = arith.constant 0 : i32
    return %c0_i32 : i32
  }
  func.func @transform_4(%arg0: i32) -> (i32, i32, i32) {
    %c0_i32 = arith.constant 0 : i32
    %c0_i32_0 = arith.constant 0 : i32
    %c0_i32_1 = arith.constant 0 : i32
    return %arg0, %c0_i32, %c0_i32_0 : i32, i32, i32
  }
}

</mosaic_0001>

<bundles_post_ra>
// kernel: tpu_custom_call.1
= control target key start
LH: loop header
LB: loop body
LE: loop exit
PB: predicated region body
PF: predicated region fallthrough
CT: control target
= control target key end

     0   :  { %9 = vsyncpa [#allocation4], 0  ;;  %s5018_s0 = inlined_call_operand.hbm [shape: f32[8,16,128], index: 0, kind: input, shape index: {}]   ;;  %s5019_s1 = inlined_call_operand.hbm [shape: bf16[4,640,128], index: 1, kind: input, shape index: {}]   ;;  %s5020_s2 = inlined_call_operand.hbm [shape: f32[4,1,128], index: 2, kind: input, shape index: {}]   ;;  %s5021_s3 = inlined_call_operand.vmem [shape: f32[4], index: 3, kind: input, shape index: {}]   ;;  %s5022_s4 = inlined_call_operand.hbm [shape: f32[8,16,128], index: 4, kind: output, shape index: {}]  }
   0x1   :  { %11 = vsyncpa [#allocation4 + $0x1], 0 }
   0x2   :  { %12 = vsyncpa [#allocation8], 0 }
   0x3   :  { %13 = vsyncpa [#allocation6], 0 }
   0x4   :  { %14 = vsyncpa [#allocation5], 0 }
   0x5   :  { %16 = vsyncpa [#allocation5 + $0x1], 0  ;;  %s4390_s15 = smov 0   ;;  %s4392_s16 = smov 0  }
   0x6   :  { %s4394_s17 = smov 0   ;;  %s4396_s18 = smov 0  }
   0x7 LB: > { %s4411_s19 = sadd.s32 4294967295, %s4348_s18   ;;  %s3169_s20 = sadd.s32 4294967294, %s4348_s18   ;;  %s4348_s18 = sphi %s4396_s18, %s5046_s18   ;;  %s4344_s17 = sphi %s4394_s17, %s5045_s17   ;;  %s4340_s16 = sphi %s4392_s16, %s5044_s16   ;;  %s4336_s15 = sphi %s4390_s15, %s5043_s15  }
   0x8   : > { %p42_p0 = scmp.ne.s32.totalorder %s4340_s16, %s4336_s15  ;;  %p5023_p1 = scmp.eq.s32.totalorder %s4411_s19, 0 }
   0x9   : > { %p135_p3 = scmp.eq.s32.totalorder %s3169_s20, 1  ;;  %p3170_p5 = scmp.ge.s32.totalorder %s4348_s18, 1 }
   0xa   : > { %p4420_p4 = por %p5023_p1, %p42_p0  ;;  %p142_p7 = scmp.lt.s32.totalorder %s4348_s18, 3 }
   0xb   : > { %p4425_p6 = por %p135_p3, %p42_p0  ;;  %s4350_s24 = smov [#allocation7]  }
   0xc   : > { %s5027_s21 = scalar_select %p4420_p4, 1, 0 }
   0xd   : > { %s5028_s22 = scalar_select %p4425_p6, 1, 0 }
   0xe   : > { %p4430_p8 = pnand %p3170_p5, %p142_p7  ;;  %s154_s25 = sshll.u32 %s4350_s24, 4  ;;  %s155_s25 = int_to_ptr.vmem [resolvable:$true] %s154_s25 }
   0xf   : > { %s4351_s27 = smov [#allocation9]   ;;  %s4192_s29 = scalar_lea.vmem %s155_s25, 20480 }
  0x10   : > { %s5029_s23 = scalar_select %p4430_p8, 1, 0 }
  0x11   : > { %p3942_p9 = pneg %p4430_p8  ;;  %s167_s28 = sshll.u32 %s4351_s27, 4  ;;  %s168_s28 = int_to_ptr.vmem [resolvable:$true] %s167_s28 }
  0x12   : > { %p4193_p13 = scmp.ne.s32.totalorder %s155_s25, %s4192_s29  ;;  %p4200_p5 = scmp.lt.s32.totalorder %s155_s25, %s155_s25 }
  0x13   : > { %p4439_p11 = pnand %p3942_p9, %p5023_p1  ;;  %p4201_p7 = scmp.lt.s32.totalorder %s4192_s29, %s4192_s29 }
  0x15   : > { %p4183_p12 = pneg %p4439_p11  ;;  %p4202_p10 = por %p4201_p7, %p4200_p5 }
  0x17   : > { %p4195_p0 = pnand %p4193_p13, %p4183_p12 }
  0x19   : > { %p4196_p3 = pneg %p4195_p0 }
  0x1b   : > { %p4203_p9 = pnand %p4202_p10, %p4196_p3 }
  0x1d   : > { %4206 = shalt.err (!%p4203_p9)
}
  0x1e   : > { %s4352_s30 = smov 64   ;;  %s4353_s5 = smov 4  }
  0x1f   : > { %3945 = dma.hbm_to_vmem [thread:$0]  (!%p4439_p11), %s5019_s1, 20480, %s155_s25, [#allocation8], %s4352_s30, %s4352_s30, %s4353_s5  }
  0x20   : > { %s4218_s8 = scalar_lea.vmem %s168_s28, 64  ;;  %p4226_p2 = scmp.lt.s32.totalorder %s168_s28, %s168_s28 }
  0x21   : > { %p4219_p1 = scmp.ne.s32.totalorder %s168_s28, %s4218_s8  ;;  %p4227_p6 = scmp.lt.s32.totalorder %s4218_s8, %s4218_s8 }
  0x23   : > { %p4221_p13 = pnand %p4219_p1, %p4183_p12  ;;  %p4228_p5 = por %p4227_p6, %p4226_p2 }
  0x25   : > { %p4222_p0 = pneg %p4221_p13 }
  0x27   : > { %p4229_p10 = pnand %p4228_p5, %p4222_p0 }
  0x29   : > { %4232 = shalt.err (!%p4229_p10)
}
  0x2a   : > { %s4354_s9 = smov 16   ;;  %s4355_s10 = smov 1  }
  0x2b   : > { %3948 = dma.hbm_to_vmem [thread:$0]  (!%p4439_p11), %s5020_s2, 64, %s168_s28, [#allocation8], %s4354_s9, %s4354_s9, %s4355_s10  }
  0x2c   : > { %s181_s20 = sshll.u32 %s5021_s3, 4  ;;  %s182_s20 = int_to_ptr.vmem [resolvable:$true] %s181_s20 }
  0x2d   : > { %s4233_s24 = scalar_lea.vmem %s182_s20, 16  ;;  %p4241_p3 = scmp.lt.s32.totalorder %s182_s20, %s182_s20 }
  0x2e   : > { %p4234_p1 = scmp.ne.s32.totalorder %s182_s20, %s4233_s24  ;;  %p4242_p7 = scmp.lt.s32.totalorder %s4233_s24, %s4233_s24 }
  0x30   : > { %p4236_p2 = pnand %p4234_p1, %p4183_p12  ;;  %p4243_p9 = por %p4242_p7, %p4241_p3 }
  0x32   : > { %p4237_p6 = pneg %p4236_p2 }
  0x34   : > { %p4244_p13 = pnand %p4243_p9, %p4237_p6 }
  0x36   : > { %4247 = shalt.err (!%p4244_p13)
}
  0x37   : > { %s4356_s25 = smov [#allocation10]   ;;  %s4470_s27 = sadd.s32 1, %s4348_s18  }
  0x38   : > { %3951 = dma.vmem_to_smem (!%p4439_p11), %s182_s20, 16, %s4356_s25, [#allocation6]  }
  0x39   : > { %s26_s28 = ssub.s32 %s4348_s18, %s4470_s27  ;;  %s29_s29 = sadd.s32 1, %s4344_s17 }
  0x3a   : > { %p27_p12 = scmp.eq.s32.totalorder %s26_s28, 0  ;;  %p36_p0 = scmp.ne.s32.totalorder %s4344_s17, %s4340_s16 }
  0x3b   : > { %p37_p5 = scmp.eq.s32.totalorder %s4348_s18, 0  ;;  %p3963_p10 = scmp.lt.s32.totalorder %s4348_s18, 2 }
  0x3c   : > { %s4480_s26 = scalar_select %p27_p12, %s4344_s17, %s29_s29  }
  0x3d   : > { %p38_p1 = por %p37_p5, %p36_p0  ;;  %p5031_p2 = scmp.eq.s32.totalorder %s4411_s19, 1 }
  0x3e   : > { %s192_s5 = sand.u32 1, %s4344_s17   ;;  %s3359_s6 = sshll.u32 %s4348_s18, 10 }
  0x3f   : > { %p4484_p6 = por %p5031_p2, %p36_p0  ;;  %s3175_s7 = sshll.u32 %s192_s5, 6 }
  0x40   : > { %s4493_s10 = scalar_lea.hbm %s5018_s0, %s3359_s6  ;;  %s196_s11 = scalar_lea.vmem [#allocation3], %s3175_s7 }
  0x41   : > { %s5032_s30 = scalar_select %p4484_p6, 1, 0 }
  0x42   : > { %s204_s12 = sshll.u32 %s196_s11, 4  ;;  %p4495_p11 = pnand %p3963_p10, %p38_p1  ;;  %s4499_s12 = int_to_ptr.vmem [resolvable:$true] %s204_s12 }
  0x43   : > { %s4501_s14 = scalar_lea.sflag [#allocation4], %s192_s5  ;;  %s4248_s20 = scalar_lea.hbm %s4493_s10, 1024 }
  0x44   : > { %p4249_p3 = scmp.ne.s32.totalorder %s4493_s10, %s4248_s20  ;;  %p4250_p7 = pneg %p4495_p11 }
  0x45   : > { %s4253_s28 = scalar_lea.hbm %s5018_s0, 2048  ;;  %p4254_p12 = scmp.lt.s32.totalorder %s4493_s10, %s5018_s0 }
  0x46   : > { %p4251_p9 = pnand %p4250_p7, %p4249_p3  ;;  %p4255_p0 = scmp.lt.s32.totalorder %s4253_s28, %s4248_s20 }
  0x48   : > { %p4252_p13 = pneg %p4251_p9  ;;  %p4256_p5 = por %p4255_p0, %p4254_p12 }
  0x4a   : > { %p4257_p10 = pnand %p4256_p5, %p4252_p13 }
  0x4c   : > { %4260 = shalt.err (!%p4257_p10)
}
  0x4d   : > { %s4261_s5 = scalar_lea.vmem %s4499_s12, 1024  ;;  %s4357_s7 = smov [#allocation3]  }
  0x4e   : > { %p4262_p1 = scmp.ne.s32.totalorder %s4499_s12, %s4261_s5  ;;  %s4266_s8 = sshll.u32 %s4357_s7, 4  ;;  %s4267_s8 = int_to_ptr.vmem [resolvable:$false] %s4266_s8 }
  0x4f   : > { %s4268_s9 = scalar_lea.vmem %s4267_s8, 2048  ;;  %p4269_p9 = scmp.lt.s32.totalorder %s4499_s12, %s4267_s8 }
  0x50   : > { %p4264_p2 = pnand %p4262_p1, %p4250_p7  ;;  %p4270_p6 = scmp.lt.s32.totalorder %s4268_s9, %s4261_s5 }
  0x52   : > { %p4265_p3 = pneg %p4264_p2  ;;  %p4271_p4 = por %p4270_p6, %p4269_p9 }
  0x54   : > { %p4272_p8 = pnand %p4271_p4, %p4265_p3 }
  0x56   : > { %4275 = shalt.err (!%p4272_p8)
}
  0x57   : > { %s4358_s11 = smov 128   ;;  %s4359_s20 = smov 8  }
  0x58   : > { %3955 = dma.hbm_to_vmem [thread:$0]  (!%p4495_p11), %s4493_s10, 1024, %s4499_s12, %s4501_s14, %s4358_s11, %s4358_s11, %s4359_s20  }
  0x59   : > { %p5034_p7 = scmp.ne.s32.totalorder %s5029_s23, 0 }
  0x5a   : > { %s4525_s24 = sand.u32 (!%p5034_p7), 1, %s4340_s16   ;;  %p5035_p4 = scmp.ne.s32.totalorder (!%p5034_p7), %s5027_s21, 0 }
  0x5b   : > { %216 = sbr.rel (%p5034_p7) target bundleno = 1225 (0x4c9), region = 36  ;;  %s3180_s25 = sshll.u32 (!%p5034_p7), %s4525_s24, 6 }
  0x5c   : > { %s219_s28 = scalar_lea.sflag (!%p5034_p7), [#allocation4], %s4525_s24  ;;  %s4531_s29 = scalar_lea.vmem (!%p5034_p7), [#allocation3], %s3180_s25 }
  0x60   : > { %4319 = dma.done.wait (%p5035_p4), %s219_s28, 1024  }
  0x61   : > { %4321 = vsyncadd (%p5035_p4), %s219_s28, 4294966272  ;;  %p5036_p8 = scmp.eq.s32.totalorder %s4411_s19, 0 }
  0x63   : > { %4323 = dma.done.wait (%p5036_p8), [#allocation8], 20544   ;;  %p5037_p6 = pmov %p5036_p8 }
  0x65   : > { %4325 = vsyncadd (%p5037_p6), [#allocation8], 4294946752  ;;  %p5038_p11 = pmov %p5037_p6 }
  0x66   : > { %p5039_p13 = pmov %p5037_p6 }
  0x67   : > { %4327 = dma.done.wait (%p5038_p11), [#allocation6], 16  }
  0x68   : > { %4329 = vsyncadd (%p5039_p13), [#allocation6], 4294967280 }
  0x69   : > { %239 = sfence }
  0x6a   : > { %v4013_v0 = vld [vmem:[#allocation7 + $0x78] sm:$0xff]   ;;  %v4360_v2 = vmov 0.0   ;;  %v4017_v5 = vld [vmem:[#allocation7 + $0x70] sm:$0xff]   ;;  %v4021_v9 = vld [vmem:[#allocation7 + $0x68] sm:$0xff]   ;;  %s279_s21 = sld [smem:[#allocation10]]  ;;  %vm4361_vm0 = vmmov 0  }
  0x6b   : > { %v4014_v1 = vld [vmem:[#allocation7 + $0x38] sm:$0xff]   ;;  %263 = vst [vmem:[#allocation2] sm:$0x3] %v4360_v2  ;;  %264 = vst [vmem:[#allocation2 + $0x12] sm:$0x3] %v4360_v2  ;;  %3362 = vmatprep.subr.bf16.mxu0 %v4013_v0  ;;  %v4018_v6 = vld [vmem:[#allocation7 + $0x30] sm:$0xff]  }
  0x6c   : > { %265 = vst [vmem:[#allocation2 + $0x14] sm:$0x3] %v4360_v2  ;;  %266 = vst [vmem:[#allocation2 + $0x26] sm:$0x3] %v4360_v2  ;;  %v4015_v3 = vld [vmem:[#allocation7 + $0xf8] sm:$0xff]   ;;  %3363 = vmatpush3.bf16.msra.mxu0 %v4014_v1  ;;  %v4019_v7 = vld [vmem:[#allocation7 + $0xf0] sm:$0xff]  }
  0x6d   : > { %267 = vst [vmem:[#allocation2 + $0x28] sm:$0x3] %v4360_v2  ;;  %268 = vst [vmem:[#allocation2 + $0x3a] sm:$0x3] %v4360_v2  ;;  %v4016_v4 = vld [vmem:[#allocation7 + $0xb8] sm:$0xff]   ;;  %3408 = vmatprep.subr.bf16.mxu1 %v4015_v3  ;;  %3364 = vmatprep.subr.bf16.mxu0 %v4017_v5  ;;  %v4020_v8 = vld [vmem:[#allocation7 + $0xb0] sm:$0xff]  }
  0x6e   : > { %269 = vst [vmem:[#allocation2 + $0x3c] sm:$0x3] %v4360_v2  ;;  %270 = vst [vmem:[#allocation2 + $0x4e] sm:$0x3] %v4360_v2  ;;  %3409 = vmatpush3.bf16.msra.mxu1 %v4016_v4  ;;  %v4022_v10 = vld [vmem:[#allocation7 + $0x28] sm:$0xff]   ;;  %v4025_v13 = vld [vmem:[#allocation7 + $0x60] sm:$0xff]  }
  0x6f   : > { %3410 = vmatprep.subr.bf16.mxu1 %v4019_v7  ;;  %v4023_v11 = vld [vmem:[#allocation7 + $0xe8] sm:$0xff]   ;;  %v4026_v14 = vld [vmem:[#allocation7 + $0x20] sm:$0xff]   ;;  %v4029_v17 = vld [vmem:[#allocation7 + $0x58] sm:$0xff]   ;;  %s3226_s23 = sld [smem:[#allocation10 + $0x1]]  ;;  %vm945_vm1 = vcmask 1043456   ;;  %s4940_s13 = scalar_lea.vmem [#allocation11], %s3180_s25 }
  0x70   : > { %3365 = vmatpush3.bf16.msra.mxu0 %v4018_v6  ;;  %v4024_v12 = vld [vmem:[#allocation7 + $0xa8] sm:$0xff]   ;;  %v4027_v15 = vld [vmem:[#allocation7 + $0xe0] sm:$0xff]   ;;  %v4030_v18 = vld [vmem:[#allocation7 + $0x18] sm:$0xff]   ;;  %v296_v45 = vstv %s279_s21  ;;  %s3268_s10 = sld [smem:[#allocation10 + $0x2]]  ;;  %s3361_s14 = sshll.u32 %s4411_s19, 10 }
  0x71   : > { %3366 = vmatprep.subr.bf16.mxu0 %v4021_v9  ;;  %v4028_v16 = vld [vmem:[#allocation7 + $0xa0] sm:$0xff]   ;;  %v4031_v19 = vld [vmem:[#allocation7 + $0xd8] sm:$0xff]   ;;  %v4033_v21 = vld [vmem:[#allocation7 + $0x50] sm:$0xff]   ;;  %s3310_s12 = sld [smem:[#allocation10 + $0x3]]  ;;  %s3065_s6 = sshll.u32 %s4940_s13, 4  ;;  %s4973_s6 = int_to_ptr.vmem [resolvable:$true] %s3065_s6 }
  0x72   : > { %3411 = vmatpush3.bf16.msra.mxu1 %v4020_v8  ;;  %v4032_v20 = vld [vmem:[#allocation7 + $0x98] sm:$0xff]   ;;  %v4034_v22 = vld [vmem:[#allocation7 + $0x10] sm:$0xff]   ;;  %v4037_v25 = vld [vmem:[#allocation7 + $0x48] sm:$0xff]   ;;  %s4971_s8 = scalar_lea.hbm %s5022_s4, %s3361_s14  ;;  %s3051_s19 = scalar_lea.sflag [#allocation5], %s4525_s24 }
  0x73   : > { %3412 = vmatprep.subr.bf16.mxu1 %v4023_v11  ;;  %v4035_v23 = vld [vmem:[#allocation7 + $0xd0] sm:$0xff]   ;;  %v4038_v26 = vld [vmem:[#allocation7 + $0x8] sm:$0xff]   ;;  %v4041_v29 = vld [vmem:[#allocation7 + $0x40] sm:$0xff]   ;;  %s4276_s9 = scalar_lea.vmem %s4973_s6, 1024  ;;  %p5040_p0 = scmp.ne.s32.totalorder %s5032_s30, 0 }
  0x74   : > { %3367 = vmatpush3.bf16.msra.mxu0 %v4022_v10  ;;  %v4036_v24 = vld [vmem:[#allocation7 + $0x90] sm:$0xff]   ;;  %v4039_v27 = vld [vmem:[#allocation7 + $0xc8] sm:$0xff]   ;;  %v4042_v30 = vld [vmem:[#allocation7] sm:$0xff]   ;;  %p4277_p12 = scmp.ne.s32.totalorder %s4973_s6, %s4276_s9  ;;  %s4362_s11 = smov [#allocation11]  }
  0x75   : > { %3368 = vmatprep.subr.bf16.mxu0 %v4025_v13  ;;  %v4040_v28 = vld [vmem:[#allocation7 + $0x88] sm:$0xff]   ;;  %v4043_v31 = vld [vmem:[#allocation7 + $0xc0] sm:$0xff]   ;;  %v273_v39 = vld [vmem:[%s4531_s29 + $0x10] sm:$0xff]  ;;  %s4280_s20 = sshll.u32 %s4362_s11, 4  ;;  %s4281_s20 = int_to_ptr.vmem [resolvable:$false] %s4280_s20 }
  0x76   : > { %3413 = vmatpush3.bf16.msra.mxu1 %v4024_v12  ;;  %v271_v32 = vld [vmem:[%s4531_s29] sm:$0xff]  ;;  %v272_v33 = vld [vmem:[%s4531_s29 + $0x8] sm:$0xff]  ;;  %v274_v40 = vld [vmem:[%s4531_s29 + $0x18] sm:$0xff]  ;;  %v282_v41 = vmax.f32 %v273_v39, 0.0  ;;  %v290_v43 = vmin.f32 %v273_v39, 0.0  ;;  %p4278_p5 = pnand %p4277_p12, %p5040_p0  ;;  %s4282_s25 = scalar_lea.vmem %s4281_s20, 2048 }
  0x77   : > { %3414 = vmatprep.subr.bf16.mxu1 %v4027_v15  ;;  %v4044_v34 = vld [vmem:[#allocation7 + $0x80] sm:$0xff]   ;;  %v288_v35 = vmin.f32 %v271_v32, 0.0  ;;  %v289_v36 = vmin.f32 %v272_v33, 0.0  ;;  %v280_v37 = vmax.f32 %v271_v32, 0.0  ;;  %v281_v38 = vmax.f32 %v272_v33, 0.0  ;;  %v276_v53 = vld [vmem:[%s4531_s29 + $0x28] sm:$0xff]  ;;  %p4283_p1 = scmp.lt.s32.totalorder %s4973_s6, %s4281_s20  ;;  %p4284_p2 = scmp.lt.s32.totalorder %s4282_s25, %s4276_s9 }
  0x78   : > { %3369 = vmatpush3.bf16.msra.mxu0 %v4026_v14  ;;  %v283_v42 = vmax.f32 %v274_v40, 0.0  ;;  %v291_v44 = vmin.f32 %v274_v40, 0.0  ;;  %v275_v46 = vld [vmem:[%s4531_s29 + $0x20] sm:$0xff]  ;;  %v299_v49 = vmul.f32 %v296_v45, %v290_v43  ;;  %v277_v58 = vld [vmem:[%s4531_s29 + $0x30] sm:$0xff]  ;;  %v285_v60 = vmax.f32 %v276_v53, 0.0  ;;  %v278_v0 = vld [vmem:[%s4531_s29 + $0x38] sm:$0xff]  ;;  %p4279_p10 = pneg %p4278_p5 }
  0x79   : > { %3370 = vmatprep.subr.bf16.mxu0 %v4029_v17  ;;  %v297_v47 = vmul.f32 %v296_v45, %v288_v35  ;;  %v298_v48 = vmul.f32 %v296_v45, %v289_v36  ;;  %v284_v51 = vmax.f32 %v275_v46, 0.0  ;;  %v292_v52 = vmin.f32 %v275_v46, 0.0  ;;  %v4045_v11 = vld [vmem:[#allocation7 + $0x138] sm:$0xff]   ;;  %v4047_v39 = vld [vmem:[#allocation7 + $0x128] sm:$0xff]   ;;  %p4285_p3 = por %p4284_p2, %p4283_p1 }
  0x7a   : > { %3415 = vmatpush3.bf16.msra.mxu1 %v4028_v16  ;;  %v300_v50 = vmul.f32 %v296_v45, %v291_v44  ;;  %v307_v56 = vadd.f32 %v299_v49, %v282_v41  ;;  %v293_v61 = vmin.f32 %v276_v53, 0.0  ;;  %v286_v62 = vmax.f32 %v277_v58, 0.0  ;;  %v4049_v49 = vld [vmem:[#allocation7 + $0x118] sm:$0xff]  }
  0x7b   : > { %3416 = vmatprep.subr.bf16.mxu1 %v4031_v19  ;;  %v305_v54 = vadd.f32 %v297_v47, %v280_v37  ;;  %v306_v55 = vadd.f32 %v298_v48, %v281_v38  ;;  %v301_v59 = vmul.f32 %v296_v45, %v292_v52  ;;  %v294_v63 = vmin.f32 %v277_v58, 0.0  ;;  %p4286_p9 = pnand %p4285_p3, %p4279_p10 }
  0x7c   : > { %3371 = vmatpush3.bf16.msra.mxu0 %v4030_v18  ;;  %v308_v57 = vadd.f32 %v300_v50, %v283_v42  ;;  %315 = vst [vmem:[#allocation2 + $0x16] sm:$0xff] %v307_v56  ;;  %v302_v3 = vmul.f32 %v296_v45, %v293_v61  ;;  %v287_v4 = vmax.f32 %v278_v0, 0.0  ;;  %v295_v5 = vmin.f32 %v278_v0, 0.0  ;;  %v4048_v42 = vld [vmem:[#allocation7 + $0x120] sm:$0xff]   ;;  %v4051_v0 = vld [vmem:[#allocation7 + $0x108] sm:$0xff]  }
  0x7d   : > { %3372 = vmatprep.subr.bf16.mxu0 %v4033_v21  ;;  %313 = vst [vmem:[#allocation2 + $0x2] sm:$0xff] %v305_v54  ;;  %314 = vst [vmem:[#allocation2 + $0xa] sm:$0xff] %v306_v55  ;;  %v4562_v1 = vadd.f32 %v301_v59, %v284_v51  ;;  %v303_v6 = vmul.f32 %v296_v45, %v294_v63  ;;  %v373_v19 = vpack.c.bf16 %v306_v55, %v305_v54 }
  0x7e   : > { %3417 = vmatpush3.bf16.msra.mxu1 %v4032_v20  ;;  %316 = vst [vmem:[#allocation2 + $0x1e] sm:$0xff] %v308_v57  ;;  %v4565_v7 = vadd.f32 %v302_v3, %v285_v60  ;;  %v304_v8 = vmul.f32 %v296_v45, %v295_v5  ;;  %v4050_v57 = vld [vmem:[#allocation7 + $0x110] sm:$0xff]  }
  0x7f   : > { %3418 = vmatprep.subr.bf16.mxu1 %v4035_v23  ;;  %317 = vst [vmem:[#allocation2 + $0x2a] sm:$0xff] %v4562_v1  ;;  %v311_v9 = vadd.f32 %v303_v6, %v286_v62 }
  0x80   : > { %3373 = vmatpush3.bf16.msra.mxu0 %v4034_v22  ;;  %318 = vst [vmem:[#allocation2 + $0x32] sm:$0xff] %v4565_v7  ;;  %v312_v10 = vadd.f32 %v304_v8, %v287_v4 }
  0x81   : > { %3374 = vmatprep.subr.bf16.mxu0 %v4037_v25  ;;  %319 = vst [vmem:[#allocation2 + $0x3e] sm:$0xff] %v311_v9 }
  0x82   : > { %3419 = vmatpush3.bf16.msra.mxu1 %v4036_v24  ;;  %320 = vst [vmem:[#allocation2 + $0x46] sm:$0xff] %v312_v10  ;;  %v4052_v10 = vld [vmem:[#allocation7 + $0x100] sm:$0xff]  }
  0x83   : > { %3420 = vmatprep.subr.bf16.mxu1 %v4039_v27  ;;  %v353_v25 = vld [vmem:[#allocation2 + $0x13] sm:$0xff] }
  0x84   : > { %3375 = vmatpush3.bf16.msra.mxu0 %v4038_v26  ;;  %v331_v12 = vld [vmem:[#allocation2 + $0x1] sm:$0xff]  ;;  %v332_v13 = vld [vmem:[#allocation2 + $0x9] sm:$0xff]  ;;  %v333_v22 = vld [vmem:[#allocation2 + $0x11] sm:$0xff] }
  0x85   : > { %3376 = vmatprep.subr.bf16.mxu0 %v4041_v29  ;;  %v321_v14 = vld [vmem:[#allocation2] sm:$0xff]  ;;  %v372_v15 = vpack.c.bf16 %v332_v13, %v331_v12  ;;  %v322_v16 = vld [vmem:[#allocation2 + $0x8] sm:$0xff]  ;;  %v323_v29 = vld [vmem:[#allocation2 + $0x10] sm:$0xff] }
  0x86   : > { %3421 = vmatpush3.bf16.msra.mxu1 %v4040_v28  ;;  %v351_v17 = vld [vmem:[#allocation2 + $0x3] sm:$0xff]  ;;  %v352_v18 = vld [vmem:[#allocation2 + $0xb] sm:$0xff]  ;;  %v371_v20 = vpack.c.bf16 %v322_v16, %v321_v14  ;;  %v334_v23 = vld [vmem:[#allocation2 + $0x19] sm:$0xff] }
  0x87   : > { %3422 = vmatprep.subr.bf16.mxu1 %v4043_v31  ;;  %v374_v21 = vpack.c.bf16 %v352_v18, %v351_v17  ;;  %755 = vmatprep.mubr.bf16.mxu0 %v372_v15  ;;  %v377_v24 = vpack.c.bf16 %v334_v23, %v333_v22  ;;  %v354_v26 = vld [vmem:[#allocation2 + $0x1b] sm:$0xff]  ;;  %v343_v31 = vld [vmem:[#allocation2 + $0x12] sm:$0xff]  ;;  %v355_v36 = vld [vmem:[#allocation2 + $0x23] sm:$0xff] }
  0x88   : > { %3377 = vmatpush3.bf16.msra.mxu0 %v4042_v30  ;;  %v379_v27 = vpack.c.bf16 %v354_v26, %v353_v25  ;;  %v4046_v28 = vld [vmem:[#allocation7 + $0x130] sm:$0xff]   ;;  %v324_v30 = vld [vmem:[#allocation2 + $0x18] sm:$0xff]  ;;  %v356_v37 = vld [vmem:[#allocation2 + $0x2b] sm:$0xff] }
  0x89   : > { %3782 = vmatprep.subr.bf16.mxu0 %v4360_v2  ;;  %828 = vmatprep.mubr.bf16.mxu1 %v374_v21  ;;  %v344_v32 = vld [vmem:[#allocation2 + $0x1a] sm:$0xff]  ;;  %v376_v35 = vpack.c.bf16 %v324_v30, %v323_v29  ;;  %v384_v41 = vpack.c.bf16 %v356_v37, %v355_v36  ;;  %v326_v44 = vld [vmem:[#allocation2 + $0x28] sm:$0xff]  ;;  %v337_v46 = vld [vmem:[#allocation2 + $0x31] sm:$0xff] }
  0x8a   : > { %3423 = vmatpush3.bf16.msra.mxu1 %v4044_v34  ;;  %v335_v33 = vld [vmem:[#allocation2 + $0x21] sm:$0xff]  ;;  %v336_v34 = vld [vmem:[#allocation2 + $0x29] sm:$0xff]  ;;  %v378_v38 = vpack.c.bf16 %v344_v32, %v343_v31  ;;  %v338_v47 = vld [vmem:[#allocation2 + $0x39] sm:$0xff] }
  0x8b   : > { %756 = vmatmul.mubr.bf16.vlgmr.msra.gmra.mxu0 %v371_v20  ;;  %v382_v40 = vpack.c.bf16 %v336_v34, %v335_v33  ;;  %v325_v43 = vld [vmem:[#allocation2 + $0x20] sm:$0xff]  ;;  %v357_v48 = vld [vmem:[#allocation2 + $0x33] sm:$0xff]  ;;  %v387_v53 = vpack.c.bf16 %v338_v47, %v337_v46  ;;  %v340_v60 = vld [vmem:[#allocation2 + $0x49] sm:$0xf] }
  0x8c   : > { %3783 = vmatpush3.bf16.msra.mxu0 %v4045_v11  ;;  %763 = vmatprep.mubr.bf16.mxu0 %v377_v24  ;;  %v345_v45 = vld [vmem:[#allocation2 + $0x22] sm:$0xff]  ;;  %v381_v51 = vpack.c.bf16 %v326_v44, %v325_v43  ;;  %v327_v55 = vld [vmem:[#allocation2 + $0x30] sm:$0xff]  ;;  %v328_v56 = vld [vmem:[#allocation2 + $0x38] sm:$0xff] }
  0x8d   : > { %829 = vmatmul.mubr.bf16.vlgmr.msra.gmra.mxu1 %v373_v19  ;;  %3784 = vmatprep.subr.bf16.mxu0 %v4360_v2  ;;  %v358_v50 = vld [vmem:[#allocation2 + $0x3b] sm:$0xff]  ;;  %v383_v52 = vpack.c.bf16 %v4562_v1, %v345_v45  ;;  %v359_v61 = vld [vmem:[#allocation2 + $0x43] sm:$0xff]  ;;  %v360_v62 = vld [vmem:[#allocation2 + $0x4b] sm:$0xf]  ;;  %v386_v63 = vpack.c.bf16 %v328_v56, %v327_v55 }
  0x8e   : > { %836 = vmatprep.mubr.bf16.mxu1 %v379_v27  ;;  %v389_v54 = vpack.c.bf16 %v358_v50, %v357_v48  ;;  %v348_v58 = vld [vmem:[#allocation2 + $0x3a] sm:$0xff]  ;;  %v394_v4 = vpack.c.bf16 %v360_v62, %v359_v61  ;;  %v330_v6 = vld [vmem:[#allocation2 + $0x48] sm:$0xf]  ;;  %v362_v13 = vld [vmem:[#allocation2 + $0xc] sm:$0xff] }
  0x8f   : > { %v339_v59 = vld [vmem:[#allocation2 + $0x41] sm:$0xff]  ;;  %v388_v1 = vpack.c.bf16 %v348_v58, %v4565_v7  ;;  %v350_v9 = vld [vmem:[#allocation2 + $0x4a] sm:$0xf]  ;;  %v363_v15 = vld [vmem:[#allocation2 + $0x14] sm:$0xff] }
  0x90   : > { %3785 = vmatpush3.bf16.msra.mxu0 %v4046_v28  ;;  %v392_v3 = vpack.c.bf16 %v340_v60, %v339_v59  ;;  %v329_v5 = vld [vmem:[#allocation2 + $0x40] sm:$0xff]  ;;  %v366_v19 = vld [vmem:[#allocation2 + $0x2c] sm:$0xff]  ;;  %v367_v21 = vld [vmem:[#allocation2 + $0x34] sm:$0xff] }
  0x91   : > { %3786 = vmatprep.subr.bf16.mxu0 %v4360_v2  ;;  %v349_v8 = vld [vmem:[#allocation2 + $0x42] sm:$0xff]  ;;  %v391_v11 = vpack.c.bf16 %v330_v6, %v329_v5  ;;  %v370_v25 = vld [vmem:[#allocation2 + $0x4c] sm:$0xf]  ;;  %v4062_v36 = vld [vmem:[#allocation7 + $0x228] sm:$0xff]  }
  0x92   : > { %v393_v12 = vpack.c.bf16 %v350_v9, %v349_v8  ;;  %v361_v7 = vld [vmem:[#allocation2 + $0x4] sm:$0xff]  ;;  %v364_v16 = vld [vmem:[#allocation2 + $0x1c] sm:$0xff]  ;;  %v4081_v55 = vld [vmem:[#allocation7 + $0x180] sm:$0xff]  }
  0x93   : > { %764 = vmatmul.mubr.bf16.gmra.mxu0 %v376_v35  ;;  %v375_v14 = vpack.c.bf16 %v362_v13, %v361_v7  ;;  %v380_v17 = vpack.c.bf16 %v364_v16, %v363_v15  ;;  %v365_v18 = vld [vmem:[#allocation2 + $0x24] sm:$0xff]  ;;  %v368_v22 = vld [vmem:[#allocation2 + $0x3c] sm:$0xff]  ;;  %v4082_v56 = vld [vmem:[#allocation7 + $0x200] sm:$0xff]  }
  0x94   : > { %3787 = vmatpush3.bf16.msra.mxu0 %v4047_v39  ;;  %771 = vmatprep.mubr.bf16.mxu0 %v382_v40  ;;  %v385_v20 = vpack.c.bf16 %v366_v19, %v365_v18  ;;  %v390_v23 = vpack.c.bf16 %v368_v22, %v367_v21  ;;  %v369_v24 = vld [vmem:[#allocation2 + $0x44] sm:$0xff]  ;;  %v4061_v35 = vld [vmem:[#allocation7 + $0x1a8] sm:$0xff]   ;;  %v4065_v39 = vld [vmem:[#allocation7 + $0x1a0] sm:$0xff]  }
  0x95   : > { %837 = vmatmul.mubr.bf16.gmra.mxu1 %v378_v38  ;;  %3788 = vmatprep.subr.bf16.mxu0 %v4360_v2  ;;  %v395_v26 = vpack.c.bf16 %v370_v25, %v369_v24  ;;  %v4053_v27 = vld [vmem:[#allocation7 + $0x1b8] sm:$0xff]   ;;  %v4057_v31 = vld [vmem:[#allocation7 + $0x1b0] sm:$0xff]   ;;  %v4063_v37 = vld [vmem:[#allocation7 + $0x168] sm:$0xff]  }
  0x96   : > { %844 = vmatprep.mubr.bf16.mxu1 %v384_v41  ;;  %v4055_v28 = vld [vmem:[#allocation7 + $0x238] sm:$0xff]   ;;  %3467 = vmatprep.subr.bf16.mxu1 %v4053_v27  ;;  %v4058_v32 = vld [vmem:[#allocation7 + $0x230] sm:$0xff]   ;;  %v4064_v38 = vld [vmem:[#allocation7 + $0x1e8] sm:$0xff]  }
  0x97   : > { %v4054_v29 = vld [vmem:[#allocation7 + $0x178] sm:$0xff]   ;;  %v4059_v33 = vld [vmem:[#allocation7 + $0x170] sm:$0xff]   ;;  %v4066_v40 = vld [vmem:[#allocation7 + $0x220] sm:$0xff]  }
  0x98   : > { %3789 = vmatpush3.bf16.msra.mxu0 %v4048_v42  ;;  %v4056_v30 = vld [vmem:[#allocation7 + $0x1f8] sm:$0xff]   ;;  %3468 = vmatpush3.bf16.msra.mxu1 %v4054_v29  ;;  %v4060_v34 = vld [vmem:[#allocation7 + $0x1f0] sm:$0xff]   ;;  %v4067_v41 = vld [vmem:[#allocation7 + $0x160] sm:$0xff]  }
  0x99   : > { %3790 = vmatprep.subr.bf16.mxu0 %v4360_v2  ;;  %3469 = vmatprep.subr.bf16.mxu1 %v4057_v31  ;;  %v4068_v42 = vld [vmem:[#allocation7 + $0x1e0] sm:$0xff]   ;;  %v4069_v43 = vld [vmem:[#allocation7 + $0x198] sm:$0xff]   ;;  %v4073_v47 = vld [vmem:[#allocation7 + $0x190] sm:$0xff]  }
  0x9a   : > { %v4070_v44 = vld [vmem:[#allocation7 + $0x218] sm:$0xff]   ;;  %v4074_v48 = vld [vmem:[#allocation7 + $0x210] sm:$0xff]   ;;  %v4084_v58 = vld [vmem:[#allocation7 + $0x1c0] sm:$0xff]  }
  0x9b   : > { %772 = vmatmul.mubr.bf16.gmra.mxu0 %v381_v51  ;;  %v4071_v45 = vld [vmem:[#allocation7 + $0x158] sm:$0xff]   ;;  %v4076_v50 = vld [vmem:[#allocation7 + $0x1d0] sm:$0xff]   ;;  %v4077_v51 = vld [vmem:[#allocation7 + $0x188] sm:$0xff]  }
  0x9c   : > { %3791 = vmatpush3.bf16.msra.mxu0 %v4049_v49  ;;  %779 = vmatprep.mubr.bf16.mxu0 %v387_v53  ;;  %v4072_v46 = vld [vmem:[#allocation7 + $0x1d8] sm:$0xff]   ;;  %v4075_v49 = vld [vmem:[#allocation7 + $0x150] sm:$0xff]   ;;  %v4079_v53 = vld [vmem:[#allocation7 + $0x148] sm:$0xff]  }
  0x9d   : > { %845 = vmatmul.mubr.bf16.gmra.mxu1 %v383_v52  ;;  %3792 = vmatprep.subr.bf16.mxu0 %v4360_v2  ;;  %v4078_v52 = vld [vmem:[#allocation7 + $0x208] sm:$0xff]   ;;  %v4596_v24 = vld [vmem:[#allocation9] ss:$0 sm:$0xff] }
  0x9e   : > { %852 = vmatprep.mubr.bf16.mxu1 %v389_v54  ;;  %3470 = vmatpush3.bf16.msra.mxu1 %v4059_v33  ;;  %v4080_v54 = vld [vmem:[#allocation7 + $0x1c8] sm:$0xff]  }
  0x9f   : > { %3471 = vmatprep.subr.bf16.mxu1 %v4061_v35 }
  0xa0   : > { %3793 = vmatpush3.bf16.msra.mxu0 %v4050_v57  ;;  %v4083_v57 = vld [vmem:[#allocation7 + $0x140] sm:$0xff]  }
  0xa1   : > { %3794 = vmatprep.subr.bf16.mxu0 %v4360_v2 }
  0xa2   : > { %3472 = vmatpush3.bf16.msra.mxu1 %v4063_v37 }
  0xa3   : > { %780 = vmatmul.mubr.bf16.gmra.mxu0 %v386_v63  ;;  %3473 = vmatprep.subr.bf16.mxu1 %v4065_v39 }
  0xa4   : > { %787 = vmatprep.mubr.bf16.mxu0 %v392_v3  ;;  %3795 = vmatpush3.bf16.msra.mxu0 %v4051_v0 }
  0xa5   : > { %853 = vmatmul.mubr.bf16.gmra.mxu1 %v388_v1  ;;  %3796 = vmatprep.subr.bf16.mxu0 %v4360_v2 }
  0xa6   : > { %860 = vmatprep.mubr.bf16.mxu1 %v394_v4  ;;  %3474 = vmatpush3.bf16.msra.mxu1 %v4067_v41 }
  0xa7   : > { %3475 = vmatprep.subr.bf16.mxu1 %v4069_v43  ;;  %v4173_v43 = vld [vmem:[%s4531_s29] sm:$0xff] }
  0xa8   : > { %3797 = vmatpush3.bf16.msra.mxu0 %v4052_v10 }
  0xa9   : > { %3513 = vmatprep.subr.bf16.mxu0 %v4055_v28 }
  0xaa   : > { %3476 = vmatpush3.bf16.msra.mxu1 %v4071_v45 }
  0xab   : > { %788 = vmatmul.mubr.bf16.gmra.mxu0 %v391_v11  ;;  %3477 = vmatprep.subr.bf16.mxu1 %v4073_v47 }
  0xac   : > { %3798 = vmatprep.mubr.msk.bf16.mxu0 %vm4361_vm0, %v4360_v2 }
  0xad   : > { %861 = vmatmul.mubr.bf16.gmra.mxu1 %v393_v12 }
  0xae   : > { %3478 = vmatpush3.bf16.msra.mxu1 %v4075_v49 }
  0xaf   : > { %3479 = vmatprep.subr.bf16.mxu1 %v4077_v51 }
  0xb2   : > { %3480 = vmatpush3.bf16.msra.mxu1 %v4079_v53 }
  0xb3   : > { %3799 = vmatmul.mubr.bf16.vlgmr.msra.gmra.mxu0 %v375_v14  ;;  %3481 = vmatprep.subr.bf16.mxu1 %v4081_v55 }
  0xb4   : > { %3802 = vmatprep.mubr.msk.bf16.mxu0 %vm4361_vm0, %v4360_v2  ;;  %3514 = vmatpush3.bf16.msra.mxu0 %v4056_v30 }
  0xb5   : > { %3515 = vmatprep.subr.bf16.mxu0 %v4058_v32 }
  0xb6   : > { %3482 = vmatpush3.bf16.msra.mxu1 %v4083_v57 }
  0xb7   : > { %3818 = vmatprep.subr.bf16.mxu1 %v4360_v2 }
  0xb8   : > { %3516 = vmatpush3.bf16.msra.mxu0 %v4060_v34 }
  0xb9   : > { %3517 = vmatprep.subr.bf16.mxu0 %v4062_v36 }
  0xbb   : > { %3803 = vmatmul.mubr.bf16.gmra.mxu0 %v380_v17 }
  0xbc   : > { %3806 = vmatprep.mubr.msk.bf16.mxu0 %vm4361_vm0, %v4360_v2  ;;  %3518 = vmatpush3.bf16.msra.mxu0 %v4064_v38 }
  0xbd   : > { %3519 = vmatprep.subr.bf16.mxu0 %v4066_v40 }
  0xc0   : > { %3520 = vmatpush3.bf16.msra.mxu0 %v4068_v42 }
  0xc1   : > { %3521 = vmatprep.subr.bf16.mxu0 %v4070_v44 }
  0xc3   : > { %3807 = vmatmul.mubr.bf16.gmra.mxu0 %v385_v20 }
  0xc4   : > { %3810 = vmatprep.mubr.msk.bf16.mxu0 %vm4361_vm0, %v4360_v2  ;;  %3522 = vmatpush3.bf16.msra.mxu0 %v4072_v46  ;;  %v4611_v46 = vstv %s3226_s23 }
  0xc5   : > { %3523 = vmatprep.subr.bf16.mxu0 %v4074_v48 }
  0xc8   : > { %3524 = vmatpush3.bf16.msra.mxu0 %v4076_v50 }
  0xc9   : > { %3525 = vmatprep.subr.bf16.mxu0 %v4078_v52 }
  0xcb   : > { %3811 = vmatmul.mubr.bf16.gmra.mxu0 %v390_v23 }
  0xcc   : > { %3814 = vmatprep.mubr.msk.bf16.mxu0 %vm4361_vm0, %v4360_v2  ;;  %3526 = vmatpush3.bf16.msra.mxu0 %v4080_v54 }
  0xcd   : > { %3527 = vmatprep.subr.bf16.mxu0 %v4082_v56 }
  0xd0   : > { %3528 = vmatpush3.bf16.msra.mxu0 %v4084_v58 }
  0xd3   : > { %3815 = vmatmul.mubr.bf16.gmra.mxu0 %v395_v26 }
 0x14b   : > { %v3378_v59 = vpop.f32.mrf.mxu0 }
 0x14d   : > { %v3424_v60 = vpop.f32.mrf.mxu1  ;;  %v3379_v61 = vpop.f32.mrf.mxu0 }
 0x14e   : > { %v3380_v22 = vadd.f32 %v3379_v61, %v3378_v59  ;;  %v4174_v59 = vld [vmem:[%s4531_s29 + $0x8] sm:$0xff] }
 0x14f   : > { %v3425_v62 = vpop.f32.mrf.mxu1  ;;  %v3381_v63 = vpop.f32.mrf.mxu0 }
 0x150   : > { %v758_v27 = vadd.f32 %v3380_v22, %v4596_v24  ;;  %v3426_v28 = vadd.f32 %v3425_v62, %v3424_v60 }
 0x151   : > { %v3427_v0 = vpop.f32.mrf.mxu1  ;;  %v3382_v1 = vpop.f32.mrf.mxu0 }
 0x152   : > { %v3383_v29 = vadd.f32 %v3382_v1, %v3381_v63  ;;  %v831_v36 = vadd.f32 %v3426_v28, %v758_v27 }
 0x153   : > { %v3428_v3 = vpop.f32.mrf.mxu1  ;;  %v3384_v4 = vpop.f32.mrf.mxu0 }
 0x154   : > { %v761_v33 = vadd.f32 %v3383_v29, %v4596_v24  ;;  %v3429_v34 = vadd.f32 %v3428_v3, %v3427_v0 }
 0x155   : > { %v3430_v5 = vpop.f32.mrf.mxu1  ;;  %v3385_v6 = vpop.f32.mrf.mxu0 }
 0x156   : > { %v3386_v38 = vadd.f32 %v3385_v6, %v3384_v4  ;;  %v834_v45 = vadd.f32 %v3429_v34, %v761_v33 }
 0x157   : > { %v3431_v8 = vpop.f32.mrf.mxu1  ;;  %v3387_v9 = vpop.f32.mrf.mxu0 }
 0x158   : > { %v766_v48 = vadd.f32 %v3386_v38, %v4596_v24  ;;  %v3432_v49 = vadd.f32 %v3431_v8, %v3430_v5 }
 0x159   : > { %v3388_v10 = vpop.f32.mrf.mxu0  ;;  %v3433_v11 = vpop.f32.mrf.mxu1 }
 0x15a   : > { %v3389_v40 = vadd.f32 %v3388_v10, %v3387_v9  ;;  %v839_v0 = vadd.f32 %v3432_v49, %v766_v48 }
 0x15b   : > { %v3390_v12 = vpop.f32.mrf.mxu0  ;;  %v3434_v13 = vpop.f32.mrf.mxu1 }
 0x15c   : > { %v769_v52 = vadd.f32 %v3389_v40, %v4596_v24  ;;  %v3435_v53 = vadd.f32 %v3434_v13, %v3433_v11 }
 0x15d   : > { %v3391_v7 = vpop.f32.mrf.mxu0  ;;  %v3436_v16 = vpop.f32.mrf.mxu1 }
 0x15e   : > { %v3392_v54 = vadd.f32 %v3391_v7, %v3390_v12  ;;  %v842_v5 = vadd.f32 %v3435_v53, %v769_v52 }
 0x15f   : > { %v3393_v14 = vpop.f32.mrf.mxu0  ;;  %v3437_v19 = vpop.f32.mrf.mxu1 }
 0x160   : > { %v774_v1 = vadd.f32 %v3392_v54, %v4596_v24  ;;  %v3438_v3 = vadd.f32 %v3437_v19, %v3436_v16 }
 0x161   : > { %v3394_v15 = vpop.f32.mrf.mxu0  ;;  %v3439_v23 = vpop.f32.mrf.mxu1 }
 0x162   : > { %v3395_v6 = vadd.f32 %v3394_v15, %v3393_v14  ;;  %v847_v16 = vadd.f32 %v3438_v3, %v774_v1 }
 0x163   : > { %v4588_v17 = vpop.f32.mrf.mxu0  ;;  %v3440_v30 = vpop.f32.mrf.mxu1 }
 0x164   : > { %v3441_v22 = vadd.f32 %v3440_v30, %v3439_v23  ;;  %v777_v19 = vadd.f32 %v3395_v6, %v4596_v24 }
 0x165   : > { %v4590_v18 = vpop.f32.mrf.mxu0  ;;  %v3442_v35 = vpop.f32.mrf.mxu1 }
 0x166   : > { %v3398_v14 = vadd.f32 %v4590_v18, %v4588_v17  ;;  %v850_v17 = vadd.f32 %v3441_v22, %v777_v19 }
 0x167   : > { %v4592_v20 = vpop.f32.mrf.mxu0  ;;  %v3443_v42 = vpop.f32.mrf.mxu1 }
 0x168   : > { %v782_v30 = vadd.f32 %v3398_v14, %v4596_v24  ;;  %v4178_v14 = vld [vmem:[%s4531_s29 + $0x28] sm:$0xff] }
 0x169   : > { %v4594_v21 = vpop.f32.mrf.mxu0  ;;  %v4616_v56 = vpop.f32.mrf.mxu1 }
 0x16b   : > { %v4598_v25 = vpop.f32.mrf.mxu0  ;;  %v3446_v8 = vpop.f32.mrf.mxu1 }
 0x16d   : > { %v4600_v26 = vpop.f32.mrf.mxu0  ;;  %v3448_v15 = vpop.f32.mrf.mxu1 }
 0x16f   : > { %v4603_v31 = vpop.f32.mrf.mxu0  ;;  %v3449_v40 = vpop.f32.mrf.mxu1 }
 0x170   : > { %v3450_v22 = vadd.f32 %v3449_v40, %v3448_v15  ;;  %v4086_v15 = vld [vmem:[#allocation7 + $0x270] sm:$0xff]  }
 0x171   : > { %v4605_v32 = vpop.f32.mrf.mxu0 }
 0x173   : > { %v903_v37 = vpop.f32.mrf.mxu0 }
 0x174   : > { %v904_v39 = vadd.f32 %v903_v37, %v831_v36  ;;  %v4175_v37 = vld [vmem:[%s4531_s29 + $0x10] sm:$0xff] }
 0x175   : > { %v3800_v41 = vpop.f32.mrf.mxu0 }
 0x176   : > { %v4609_v44 = vmax.f32 %v4173_v43, %v904_v39  ;;  %v3444_v39 = vadd.f32 %v3443_v42, %v3442_v35  ;;  %v4176_v42 = vld [vmem:[%s4531_s29 + $0x18] sm:$0xff] }
 0x177   : > { %v906_v47 = vpop.f32.mrf.mxu0 }
 0x178   : > { %v980_v50 = vmin.f32 %v4609_v44, 0.0  ;;  %v907_v51 = vadd.f32 %v906_v47, %v834_v45  ;;  %v972_v57 = vmax.f32 %v4609_v44, 0.0  ;;  %v3401_v45 = vadd.f32 %v4594_v21, %v4592_v20  ;;  %v4177_v20 = vld [vmem:[%s4531_s29 + $0x20] sm:$0xff] }
 0x179   : > { %v3801_v55 = vpop.f32.mrf.mxu0 }
 0x17a   : > { %v989_v58 = vmul.f32 %v4611_v46, %v980_v50  ;;  %v4621_v60 = vmax.f32 %v4174_v59, %v907_v51  ;;  %v3404_v50 = vadd.f32 %v4600_v26, %v4598_v25  ;;  %v855_v59 = vadd.f32 %v3444_v39, %v782_v30  ;;  %v4085_v26 = vld [vmem:[#allocation7 + $0x278] sm:$0xff]  }
 0x17b   : > { %v911_v61 = vpop.f32.mrf.mxu0 }
 0x17c   : > { %v4623_v62 = vadd.f32 %v989_v58, %v972_v57  ;;  %v981_v63 = vmin.f32 %v4621_v60, 0.0  ;;  %v973_v9 = vmax.f32 %v4621_v60, 0.0  ;;  %v912_v11 = vadd.f32 %v911_v61, %v839_v0  ;;  %v3451_v58 = vpop.f32.mrf.mxu1 }
 0x17d   : > { %v3804_v4 = vpop.f32.mrf.mxu0 }
 0x17e   : > { %1005 = vst [vmem:[#allocation2 + $0x2] sm:$0xff] %v4623_v62  ;;  %v990_v10 = vmul.f32 %v4611_v46, %v981_v63  ;;  %v946_v28 = vrot.slane %v912_v11, 4 }
 0x17f   : > { %v914_v12 = vpop.f32.mrf.mxu0 }
 0x180   : > { %v4630_v7 = vadd.f32 %v990_v10, %v973_v9  ;;  %v915_v13 = vadd.f32 %v914_v12, %v842_v5  ;;  %v785_v9 = vadd.f32 %v3401_v45, %v4596_v24  ;;  %v3447_v10 = vadd.f32 %v3446_v8, %v4616_v56 }
 0x181   : > { %v3805_v27 = vpop.f32.mrf.mxu0  ;;  %v3407_v56 = vadd.f32 %v4605_v32, %v4603_v31 }
 0x182   : > { %1006 = vst [vmem:[#allocation2 + $0xa] sm:$0xff] %v4630_v7  ;;  %v947_v29 = vrot.slane %v915_v13, 4  ;;  %v1065_v6 = vpack.c.bf16 %v4630_v7, %v4623_v62  ;;  %v790_v13 = vadd.f32 %v3404_v50, %v4596_v24  ;;  %v3452_v62 = vpop.f32.mrf.mxu1 }
 0x183   : > { %v919_v33 = vpop.f32.mrf.mxu0  ;;  %v3453_v31 = vadd.f32 %v3452_v62, %v3451_v58  ;;  %v793_v30 = vadd.f32 %v3407_v56, %v4596_v24 }
 0x184   : > { %v948_v34 = vsel %vm945_vm1, %v946_v28, %v947_v29  ;;  %v920_v36 = vadd.f32 %v919_v33, %v847_v16 }
 0x185   : > { %v4638_v38 = vmax.f32 %v4175_v37, %v948_v34  ;;  %v3808_v23 = vpop.f32.mrf.mxu0  ;;  %v1023_v49 = vld [vmem:[#allocation2 + $0x1] sm:$0xff]  ;;  %v858_v37 = vadd.f32 %v3447_v10, %v785_v9 }
 0x186   : > { %v949_v41 = vrot.slane %v920_v36, 4  ;;  %v1013_v0 = vld [vmem:[#allocation2] sm:$0xff]  ;;  %v863_v23 = vadd.f32 %v3450_v22, %v790_v13 }
 0x187   : > { %v982_v18 = vmin.f32 %v4638_v38, 0.0  ;;  %v922_v43 = vpop.f32.mrf.mxu0  ;;  %v974_v51 = vmax.f32 %v4638_v38, 0.0 }
 0x188   : > { %v950_v47 = vsel %vm945_vm1, %v947_v29, %v949_v41  ;;  %v923_v48 = vadd.f32 %v922_v43, %v850_v17  ;;  %v4087_v17 = vld [vmem:[#allocation7 + $0x268] sm:$0xff]  }
 0x189   : > { %v991_v35 = vmul.f32 %v4611_v46, %v982_v18  ;;  %v4650_v52 = vmax.f32 %v4176_v42, %v950_v47  ;;  %v3809_v53 = vpop.f32.mrf.mxu0  ;;  %v1024_v54 = vld [vmem:[#allocation2 + $0x9] sm:$0xff] }
 0x18a   : > { %v1043_v55 = vld [vmem:[#allocation2 + $0x3] sm:$0xff]  ;;  %v1044_v57 = vld [vmem:[#allocation2 + $0xb] sm:$0xff]  ;;  %v4653_v21 = vmax.f32 %v4177_v20, %v923_v48  ;;  %v1064_v61 = vpack.c.bf16 %v1024_v54, %v1023_v49  ;;  %v866_v49 = vadd.f32 %v3453_v31, %v793_v30  ;;  %v4091_v30 = vld [vmem:[#allocation7 + $0x248] sm:$0xff]  }
 0x18b   : > { %v1066_v63 = vpack.c.bf16 %v1044_v57, %v1043_v55  ;;  %v1014_v25 = vld [vmem:[#allocation2 + $0x8] sm:$0xff]  ;;  %v999_v1 = vadd.f32 %v991_v35, %v974_v51  ;;  %v983_v3 = vmin.f32 %v4650_v52, 0.0  ;;  %v927_v4 = vpop.f32.mrf.mxu0  ;;  %v975_v27 = vmax.f32 %v4650_v52, 0.0  ;;  %v4088_v51 = vld [vmem:[#allocation7 + $0x260] sm:$0xff]  }
 0x18c   : > { %v1063_v5 = vpack.c.bf16 %v1014_v25, %v1013_v0  ;;  %v984_v11 = vmin.f32 %v4653_v21, 0.0  ;;  %v928_v12 = vadd.f32 %v927_v4, %v855_v59  ;;  %1449 = vmatprep.mubr.bf16.mxu1 %v1064_v61  ;;  %v976_v8 = vmax.f32 %v4653_v21, 0.0  ;;  %v4179_v61 = vld [vmem:[%s4531_s29 + $0x30] sm:$0xff] }
 0x18d   : > { %1522 = vmatprep.mubr.bf16.mxu0 %v1066_v63  ;;  %1007 = vst [vmem:[#allocation2 + $0x16] sm:$0xff] %v999_v1  ;;  %v992_v16 = vmul.f32 %v4611_v46, %v983_v3  ;;  %v3812_v19 = vpop.f32.mrf.mxu0 }
 0x18e   : > { %1450 = vmatmul.mubr.bf16.vlgmr.msra.gmra.mxu1 %v1063_v5  ;;  %1523 = vmatmul.mubr.bf16.vlgmr.msra.gmra.mxu0 %v1065_v6  ;;  %v993_v7 = vmul.f32 %v4611_v46, %v984_v11  ;;  %v4669_v28 = vmax.f32 %v4178_v14, %v928_v12  ;;  %v4089_v11 = vld [vmem:[#allocation7 + $0x258] sm:$0xff]  }
 0x18f   : > { %3819 = vmatpush3.bf16.msra.mxu1 %v4085_v26  ;;  %v1000_v29 = vadd.f32 %v992_v16, %v975_v27  ;;  %v930_v33 = vpop.f32.mrf.mxu0  ;;  %v4180_v16 = vld [vmem:[%s4531_s29 + $0x38] sm:$0xff] }
 0x190   : > { %3820 = vmatprep.subr.bf16.mxu1 %v4360_v2  ;;  %v4672_v34 = vadd.f32 %v993_v7, %v976_v8  ;;  %v985_v36 = vmin.f32 %v4669_v28, 0.0  ;;  %v977_v39 = vmax.f32 %v4669_v28, 0.0  ;;  %v931_v41 = vadd.f32 %v930_v33, %v858_v37  ;;  %v4090_v7 = vld [vmem:[#allocation7 + $0x250] sm:$0xff]  }
 0x191   : > { %1008 = vst [vmem:[#allocation2 + $0x1e] sm:$0xff] %v1000_v29  ;;  %v3813_v32 = vpop.f32.mrf.mxu0 }
 0x192   : > { %1009 = vst [vmem:[#allocation2 + $0x2a] sm:$0xff] %v4672_v34  ;;  %v994_v40 = vmul.f32 %v4611_v46, %v985_v36  ;;  %v956_v48 = vrot.slane %v931_v41, 4 }
 0x193   : > { %3821 = vmatpush3.bf16.msra.mxu1 %v4086_v15  ;;  %v935_v18 = vpop.f32.mrf.mxu0 }
 0x194   : > { %3822 = vmatprep.subr.bf16.mxu1 %v4360_v2  ;;  %v4680_v43 = vadd.f32 %v994_v40, %v977_v39  ;;  %v936_v45 = vadd.f32 %v935_v18, %v863_v23  ;;  %v1025_v50 = vld [vmem:[#allocation2 + $0x11] sm:$0xff] }
 0x195   : > { %v3816_v47 = vpop.f32.mrf.mxu0  ;;  %v1045_v42 = vld [vmem:[#allocation2 + $0x13] sm:$0xff] }
 0x196   : > { %1010 = vst [vmem:[#allocation2 + $0x32] sm:$0xff] %v4680_v43  ;;  %v957_v24 = vrot.slane %v936_v45, 4  ;;  %v1015_v53 = vld [vmem:[#allocation2 + $0x10] sm:$0xff] }
 0x197   : > { %3823 = vmatpush3.bf16.msra.mxu1 %v4087_v17  ;;  %v938_v35 = vpop.f32.mrf.mxu0  ;;  %v1035_v54 = vld [vmem:[#allocation2 + $0x12] sm:$0xff] }
 0x198   : > { %3824 = vmatprep.subr.bf16.mxu1 %v4360_v2  ;;  %v958_v55 = vsel %vm945_vm1, %v956_v48, %v957_v24  ;;  %v939_v57 = vadd.f32 %v938_v35, %v866_v49  ;;  %v1026_v58 = vld [vmem:[#allocation2 + $0x19] sm:$0xff]  ;;  %v1027_v4 = vld [vmem:[#allocation2 + $0x21] sm:$0xff]  ;;  %v4092_v40 = vld [vmem:[#allocation7 + $0x240] sm:$0xff]  }
 0x199   : > { %v1046_v20 = vld [vmem:[#allocation2 + $0x1b] sm:$0xff]  ;;  %v4686_v63 = vmax.f32 %v4179_v61, %v958_v55  ;;  %v3817_v0 = vpop.f32.mrf.mxu0  ;;  %v1069_v25 = vpack.c.bf16 %v1026_v58, %v1025_v50  ;;  %v1028_v5 = vld [vmem:[#allocation2 + $0x29] sm:$0xff] }
 0x19a   : > { %v1016_v59 = vld [vmem:[#allocation2 + $0x18] sm:$0xff]  ;;  %v1071_v26 = vpack.c.bf16 %v1046_v20, %v1045_v42  ;;  %v959_v6 = vrot.slane %v939_v57, 4  ;;  %v1074_v10 = vpack.c.bf16 %v1028_v5, %v1027_v4  ;;  %v1047_v56 = vld [vmem:[#allocation2 + $0x23] sm:$0xff] }
 0x19b   : > { %v1068_v1 = vpack.c.bf16 %v1016_v59, %v1015_v53  ;;  %v1036_v3 = vld [vmem:[#allocation2 + $0x1a] sm:$0xff]  ;;  %3825 = vmatpush3.bf16.msra.mxu1 %v4088_v51  ;;  %v986_v12 = vmin.f32 %v4686_v63, 0.0  ;;  %1457 = vmatprep.mubr.bf16.mxu1 %v1069_v25  ;;  %v978_v22 = vmax.f32 %v4686_v63, 0.0  ;;  %v1018_v33 = vld [vmem:[#allocation2 + $0x28] sm:$0xff] }
 0x19c   : > { %v1070_v9 = vpack.c.bf16 %v1036_v3, %v1035_v54  ;;  %1530 = vmatprep.mubr.bf16.mxu0 %v1071_v26  ;;  %v960_v13 = vsel %vm945_vm1, %v957_v24, %v959_v6  ;;  %3826 = vmatprep.subr.bf16.mxu1 %v4360_v2  ;;  %v1017_v29 = vld [vmem:[#allocation2 + $0x20] sm:$0xff]  ;;  %v1054_v25 = vld [vmem:[#allocation2 + $0xc] sm:$0xff]  ;;  %v1055_v3 = vld [vmem:[#allocation2 + $0x14] sm:$0xff] }
 0x19d   : > { %1458 = vmatmul.mubr.bf16.gmra.mxu1 %v1068_v1  ;;  %v995_v27 = vmul.f32 %v4611_v46, %v986_v12  ;;  %v4693_v19 = vmax.f32 %v4180_v16, %v960_v13  ;;  %v1048_v62 = vld [vmem:[#allocation2 + $0x2b] sm:$0xff]  ;;  %v1037_v36 = vld [vmem:[#allocation2 + $0x22] sm:$0xff]  ;;  %v1073_v32 = vpack.c.bf16 %v1018_v33, %v1017_v29  ;;  %v1049_v17 = vld [vmem:[#allocation2 + $0x33] sm:$0xff] }
 0x19e   : > { %1531 = vmatmul.mubr.bf16.gmra.mxu0 %v1070_v9  ;;  %1465 = vmatprep.mubr.bf16.mxu1 %v1074_v10  ;;  %v1076_v8 = vpack.c.bf16 %v1048_v62, %v1047_v56  ;;  %v1075_v23 = vpack.c.bf16 %v4672_v34, %v1037_v36  ;;  %v1029_v41 = vld [vmem:[#allocation2 + $0x31] sm:$0xff]  ;;  %v1056_v1 = vld [vmem:[#allocation2 + $0x1c] sm:$0xff]  ;;  %v1057_v6 = vld [vmem:[#allocation2 + $0x24] sm:$0xff] }
 0x19f   : > { %3827 = vmatpush3.bf16.msra.mxu1 %v4089_v11  ;;  %v1003_v14 = vadd.f32 %v995_v27, %v978_v22  ;;  %v987_v15 = vmin.f32 %v4693_v19, 0.0  ;;  %v979_v37 = vmax.f32 %v4693_v19, 0.0  ;;  %v1019_v18 = vld [vmem:[#allocation2 + $0x30] sm:$0xff]  ;;  %v1072_v4 = vpack.c.bf16 %v1056_v1, %v1055_v3  ;;  %v4093_v16 = vld [vmem:[#allocation7 + $0x2f8] sm:$0xff]   ;;  %v4100_v29 = vld [vmem:[#allocation7 + $0x330] sm:$0xff]  }
 0x1a0   : > { %3828 = vmatprep.subr.bf16.mxu1 %v4360_v2  ;;  %1538 = vmatprep.mubr.bf16.mxu0 %v1076_v8  ;;  %v1058_v5 = vld [vmem:[#allocation2 + $0x2c] sm:$0xff]  ;;  %v1059_v11 = vld [vmem:[#allocation2 + $0x34] sm:$0xff] }
 0x1a1   : > { %1011 = vst [vmem:[#allocation2 + $0x3e] sm:$0xff] %v1003_v14  ;;  %v996_v31 = vmul.f32 %v4611_v46, %v987_v15  ;;  %v1077_v9 = vpack.c.bf16 %v1058_v5, %v1057_v6  ;;  %3572 = vmatprep.subr.bf16.mxu0 %v4093_v16  ;;  %v4095_v56 = vld [vmem:[#allocation7 + $0x378] sm:$0xff]   ;;  %v4098_v14 = vld [vmem:[#allocation7 + $0x370] sm:$0xff]   ;;  %v4101_v33 = vld [vmem:[#allocation7 + $0x2e8] sm:$0xff]  }
 0x1a2   : > { %v4094_v62 = vld [vmem:[#allocation7 + $0x2b8] sm:$0xff]   ;;  %v4099_v15 = vld [vmem:[#allocation7 + $0x2b0] sm:$0xff]   ;;  %v4102_v36 = vld [vmem:[#allocation7 + $0x368] sm:$0xff]  }
 0x1a3   : > { %3829 = vmatpush3.bf16.msra.mxu1 %v4090_v7  ;;  %v1004_v39 = vadd.f32 %v996_v31, %v979_v37  ;;  %v4096_v8 = vld [vmem:[#allocation7 + $0x338] sm:$0xff]   ;;  %3573 = vmatpush3.bf16.msra.mxu0 %v4094_v62  ;;  %v4097_v7 = vld [vmem:[#allocation7 + $0x2f0] sm:$0xff]   ;;  %v4103_v37 = vld [vmem:[#allocation7 + $0x2a8] sm:$0xff]  }
 0x1a4   : > { %3830 = vmatprep.subr.bf16.mxu1 %v4360_v2  ;;  %3574 = vmatprep.subr.bf16.mxu0 %v4097_v7  ;;  %v4104_v31 = vld [vmem:[#allocation7 + $0x328] sm:$0xff]   ;;  %v4721_v7 = vld [vmem:[#allocation9 + $0x1] ss:$0 sm:$0xff] }
 0x1a5   : > { %1466 = vmatmul.mubr.bf16.gmra.mxu1 %v1073_v32  ;;  %1012 = vst [vmem:[#allocation2 + $0x46] sm:$0xff] %v1004_v39  ;;  %v4105_v32 = vld [vmem:[#allocation7 + $0x2e0] sm:$0xff]  }
 0x1a6   : > { %1539 = vmatmul.mubr.bf16.gmra.mxu0 %v1075_v23  ;;  %v4106_v23 = vld [vmem:[#allocation7 + $0x360] sm:$0xff]  }
 0x1a7   : > { %3831 = vmatpush3.bf16.msra.mxu1 %v4091_v30  ;;  %3575 = vmatpush3.bf16.msra.mxu0 %v4099_v15  ;;  %v4107_v30 = vld [vmem:[#allocation7 + $0x2a0] sm:$0xff]  }
 0x1a8   : > { %3832 = vmatprep.subr.bf16.mxu1 %v4360_v2  ;;  %v1030_v45 = vld [vmem:[#allocation2 + $0x39] sm:$0xff]  ;;  %3576 = vmatprep.subr.bf16.mxu0 %v4101_v33  ;;  %v4108_v39 = vld [vmem:[#allocation7 + $0x320] sm:$0xff]  }
 0x1a9   : > { %v1050_v46 = vld [vmem:[#allocation2 + $0x3b] sm:$0xff]  ;;  %v1079_v48 = vpack.c.bf16 %v1030_v45, %v1029_v41  ;;  %v4110_v41 = vld [vmem:[#allocation7 + $0x358] sm:$0xff]  }
 0x1aa   : > { %v1020_v47 = vld [vmem:[#allocation2 + $0x38] sm:$0xff]  ;;  %v1081_v34 = vpack.c.bf16 %v1050_v46, %v1049_v17  ;;  %v4111_v17 = vld [vmem:[#allocation7 + $0x298] sm:$0xff]   ;;  %v4113_v45 = vld [vmem:[#allocation7 + $0x2d0] sm:$0xff]  }
 0x1ab   : > { %v1078_v24 = vpack.c.bf16 %v1020_v47, %v1019_v18  ;;  %v1040_v49 = vld [vmem:[#allocation2 + $0x3a] sm:$0xff]  ;;  %3833 = vmatpush3.bf16.msra.mxu1 %v4092_v40  ;;  %1473 = vmatprep.mubr.bf16.mxu1 %v1079_v48  ;;  %v4109_v40 = vld [vmem:[#allocation7 + $0x2d8] sm:$0xff]  }
 0x1ac   : > { %v1080_v50 = vpack.c.bf16 %v1040_v49, %v4680_v43  ;;  %1546 = vmatprep.mubr.bf16.mxu0 %v1081_v34  ;;  %v1031_v51 = vld [vmem:[#allocation2 + $0x41] sm:$0xff]  ;;  %v1032_v35 = vld [vmem:[#allocation2 + $0x49] sm:$0xf]  ;;  %3618 = vmatprep.subr.bf16.mxu1 %v4095_v56  ;;  %v4117_v34 = vld [vmem:[#allocation7 + $0x2c8] sm:$0xff]  }
 0x1ad   : > { %1474 = vmatmul.mubr.bf16.gmra.mxu1 %v1078_v24  ;;  %v1051_v42 = vld [vmem:[#allocation2 + $0x43] sm:$0xff]  ;;  %v1084_v53 = vpack.c.bf16 %v1032_v35, %v1031_v51  ;;  %v1052_v54 = vld [vmem:[#allocation2 + $0x4b] sm:$0xf]  ;;  %3577 = vmatpush3.bf16.msra.mxu0 %v4103_v37  ;;  %v4118_v24 = vld [vmem:[#allocation7 + $0x348] sm:$0xff]  }
 0x1ae   : > { %1547 = vmatmul.mubr.bf16.gmra.mxu0 %v1080_v50  ;;  %v1086_v55 = vpack.c.bf16 %v1052_v54, %v1051_v42  ;;  %v1021_v57 = vld [vmem:[#allocation2 + $0x40] sm:$0xff]  ;;  %v1022_v58 = vld [vmem:[#allocation2 + $0x48] sm:$0xf]  ;;  %v1062_v22 = vld [vmem:[#allocation2 + $0x4c] sm:$0xf]  ;;  %3578 = vmatprep.subr.bf16.mxu0 %v4105_v32 }
 0x1af   : > { %1481 = vmatprep.mubr.bf16.mxu1 %v1084_v53  ;;  %v1041_v20 = vld [vmem:[#allocation2 + $0x42] sm:$0xff]  ;;  %v1042_v59 = vld [vmem:[#allocation2 + $0x4a] sm:$0xf]  ;;  %v1083_v61 = vpack.c.bf16 %v1022_v58, %v1021_v57  ;;  %v4119_v49 = vld [vmem:[#allocation7 + $0x288] sm:$0xff]  }
 0x1b0   : > { %1554 = vmatprep.mubr.bf16.mxu0 %v1086_v55  ;;  %v1085_v0 = vpack.c.bf16 %v1042_v59, %v1041_v20  ;;  %v1053_v43 = vld [vmem:[#allocation2 + $0x4] sm:$0xff]  ;;  %v1060_v10 = vld [vmem:[#allocation2 + $0x3c] sm:$0xff]  ;;  %v4121_v51 = vld [vmem:[#allocation7 + $0x2c0] sm:$0xff]  }
 0x1b1   : > { %v1067_v26 = vpack.c.bf16 %v1054_v25, %v1053_v43  ;;  %v1082_v12 = vpack.c.bf16 %v1060_v10, %v1059_v11  ;;  %v1061_v13 = vld [vmem:[#allocation2 + $0x44] sm:$0xff]  ;;  %3579 = vmatpush3.bf16.msra.mxu0 %v4107_v30  ;;  %v4120_v50 = vld [vmem:[#allocation7 + $0x308] sm:$0xff]   ;;  %v4122_v35 = vld [vmem:[#allocation7 + $0x340] sm:$0xff]  }
 0x1b2   : > { %v1087_v27 = vpack.c.bf16 %v1062_v22, %v1061_v13  ;;  %v4112_v18 = vld [vmem:[#allocation7 + $0x318] sm:$0xff]   ;;  %3580 = vmatprep.subr.bf16.mxu0 %v4109_v40  ;;  %v4114_v46 = vld [vmem:[#allocation7 + $0x350] sm:$0xff]   ;;  %v4123_v42 = vld [vmem:[#allocation7 + $0x280] sm:$0xff]  }
 0x1b3   : > { %v4115_v47 = vld [vmem:[#allocation7 + $0x290] sm:$0xff]   ;;  %v4124_v53 = vld [vmem:[#allocation7 + $0x300] sm:$0xff]  }
 0x1b4   : > { %v4116_v48 = vld [vmem:[#allocation7 + $0x310] sm:$0xff]  }
 0x1b5   : > { %1482 = vmatmul.mubr.bf16.gmra.mxu1 %v1083_v61  ;;  %3581 = vmatpush3.bf16.msra.mxu0 %v4111_v17 }
 0x1b6   : > { %1555 = vmatmul.mubr.bf16.gmra.mxu0 %v1085_v0  ;;  %3834 = vmatprep.mubr.msk.bf16.mxu1 %vm4361_vm0, %v4360_v2 }
 0x1b7   : > { %3582 = vmatprep.subr.bf16.mxu0 %v4113_v45 }
 0x1b9   : > { %3583 = vmatpush3.bf16.msra.mxu0 %v4115_v47 }
 0x1ba   : > { %3584 = vmatprep.subr.bf16.mxu0 %v4117_v34 }
 0x1bd   : > { %3835 = vmatmul.mubr.bf16.vlgmr.msra.gmra.mxu1 %v1067_v26  ;;  %3585 = vmatpush3.bf16.msra.mxu0 %v4119_v49 }
 0x1be   : > { %3838 = vmatprep.mubr.msk.bf16.mxu1 %vm4361_vm0, %v4360_v2  ;;  %3619 = vmatpush3.bf16.msra.mxu1 %v4096_v8 }
 0x1bf   : > { %3620 = vmatprep.subr.bf16.mxu1 %v4098_v14  ;;  %3586 = vmatprep.subr.bf16.mxu0 %v4121_v51 }
 0x1c1   : > { %3587 = vmatpush3.bf16.msra.mxu0 %v4123_v42 }
 0x1c2   : > { %3621 = vmatpush3.bf16.msra.mxu1 %v4100_v29  ;;  %3854 = vmatprep.subr.bf16.mxu0 %v4360_v2 }
 0x1c3   : > { %3622 = vmatprep.subr.bf16.mxu1 %v4102_v36 }
 0x1c5   : > { %3839 = vmatmul.mubr.bf16.gmra.mxu1 %v1072_v4 }
 0x1c6   : > { %3842 = vmatprep.mubr.msk.bf16.mxu1 %vm4361_vm0, %v4360_v2  ;;  %3623 = vmatpush3.bf16.msra.mxu1 %v4104_v31 }
 0x1c7   : > { %3624 = vmatprep.subr.bf16.mxu1 %v4106_v23 }
 0x1ca   : > { %3625 = vmatpush3.bf16.msra.mxu1 %v4108_v39 }
 0x1cb   : > { %3626 = vmatprep.subr.bf16.mxu1 %v4110_v41 }
 0x1cd   : > { %3843 = vmatmul.mubr.bf16.gmra.mxu1 %v1077_v9 }
 0x1ce   : > { %3846 = vmatprep.mubr.msk.bf16.mxu1 %vm4361_vm0, %v4360_v2  ;;  %3627 = vmatpush3.bf16.msra.mxu1 %v4112_v18 }
 0x1cf   : > { %3628 = vmatprep.subr.bf16.mxu1 %v4114_v46 }
 0x1d2   : > { %3629 = vmatpush3.bf16.msra.mxu1 %v4116_v48 }
 0x1d3   : > { %3630 = vmatprep.subr.bf16.mxu1 %v4118_v24  ;;  %v4736_v24 = vstv %s3268_s10 }
 0x1d5   : > { %3847 = vmatmul.mubr.bf16.gmra.mxu1 %v1082_v12 }
 0x1d6   : > { %3850 = vmatprep.mubr.msk.bf16.mxu1 %vm4361_vm0, %v4360_v2  ;;  %3631 = vmatpush3.bf16.msra.mxu1 %v4120_v50 }
 0x1d7   : > { %3632 = vmatprep.subr.bf16.mxu1 %v4122_v35 }
 0x1da   : > { %3633 = vmatpush3.bf16.msra.mxu1 %v4124_v53 }
 0x1dd   : > { %3851 = vmatmul.mubr.bf16.gmra.mxu1 %v1087_v27 }
 0x24e   : > { %v3483_v54 = vpop.f32.mrf.mxu1  ;;  %v3529_v55 = vpop.f32.mrf.mxu0 }
 0x250   : > { %v3484_v57 = vpop.f32.mrf.mxu1  ;;  %v3530_v58 = vpop.f32.mrf.mxu0 }
 0x251   : > { %v3485_v8 = vadd.f32 %v3484_v57, %v3483_v54  ;;  %v3531_v31 = vadd.f32 %v3530_v58, %v3529_v55 }
 0x252   : > { %v3486_v20 = vpop.f32.mrf.mxu1  ;;  %v3532_v59 = vpop.f32.mrf.mxu0 }
 0x253   : > { %v1452_v33 = vadd.f32 %v3485_v8, %v4721_v7 }
 0x254   : > { %v3487_v61 = vpop.f32.mrf.mxu1  ;;  %v3533_v0 = vpop.f32.mrf.mxu0 }
 0x255   : > { %v3488_v36 = vadd.f32 %v3487_v61, %v3486_v20  ;;  %v1525_v39 = vadd.f32 %v3531_v31, %v1452_v33  ;;  %v3534_v41 = vadd.f32 %v3533_v0, %v3532_v59 }
 0x257   : > { %v1455_v30 = vadd.f32 %v3488_v36, %v4721_v7 }
 0x259   : > { %v1528_v34 = vadd.f32 %v3534_v41, %v1455_v30 }
 0x25d   : > { %v3489_v43 = vpop.f32.mrf.mxu1 }
 0x25e   : > { %v3535_v25 = vpop.f32.mrf.mxu0 }
 0x25f   : > { %v3490_v26 = vpop.f32.mrf.mxu1 }
 0x260   : > { %v3536_v3 = vpop.f32.mrf.mxu0  ;;  %v3491_v17 = vadd.f32 %v3490_v26, %v3489_v43 }
 0x261   : > { %v3492_v1 = vpop.f32.mrf.mxu1  ;;  %v3537_v57 = vadd.f32 %v3536_v3, %v3535_v25 }
 0x262   : > { %v3538_v6 = vpop.f32.mrf.mxu0  ;;  %v1460_v50 = vadd.f32 %v3491_v17, %v4721_v7 }
 0x263   : > { %v3493_v4 = vpop.f32.mrf.mxu1 }
 0x264   : > { %v3539_v11 = vpop.f32.mrf.mxu0  ;;  %v3494_v45 = vadd.f32 %v3493_v4, %v3492_v1  ;;  %v1533_v26 = vadd.f32 %v3537_v57, %v1460_v50 }
 0x265   : > { %v3495_v5 = vpop.f32.mrf.mxu1  ;;  %v3540_v59 = vadd.f32 %v3539_v11, %v3538_v6 }
 0x266   : > { %v3541_v22 = vpop.f32.mrf.mxu0  ;;  %v1463_v42 = vadd.f32 %v3494_v45, %v4721_v7 }
 0x267   : > { %v3496_v9 = vpop.f32.mrf.mxu1 }
 0x268   : > { %v3542_v56 = vpop.f32.mrf.mxu0  ;;  %v3497_v53 = vadd.f32 %v3496_v9, %v3495_v5  ;;  %v1536_v25 = vadd.f32 %v3540_v59, %v1463_v42 }
 0x269   : > { %v3498_v10 = vpop.f32.mrf.mxu1  ;;  %v3543_v11 = vadd.f32 %v3542_v56, %v3541_v22 }
 0x26a   : > { %v3544_v15 = vpop.f32.mrf.mxu0  ;;  %v1468_v1 = vadd.f32 %v3497_v53, %v4721_v7 }
 0x26b   : > { %v3499_v12 = vpop.f32.mrf.mxu1 }
 0x26c   : > { %v3545_v32 = vpop.f32.mrf.mxu0  ;;  %v3500_v3 = vadd.f32 %v3499_v12, %v3498_v10 }
 0x26d   : > { %v4715_v13 = vpop.f32.mrf.mxu1 }
 0x26e   : > { %v3547_v46 = vpop.f32.mrf.mxu0 }
 0x26f   : > { %v3502_v27 = vpop.f32.mrf.mxu1 }
 0x270   : > { %v3548_v54 = vpop.f32.mrf.mxu0  ;;  %v3503_v41 = vadd.f32 %v3502_v27, %v4715_v13 }
 0x271   : > { %v4717_v16 = vpop.f32.mrf.mxu1  ;;  %v3549_v27 = vadd.f32 %v3548_v54, %v3547_v46 }
 0x272   : > { %v4750_v4 = vpop.f32.mrf.mxu0 }
 0x273   : > { %v4719_v62 = vpop.f32.mrf.mxu1 }
 0x274   : > { %v3551_v31 = vpop.f32.mrf.mxu0  ;;  %v3506_v42 = vadd.f32 %v4719_v62, %v4717_v16 }
 0x275   : > { %v4723_v14 = vpop.f32.mrf.mxu1 }
 0x277   : > { %v4725_v29 = vpop.f32.mrf.mxu1 }
 0x279   : > { %v4728_v37 = vpop.f32.mrf.mxu1 }
 0x27b   : > { %v4730_v23 = vpop.f32.mrf.mxu1 }
 0x27d   : > { %v1597_v40 = vpop.f32.mrf.mxu1 }
 0x27e   : > { %v1598_v18 = vadd.f32 %v1597_v40, %v1525_v39  ;;  %v1541_v39 = vadd.f32 %v3543_v11, %v1468_v1  ;;  %v1471_v40 = vadd.f32 %v3500_v3, %v4721_v7 }
 0x27f   : > { %v3836_v47 = vpop.f32.mrf.mxu1 }
 0x280   : > { %v4734_v48 = vmax.f32 %v4609_v44, %v1598_v18  ;;  %v3546_v18 = vadd.f32 %v3545_v32, %v3544_v15 }
 0x281   : > { %v1600_v49 = vpop.f32.mrf.mxu1 }
 0x282   : > { %v1673_v51 = vmin.f32 %v4734_v48, 0.0  ;;  %v1601_v35 = vadd.f32 %v1600_v49, %v1528_v34  ;;  %v1665_v58 = vmax.f32 %v4734_v48, 0.0  ;;  %v3553_v34 = vpop.f32.mrf.mxu0  ;;  %v1476_v49 = vadd.f32 %v3503_v41, %v4721_v7 }
 0x283   : > { %v3837_v55 = vpop.f32.mrf.mxu1 }
 0x284   : > { %v1682_v44 = vmul.f32 %v4736_v24, %v1673_v51  ;;  %v4744_v20 = vmax.f32 %v4621_v60, %v1601_v35  ;;  %v1544_v51 = vadd.f32 %v3546_v18, %v1471_v40  ;;  %v3554_v55 = vpop.f32.mrf.mxu0  ;;  %v1549_v62 = vadd.f32 %v3549_v27, %v1476_v49 }
 0x285   : > { %v1605_v61 = vpop.f32.mrf.mxu1 }
 0x286   : > { %v4746_v0 = vadd.f32 %v1682_v44, %v1665_v58  ;;  %v1674_v43 = vmin.f32 %v4744_v20, 0.0  ;;  %v1666_v9 = vmax.f32 %v4744_v20, 0.0  ;;  %v1606_v6 = vadd.f32 %v1605_v61, %v1533_v26 }
 0x287   : > { %v3840_v5 = vpop.f32.mrf.mxu1 }
 0x288   : > { %1698 = vst [vmem:[#allocation2 + $0x2] sm:$0xff] %v4746_v0  ;;  %v1683_v60 = vmul.f32 %v4736_v24, %v1674_v43  ;;  %v1639_v10 = vrot.slane %v1606_v6, 4 }
 0x289   : > { %v1608_v8 = vpop.f32.mrf.mxu1 }
 0x28a   : > { %v1691_v33 = vadd.f32 %v1683_v60, %v1666_v9  ;;  %v1609_v36 = vadd.f32 %v1608_v8, %v1536_v25  ;;  %v1479_v60 = vadd.f32 %v3506_v42, %v4721_v7 }
 0x28b   : > { %v3841_v30 = vpop.f32.mrf.mxu1 }
 0x28c   : > { %1699 = vst [vmem:[#allocation2 + $0xa] sm:$0xff] %v1691_v33  ;;  %v1640_v12 = vrot.slane %v1609_v36, 4  ;;  %v3556_v36 = vpop.f32.mrf.mxu0 }
 0x28d   : > { %v1613_v17 = vpop.f32.mrf.mxu1 }
 0x28e   : > { %v1641_v45 = vsel %vm945_vm1, %v1639_v10, %v1640_v12  ;;  %v1614_v47 = vadd.f32 %v1613_v17, %v1541_v39  ;;  %v3555_v10 = vadd.f32 %v3554_v55, %v3553_v34  ;;  %v4128_v55 = vld [vmem:[#allocation7 + $0x3a0] sm:$0xff]  }
 0x28f   : > { %v4759_v22 = vmax.f32 %v4638_v38, %v1641_v45  ;;  %v3844_v56 = vpop.f32.mrf.mxu1  ;;  %v1716_v53 = vld [vmem:[#allocation2 + $0x1] sm:$0xff]  ;;  %v3509_v38 = vadd.f32 %v4725_v29, %v4723_v14 }
 0x290   : > { %v1642_v50 = vrot.slane %v1614_v47, 4  ;;  %v1706_v1 = vld [vmem:[#allocation2] sm:$0xff]  ;;  %v4125_v29 = vld [vmem:[#allocation7 + $0x3b8] sm:$0xff]  }
 0x291   : > { %v1675_v35 = vmin.f32 %v4759_v22, 0.0  ;;  %v1616_v13 = vpop.f32.mrf.mxu1  ;;  %v1667_v57 = vmax.f32 %v4759_v22, 0.0  ;;  %v1484_v8 = vadd.f32 %v3509_v38, %v4721_v7 }
 0x292   : > { %v1643_v15 = vsel %vm945_vm1, %v1640_v12, %v1642_v50  ;;  %v1617_v32 = vadd.f32 %v1616_v13, %v1544_v51  ;;  %v4127_v51 = vld [vmem:[#allocation7 + $0x3a8] sm:$0xff]  }
 0x293   : > { %v1684_v58 = vmul.f32 %v4736_v24, %v1675_v35  ;;  %v4771_v44 = vmax.f32 %v4650_v52, %v1643_v15  ;;  %v3845_v59 = vpop.f32.mrf.mxu1  ;;  %v1717_v46 = vld [vmem:[#allocation2 + $0x9] sm:$0xff]  ;;  %v1758_v52 = vpack.c.bf16 %v1691_v33, %v4746_v0  ;;  %v3512_v0 = vadd.f32 %v4730_v23, %v4728_v37  ;;  %v3557_v37 = vpop.f32.mrf.mxu0 }
 0x294   : > { %v1736_v54 = vld [vmem:[#allocation2 + $0x3] sm:$0xff]  ;;  %v1737_v61 = vld [vmem:[#allocation2 + $0xb] sm:$0xff]  ;;  %v4774_v16 = vmax.f32 %v4653_v21, %v1617_v32  ;;  %v1757_v43 = vpack.c.bf16 %v1717_v46, %v1716_v53  ;;  %v3552_v21 = vadd.f32 %v3551_v31, %v4750_v4  ;;  %v1557_v56 = vadd.f32 %v3555_v10, %v1484_v8 }
 0x295   : > { %v1759_v26 = vpack.c.bf16 %v1737_v61, %v1736_v54  ;;  %v1707_v14 = vld [vmem:[#allocation2 + $0x8] sm:$0xff]  ;;  %v1692_v5 = vadd.f32 %v1684_v58, %v1667_v57  ;;  %v1676_v25 = vmin.f32 %v4771_v44, 0.0  ;;  %v1621_v3 = vpop.f32.mrf.mxu1  ;;  %v1668_v30 = vmax.f32 %v4771_v44, 0.0  ;;  %v4126_v31 = vld [vmem:[#allocation7 + $0x3b0] sm:$0xff]  }
 0x296   : > { %v1756_v9 = vpack.c.bf16 %v1707_v14, %v1706_v1  ;;  %v1677_v6 = vmin.f32 %v4774_v16, 0.0  ;;  %v1622_v11 = vadd.f32 %v1621_v3, %v1549_v62  ;;  %2142 = vmatprep.mubr.bf16.mxu0 %v1757_v43  ;;  %v1669_v33 = vmax.f32 %v4774_v16, 0.0 }
 0x297   : > { %2215 = vmatprep.mubr.bf16.mxu1 %v1759_v26  ;;  %1700 = vst [vmem:[#allocation2 + $0x16] sm:$0xff] %v1692_v5  ;;  %v1685_v39 = vmul.f32 %v4736_v24, %v1676_v25  ;;  %v3848_v40 = vpop.f32.mrf.mxu1  ;;  %v1552_v47 = vadd.f32 %v3552_v21, %v1479_v60  ;;  %v1487_v49 = vadd.f32 %v3512_v0, %v4721_v7  ;;  %v4129_v21 = vld [vmem:[#allocation7 + $0x398] sm:$0xff]  }
 0x298   : > { %2143 = vmatmul.mubr.bf16.vlgmr.msra.gmra.mxu0 %v1756_v9  ;;  %2216 = vmatmul.mubr.bf16.vlgmr.msra.gmra.mxu1 %v1758_v52  ;;  %v1686_v41 = vmul.f32 %v4736_v24, %v1677_v6  ;;  %v4789_v4 = vmax.f32 %v4669_v28, %v1622_v11  ;;  %v3558_v13 = vadd.f32 %v3557_v37, %v3556_v36 }
 0x299   : > { %3855 = vmatpush3.bf16.msra.mxu0 %v4125_v29  ;;  %v1693_v12 = vadd.f32 %v1685_v39, %v1668_v30  ;;  %v1624_v17 = vpop.f32.mrf.mxu1 }
 0x29a   : > { %3856 = vmatprep.subr.bf16.mxu0 %v4360_v2  ;;  %v4792_v18 = vadd.f32 %v1686_v41, %v1669_v33  ;;  %v1678_v45 = vmin.f32 %v4789_v4, 0.0  ;;  %v1670_v28 = vmax.f32 %v4789_v4, 0.0  ;;  %v1625_v50 = vadd.f32 %v1624_v17, %v1552_v47  ;;  %v4130_v41 = vld [vmem:[#allocation7 + $0x390] sm:$0xff]  }
 0x29b   : > { %1701 = vst [vmem:[#allocation2 + $0x1e] sm:$0xff] %v1693_v12  ;;  %v3849_v23 = vpop.f32.mrf.mxu1  ;;  %v1560_v53 = vadd.f32 %v3558_v13, %v1487_v49 }
 0x29c   : > { %1702 = vst [vmem:[#allocation2 + $0x2a] sm:$0xff] %v4792_v18  ;;  %v1687_v34 = vmul.f32 %v4736_v24, %v1678_v45  ;;  %v1649_v7 = vrot.slane %v1625_v50, 4 }
 0x29d   : > { %3857 = vmatpush3.bf16.msra.mxu0 %v4126_v31  ;;  %v1629_v35 = vpop.f32.mrf.mxu1 }
 0x29e   : > { %3858 = vmatprep.subr.bf16.mxu0 %v4360_v2  ;;  %v4800_v27 = vadd.f32 %v1687_v34, %v1670_v28  ;;  %v1630_v42 = vadd.f32 %v1629_v35, %v1557_v56  ;;  %v1718_v38 = vld [vmem:[#allocation2 + $0x11] sm:$0xff] }
 0x29f   : > { %v3852_v15 = vpop.f32.mrf.mxu1  ;;  %v1738_v58 = vld [vmem:[#allocation2 + $0x13] sm:$0xff] }
 0x2a0   : > { %1703 = vst [vmem:[#allocation2 + $0x32] sm:$0xff] %v4800_v27  ;;  %v1650_v32 = vrot.slane %v1630_v42, 4  ;;  %v1708_v59 = vld [vmem:[#allocation2 + $0x10] sm:$0xff]  ;;  %v4131_v56 = vld [vmem:[#allocation7 + $0x388] sm:$0xff]  }
 0x2a1   : > { %3859 = vmatpush3.bf16.msra.mxu0 %v4127_v51  ;;  %v1632_v57 = vpop.f32.mrf.mxu1  ;;  %v1728_v46 = vld [vmem:[#allocation2 + $0x12] sm:$0xff] }
 0x2a2   : > { %3860 = vmatprep.subr.bf16.mxu0 %v4360_v2  ;;  %v1651_v54 = vsel %vm945_vm1, %v1649_v7, %v1650_v32  ;;  %v1633_v61 = vadd.f32 %v1632_v57, %v1560_v53  ;;  %v1719_v62 = vld [vmem:[#allocation2 + $0x19] sm:$0xff]  ;;  %v1720_v9 = vld [vmem:[#allocation2 + $0x21] sm:$0xff]  ;;  %v4132_v28 = vld [vmem:[#allocation7 + $0x380] sm:$0xff]  }
 0x2a3   : > { %v1739_v43 = vld [vmem:[#allocation2 + $0x1b] sm:$0xff]  ;;  %v4806_v1 = vmax.f32 %v4686_v63, %v1651_v54  ;;  %v3853_v14 = vpop.f32.mrf.mxu1  ;;  %v1762_v29 = vpack.c.bf16 %v1719_v62, %v1718_v38  ;;  %v1721_v52 = vld [vmem:[#allocation2 + $0x29] sm:$0xff] }
 0x2a4   : > { %v1709_v26 = vld [vmem:[#allocation2 + $0x18] sm:$0xff]  ;;  %v1764_v5 = vpack.c.bf16 %v1739_v43, %v1738_v58  ;;  %v1652_v60 = vrot.slane %v1633_v61, 4  ;;  %v1767_v11 = vpack.c.bf16 %v1721_v52, %v1720_v9  ;;  %v1740_v40 = vld [vmem:[#allocation2 + $0x23] sm:$0xff]  ;;  %v1747_v14 = vld [vmem:[#allocation2 + $0xc] sm:$0xff] }
 0x2a5   : > { %v1761_v25 = vpack.c.bf16 %v1709_v26, %v1708_v59  ;;  %v1729_v3 = vld [vmem:[#allocation2 + $0x1a] sm:$0xff]  ;;  %3861 = vmatpush3.bf16.msra.mxu0 %v4128_v55  ;;  %v1679_v8 = vmin.f32 %v4806_v1, 0.0  ;;  %2150 = vmatprep.mubr.bf16.mxu0 %v1762_v29  ;;  %v1671_v63 = vmax.f32 %v4806_v1, 0.0  ;;  %v1711_v17 = vld [vmem:[#allocation2 + $0x28] sm:$0xff] }
 0x2a6   : > { %v1763_v6 = vpack.c.bf16 %v1729_v3, %v1728_v46  ;;  %2223 = vmatprep.mubr.bf16.mxu1 %v1764_v5  ;;  %v1653_v36 = vsel %vm945_vm1, %v1650_v32, %v1652_v60  ;;  %3862 = vmatprep.subr.bf16.mxu0 %v4360_v2  ;;  %v1710_v12 = vld [vmem:[#allocation2 + $0x20] sm:$0xff] }
 0x2a7   : > { %2151 = vmatmul.mubr.bf16.gmra.mxu0 %v1761_v25  ;;  %v1688_v30 = vmul.f32 %v4736_v24, %v1679_v8  ;;  %v4813_v39 = vmax.f32 %v4693_v19, %v1653_v36  ;;  %v1741_v0 = vld [vmem:[#allocation2 + $0x2b] sm:$0xff]  ;;  %v1730_v45 = vld [vmem:[#allocation2 + $0x22] sm:$0xff]  ;;  %v1766_v37 = vpack.c.bf16 %v1711_v17, %v1710_v12  ;;  %v1742_v50 = vld [vmem:[#allocation2 + $0x33] sm:$0xff] }
 0x2a8   : > { %2224 = vmatmul.mubr.bf16.gmra.mxu1 %v1763_v6  ;;  %2158 = vmatprep.mubr.bf16.mxu0 %v1767_v11  ;;  %v1769_v33 = vpack.c.bf16 %v1741_v0, %v1740_v40  ;;  %v1768_v23 = vpack.c.bf16 %v4792_v18, %v1730_v45  ;;  %v1722_v34 = vld [vmem:[#allocation2 + $0x31] sm:$0xff]  ;;  %v1749_v5 = vld [vmem:[#allocation2 + $0x1c] sm:$0xff]  ;;  %v1750_v52 = vld [vmem:[#allocation2 + $0x24] sm:$0xff] }
 0x2a9   : > { %3863 = vmatpush3.bf16.msra.mxu0 %v4129_v21  ;;  %v1696_v31 = vadd.f32 %v1688_v30, %v1671_v63  ;;  %v1680_v10 = vmin.f32 %v4813_v39, 0.0  ;;  %v1672_v19 = vmax.f32 %v4813_v39, 0.0  ;;  %v1712_v51 = vld [vmem:[#allocation2 + $0x30] sm:$0xff]  ;;  %v4133_v30 = vld [vmem:[#allocation7 + $0x438] sm:$0xff]   ;;  %v4140_v12 = vld [vmem:[#allocation7 + $0x470] sm:$0xff]  }
 0x2aa   : > { %3864 = vmatprep.subr.bf16.mxu0 %v4360_v2  ;;  %2231 = vmatprep.mubr.bf16.mxu1 %v1769_v33  ;;  %v1748_v25 = vld [vmem:[#allocation2 + $0x14] sm:$0xff]  ;;  %v1751_v9 = vld [vmem:[#allocation2 + $0x2c] sm:$0xff] }
 0x2ab   : > { %1704 = vst [vmem:[#allocation2 + $0x3e] sm:$0xff] %v1696_v31  ;;  %v1689_v47 = vmul.f32 %v4736_v24, %v1680_v10  ;;  %v1765_v3 = vpack.c.bf16 %v1749_v5, %v1748_v25  ;;  %v1770_v60 = vpack.c.bf16 %v1751_v9, %v1750_v52  ;;  %v1752_v11 = vld [vmem:[#allocation2 + $0x34] sm:$0xff]  ;;  %3677 = vmatprep.subr.bf16.mxu1 %v4133_v30  ;;  %v4135_v40 = vld [vmem:[#allocation7 + $0x4b8] sm:$0xff]   ;;  %v4138_v31 = vld [vmem:[#allocation7 + $0x4b0] sm:$0xff]  }
 0x2ac   : > { %v4134_v0 = vld [vmem:[#allocation7 + $0x3f8] sm:$0xff]   ;;  %v4139_v10 = vld [vmem:[#allocation7 + $0x3f0] sm:$0xff]   ;;  %v4141_v17 = vld [vmem:[#allocation7 + $0x428] sm:$0xff]  }
 0x2ad   : > { %3865 = vmatpush3.bf16.msra.mxu0 %v4130_v41  ;;  %v1697_v49 = vadd.f32 %v1689_v47, %v1672_v19  ;;  %v4136_v33 = vld [vmem:[#allocation7 + $0x478] sm:$0xff]   ;;  %3678 = vmatpush3.bf16.msra.mxu1 %v4134_v0  ;;  %v4137_v41 = vld [vmem:[#allocation7 + $0x430] sm:$0xff]   ;;  %v4142_v45 = vld [vmem:[#allocation7 + $0x4a8] sm:$0xff]  }
 0x2ae   : > { %3866 = vmatprep.subr.bf16.mxu0 %v4360_v2  ;;  %3679 = vmatprep.subr.bf16.mxu1 %v4137_v41  ;;  %v4143_v19 = vld [vmem:[#allocation7 + $0x3e8] sm:$0xff]   ;;  %v4841_v41 = vld [vmem:[#allocation9 + $0x2] ss:$0 sm:$0xff] }
 0x2af   : > { %2159 = vmatmul.mubr.bf16.gmra.mxu0 %v1766_v37  ;;  %1705 = vst [vmem:[#allocation2 + $0x46] sm:$0xff] %v1697_v49  ;;  %v4144_v47 = vld [vmem:[#allocation7 + $0x468] sm:$0xff]   ;;  %v4145_v37 = vld [vmem:[#allocation7 + $0x420] sm:$0xff]  }
 0x2b0   : > { %2232 = vmatmul.mubr.bf16.gmra.mxu1 %v1768_v23  ;;  %v4146_v23 = vld [vmem:[#allocation7 + $0x4a0] sm:$0xff]  }
 0x2b1   : > { %3867 = vmatpush3.bf16.msra.mxu0 %v4131_v56  ;;  %3680 = vmatpush3.bf16.msra.mxu1 %v4139_v10  ;;  %v4147_v56 = vld [vmem:[#allocation7 + $0x3e0] sm:$0xff]  }
 0x2b2   : > { %3868 = vmatprep.subr.bf16.mxu0 %v4360_v2  ;;  %v1723_v35 = vld [vmem:[#allocation2 + $0x39] sm:$0xff]  ;;  %3681 = vmatprep.subr.bf16.mxu1 %v4141_v17  ;;  %v4148_v49 = vld [vmem:[#allocation7 + $0x460] sm:$0xff]  }
 0x2b3   : > { %v1743_v24 = vld [vmem:[#allocation2 + $0x3b] sm:$0xff]  ;;  %v1772_v42 = vpack.c.bf16 %v1723_v35, %v1722_v34  ;;  %v4150_v34 = vld [vmem:[#allocation7 + $0x498] sm:$0xff]  }
 0x2b4   : > { %v1713_v13 = vld [vmem:[#allocation2 + $0x38] sm:$0xff]  ;;  %v1774_v18 = vpack.c.bf16 %v1743_v24, %v1742_v50  ;;  %v4151_v50 = vld [vmem:[#allocation7 + $0x3d8] sm:$0xff]   ;;  %v4153_v35 = vld [vmem:[#allocation7 + $0x410] sm:$0xff]  }
 0x2b5   : > { %v1771_v15 = vpack.c.bf16 %v1713_v13, %v1712_v51  ;;  %v1733_v7 = vld [vmem:[#allocation2 + $0x3a] sm:$0xff]  ;;  %3869 = vmatpush3.bf16.msra.mxu0 %v4132_v28  ;;  %2166 = vmatprep.mubr.bf16.mxu0 %v1772_v42  ;;  %v4149_v28 = vld [vmem:[#allocation7 + $0x418] sm:$0xff]  }
 0x2b6   : > { %v1773_v32 = vpack.c.bf16 %v1733_v7, %v4800_v27  ;;  %2239 = vmatprep.mubr.bf16.mxu1 %v1774_v18  ;;  %v1724_v53 = vld [vmem:[#allocation2 + $0x41] sm:$0xff]  ;;  %v1725_v38 = vld [vmem:[#allocation2 + $0x49] sm:$0xf]  ;;  %3723 = vmatprep.subr.bf16.mxu0 %v4135_v40  ;;  %v4157_v18 = vld [vmem:[#allocation7 + $0x408] sm:$0xff]  }
 0x2b7   : > { %2167 = vmatmul.mubr.bf16.gmra.mxu0 %v1771_v15  ;;  %v1744_v55 = vld [vmem:[#allocation2 + $0x43] sm:$0xff]  ;;  %v1777_v57 = vpack.c.bf16 %v1725_v38, %v1724_v53  ;;  %v1745_v58 = vld [vmem:[#allocation2 + $0x4b] sm:$0xf]  ;;  %3682 = vmatpush3.bf16.msra.mxu1 %v4143_v19  ;;  %v4158_v15 = vld [vmem:[#allocation7 + $0x488] sm:$0xff]  }
 0x2b8   : > { %2240 = vmatmul.mubr.bf16.gmra.mxu1 %v1773_v32  ;;  %v1779_v59 = vpack.c.bf16 %v1745_v58, %v1744_v55  ;;  %v1714_v46 = vld [vmem:[#allocation2 + $0x40] sm:$0xff]  ;;  %v1715_v54 = vld [vmem:[#allocation2 + $0x48] sm:$0xf]  ;;  %v1755_v36 = vld [vmem:[#allocation2 + $0x4c] sm:$0xf]  ;;  %3683 = vmatprep.subr.bf16.mxu1 %v4145_v37 }
 0x2b9   : > { %2174 = vmatprep.mubr.bf16.mxu0 %v1777_v57  ;;  %v1734_v61 = vld [vmem:[#allocation2 + $0x42] sm:$0xff]  ;;  %v1735_v62 = vld [vmem:[#allocation2 + $0x4a] sm:$0xf]  ;;  %v1776_v43 = vpack.c.bf16 %v1715_v54, %v1714_v46  ;;  %v4159_v7 = vld [vmem:[#allocation7 + $0x3c8] sm:$0xff]  }
 0x2ba   : > { %2247 = vmatprep.mubr.bf16.mxu1 %v1779_v59  ;;  %v1778_v26 = vpack.c.bf16 %v1735_v62, %v1734_v61  ;;  %v1746_v27 = vld [vmem:[#allocation2 + $0x4] sm:$0xff]  ;;  %v1753_v6 = vld [vmem:[#allocation2 + $0x3c] sm:$0xff]  ;;  %v4161_v53 = vld [vmem:[#allocation7 + $0x400] sm:$0xff]  }
 0x2bb   : > { %v1760_v29 = vpack.c.bf16 %v1747_v14, %v1746_v27  ;;  %v1775_v21 = vpack.c.bf16 %v1753_v6, %v1752_v11  ;;  %v1754_v8 = vld [vmem:[#allocation2 + $0x44] sm:$0xff]  ;;  %3684 = vmatpush3.bf16.msra.mxu1 %v4147_v56  ;;  %v4160_v32 = vld [vmem:[#allocation7 + $0x448] sm:$0xff]   ;;  %v4162_v38 = vld [vmem:[#allocation7 + $0x480] sm:$0xff]  }
 0x2bc   : > { %v1780_v63 = vpack.c.bf16 %v1755_v36, %v1754_v8  ;;  %v4152_v51 = vld [vmem:[#allocation7 + $0x458] sm:$0xff]   ;;  %3685 = vmatprep.subr.bf16.mxu1 %v4149_v28  ;;  %v4154_v24 = vld [vmem:[#allocation7 + $0x490] sm:$0xff]   ;;  %v4163_v55 = vld [vmem:[#allocation7 + $0x3c0] sm:$0xff]  }
 0x2bd   : > { %v4155_v13 = vld [vmem:[#allocation7 + $0x3d0] sm:$0xff]   ;;  %v4164_v57 = vld [vmem:[#allocation7 + $0x440] sm:$0xff]  }
 0x2be   : > { %v4156_v42 = vld [vmem:[#allocation7 + $0x450] sm:$0xff]  }
 0x2bf   : > { %2175 = vmatmul.mubr.bf16.gmra.mxu0 %v1776_v43  ;;  %3686 = vmatpush3.bf16.msra.mxu1 %v4151_v50 }
 0x2c0   : > { %2248 = vmatmul.mubr.bf16.gmra.mxu1 %v1778_v26  ;;  %3870 = vmatprep.mubr.msk.bf16.mxu0 %vm4361_vm0, %v4360_v2 }
 0x2c1   : > { %3687 = vmatprep.subr.bf16.mxu1 %v4153_v35 }
 0x2c3   : > { %3688 = vmatpush3.bf16.msra.mxu1 %v4155_v13 }
 0x2c4   : > { %3689 = vmatprep.subr.bf16.mxu1 %v4157_v18 }
 0x2c7   : > { %3871 = vmatmul.mubr.bf16.vlgmr.msra.gmra.mxu0 %v1760_v29  ;;  %3690 = vmatpush3.bf16.msra.mxu1 %v4159_v7 }
 0x2c8   : > { %3874 = vmatprep.mubr.msk.bf16.mxu0 %vm4361_vm0, %v4360_v2  ;;  %3724 = vmatpush3.bf16.msra.mxu0 %v4136_v33 }
 0x2c9   : > { %3725 = vmatprep.subr.bf16.mxu0 %v4138_v31  ;;  %3691 = vmatprep.subr.bf16.mxu1 %v4161_v53 }
 0x2cb   : > { %3692 = vmatpush3.bf16.msra.mxu1 %v4163_v55 }
 0x2cc   : > { %3726 = vmatpush3.bf16.msra.mxu0 %v4140_v12  ;;  %3890 = vmatprep.subr.bf16.mxu1 %v4360_v2 }
 0x2cd   : > { %3727 = vmatprep.subr.bf16.mxu0 %v4142_v45 }
 0x2cf   : > { %3875 = vmatmul.mubr.bf16.gmra.mxu0 %v1765_v3 }
 0x2d0   : > { %3878 = vmatprep.mubr.msk.bf16.mxu0 %vm4361_vm0, %v4360_v2  ;;  %3728 = vmatpush3.bf16.msra.mxu0 %v4144_v47 }
 0x2d1   : > { %3729 = vmatprep.subr.bf16.mxu0 %v4146_v23 }
 0x2d4   : > { %3730 = vmatpush3.bf16.msra.mxu0 %v4148_v49 }
 0x2d5   : > { %3731 = vmatprep.subr.bf16.mxu0 %v4150_v34 }
 0x2d7   : > { %3879 = vmatmul.mubr.bf16.gmra.mxu0 %v1770_v60 }
 0x2d8   : > { %3882 = vmatprep.mubr.msk.bf16.mxu0 %vm4361_vm0, %v4360_v2  ;;  %3732 = vmatpush3.bf16.msra.mxu0 %v4152_v51 }
 0x2d9   : > { %3733 = vmatprep.subr.bf16.mxu0 %v4154_v24 }
 0x2dc   : > { %3734 = vmatpush3.bf16.msra.mxu0 %v4156_v42 }
 0x2dd   : > { %3735 = vmatprep.subr.bf16.mxu0 %v4158_v15  ;;  %v4854_v15 = vstv %s3310_s12 }
 0x2df   : > { %3883 = vmatmul.mubr.bf16.gmra.mxu0 %v1775_v21 }
 0x2e0   : > { %3886 = vmatprep.mubr.msk.bf16.mxu0 %vm4361_vm0, %v4360_v2  ;;  %3736 = vmatpush3.bf16.msra.mxu0 %v4160_v32 }
 0x2e1   : > { %3737 = vmatprep.subr.bf16.mxu0 %v4162_v38 }
 0x2e4   : > { %3738 = vmatpush3.bf16.msra.mxu0 %v4164_v57 }
 0x2e7   : > { %3887 = vmatmul.mubr.bf16.gmra.mxu0 %v1780_v63 }
 0x358   : > { %v3588_v58 = vpop.f32.mrf.mxu0  ;;  %v3634_v59 = vpop.f32.mrf.mxu1 }
 0x35a   : > { %v3589_v46 = vpop.f32.mrf.mxu0  ;;  %v3635_v54 = vpop.f32.mrf.mxu1 }
 0x35b   : > { %v3590_v33 = vadd.f32 %v3589_v46, %v3588_v58  ;;  %v3636_v47 = vadd.f32 %v3635_v54, %v3634_v59 }
 0x35c   : > { %v3591_v61 = vpop.f32.mrf.mxu0  ;;  %v3637_v62 = vpop.f32.mrf.mxu1 }
 0x35d   : > { %v2145_v17 = vadd.f32 %v3590_v33, %v4841_v41 }
 0x35e   : > { %v3592_v43 = vpop.f32.mrf.mxu0  ;;  %v3638_v26 = vpop.f32.mrf.mxu1 }
 0x35f   : > { %v3593_v45 = vadd.f32 %v3592_v43, %v3591_v61  ;;  %v2218_v49 = vadd.f32 %v3636_v47, %v2145_v17  ;;  %v3639_v34 = vadd.f32 %v3638_v26, %v3637_v62 }
 0x361   : > { %v2148_v56 = vadd.f32 %v3593_v45, %v4841_v41 }
 0x363   : > { %v2221_v18 = vadd.f32 %v3639_v34, %v2148_v56 }
 0x367   : > { %v3594_v27 = vpop.f32.mrf.mxu0 }
 0x368   : > { %v3640_v14 = vpop.f32.mrf.mxu1 }
 0x369   : > { %v3595_v29 = vpop.f32.mrf.mxu0 }
 0x36a   : > { %v3641_v25 = vpop.f32.mrf.mxu1  ;;  %v3596_v50 = vadd.f32 %v3595_v29, %v3594_v27 }
 0x36b   : > { %v3597_v5 = vpop.f32.mrf.mxu0  ;;  %v3642_v46 = vadd.f32 %v3641_v25, %v3640_v14 }
 0x36c   : > { %v3643_v52 = vpop.f32.mrf.mxu1  ;;  %v2153_v32 = vadd.f32 %v3596_v50, %v4841_v41 }
 0x36d   : > { %v3598_v3 = vpop.f32.mrf.mxu0 }
 0x36e   : > { %v3644_v11 = vpop.f32.mrf.mxu1  ;;  %v3599_v35 = vadd.f32 %v3598_v3, %v3597_v5  ;;  %v2226_v29 = vadd.f32 %v3642_v46, %v2153_v32 }
 0x36f   : > { %v3600_v9 = vpop.f32.mrf.mxu0 }
 0x370   : > { %v3646_v36 = vpop.f32.mrf.mxu1  ;;  %v2156_v55 = vadd.f32 %v3599_v35, %v4841_v41 }
 0x371   : > { %v3601_v60 = vpop.f32.mrf.mxu0 }
 0x372   : > { %v3647_v40 = vpop.f32.mrf.mxu1  ;;  %v3602_v57 = vadd.f32 %v3601_v60, %v3600_v9 }
 0x373   : > { %v3603_v6 = vpop.f32.mrf.mxu0 }
 0x374   : > { %v3649_v10 = vpop.f32.mrf.mxu1  ;;  %v2161_v5 = vadd.f32 %v3602_v57, %v4841_v41 }
 0x375   : > { %v3604_v21 = vpop.f32.mrf.mxu0 }
 0x376   : > { %v3650_v37 = vpop.f32.mrf.mxu1  ;;  %v3605_v60 = vadd.f32 %v3604_v21, %v3603_v6 }
 0x377   : > { %v4835_v8 = vpop.f32.mrf.mxu0 }
 0x378   : > { %v3652_v24 = vpop.f32.mrf.mxu1 }
 0x379   : > { %v3607_v63 = vpop.f32.mrf.mxu0 }
 0x37a   : > { %v3653_v58 = vpop.f32.mrf.mxu1  ;;  %v3608_v34 = vadd.f32 %v3607_v63, %v4835_v8 }
 0x37b   : > { %v4837_v30 = vpop.f32.mrf.mxu0 }
 0x37c   : > { %v4863_v3 = vpop.f32.mrf.mxu1 }
 0x37d   : > { %v4839_v0 = vpop.f32.mrf.mxu0 }
 0x37e   : > { %v3656_v47 = vpop.f32.mrf.mxu1  ;;  %v3611_v8 = vadd.f32 %v4839_v0, %v4837_v30 }
 0x37f   : > { %v4843_v31 = vpop.f32.mrf.mxu0 }
 0x381   : > { %v4845_v12 = vpop.f32.mrf.mxu0 }
 0x382   : > { %v3614_v57 = vadd.f32 %v4845_v12, %v4843_v31 }
 0x383   : > { %v4848_v19 = vpop.f32.mrf.mxu0 }
 0x385   : > { %v4850_v23 = vpop.f32.mrf.mxu0 }
 0x387   : > { %v2290_v28 = vpop.f32.mrf.mxu0 }
 0x388   : > { %v2291_v51 = vadd.f32 %v2290_v28, %v2218_v49  ;;  %v2164_v28 = vadd.f32 %v3605_v60, %v4841_v41 }
 0x389   : > { %v3872_v13 = vpop.f32.mrf.mxu0 }
 0x38a   : > { %v2349_v42 = vmax.f32 %v4734_v48, %v2291_v51  ;;  %v3645_v48 = vadd.f32 %v3644_v11, %v3643_v52  ;;  %v3651_v51 = vadd.f32 %v3650_v37, %v3649_v10 }
 0x38b   : > { %v2293_v7 = vpop.f32.mrf.mxu0 }
 0x38c   : > { %v2366_v53 = vmin.f32 %v2349_v42, 0.0  ;;  %v2294_v38 = vadd.f32 %v2293_v7, %v2221_v18  ;;  %v2358_v54 = vmax.f32 %v2349_v42, 0.0  ;;  %v2229_v9 = vadd.f32 %v3645_v48, %v2156_v55  ;;  %v3658_v42 = vpop.f32.mrf.mxu1 }
 0x38d   : > { %v3873_v59 = vpop.f32.mrf.mxu0  ;;  %v2169_v18 = vadd.f32 %v3608_v34, %v4841_v41  ;;  %v2237_v32 = vadd.f32 %v3651_v51, %v2164_v28  ;;  %v3654_v55 = vadd.f32 %v3653_v58, %v3652_v24 }
 0x38e   : > { %v2375_v61 = vmul.f32 %v4854_v15, %v2366_v53  ;;  %v2350_v62 = vmax.f32 %v4744_v20, %v2294_v38  ;;  %v3648_v20 = vadd.f32 %v3647_v40, %v3646_v36  ;;  %v3659_v59 = vpop.f32.mrf.mxu1 }
 0x38f   : > { %v2298_v43 = vpop.f32.mrf.mxu0  ;;  %v2242_v30 = vadd.f32 %v3654_v55, %v2169_v18 }
 0x390   : > { %v4860_v26 = vadd.f32 %v2375_v61, %v2358_v54  ;;  %v2367_v27 = vmin.f32 %v2350_v62, 0.0  ;;  %v2359_v14 = vmax.f32 %v2350_v62, 0.0  ;;  %v2299_v17 = vadd.f32 %v2298_v43, %v2226_v29 }
 0x391   : > { %v3876_v33 = vpop.f32.mrf.mxu0  ;;  %v2234_v49 = vadd.f32 %v3648_v20, %v2161_v5  ;;  %v4165_v5 = vld [vmem:[#allocation7 + $0x4f8] sm:$0xff]   ;;  %v3661_v20 = vpop.f32.mrf.mxu1 }
 0x392   : > { %2391 = vst [vmem:[#allocation2 + $0x2] sm:$0xff] %v4860_v26  ;;  %v2376_v25 = vmul.f32 %v4854_v15, %v2367_v27  ;;  %v2332_v50 = vrot.slane %v2299_v17, 4  ;;  %v2177_v17 = vadd.f32 %v3614_v57, %v4841_v41 }
 0x393   : > { %v2301_v52 = vpop.f32.mrf.mxu0 }
 0x394   : > { %v2384_v11 = vadd.f32 %v2376_v25, %v2359_v14  ;;  %v2302_v45 = vadd.f32 %v2301_v52, %v2229_v9 }
 0x395   : > { %v3877_v56 = vpop.f32.mrf.mxu0 }
 0x396   : > { %2392 = vst [vmem:[#allocation2 + $0xa] sm:$0xff] %v2384_v11  ;;  %v2333_v6 = vrot.slane %v2302_v45, 4  ;;  %v2451_v60 = vpack.c.bf16 %v2384_v11, %v4860_v26  ;;  %v3617_v26 = vadd.f32 %v4850_v23, %v4848_v19 }
 0x397   : > { %v2306_v21 = vpop.f32.mrf.mxu0 }
 0x398   : > { %v2334_v35 = vsel %vm945_vm1, %v2332_v50, %v2333_v6  ;;  %v2307_v13 = vadd.f32 %v2306_v21, %v2234_v49  ;;  %v2180_v23 = vadd.f32 %v3617_v26, %v4841_v41 }
 0x399   : > { %v2351_v36 = vmax.f32 %v4759_v22, %v2334_v35  ;;  %v3880_v40 = vpop.f32.mrf.mxu0  ;;  %v2409_v37 = vld [vmem:[#allocation2 + $0x1] sm:$0xff]  ;;  %v3662_v35 = vpop.f32.mrf.mxu1 }
 0x39a   : > { %v2335_v7 = vrot.slane %v2307_v13, 4  ;;  %v2399_v27 = vld [vmem:[#allocation2] sm:$0xff]  ;;  %v4167_v40 = vld [vmem:[#allocation7 + $0x4e8] sm:$0xff]  }
 0x39b   : > { %v2368_v53 = vmin.f32 %v2351_v36, 0.0  ;;  %v2309_v38 = vpop.f32.mrf.mxu0  ;;  %v2360_v22 = vmax.f32 %v2351_v36, 0.0 }
 0x39c   : > { %v2336_v63 = vsel %vm945_vm1, %v2333_v6, %v2335_v7  ;;  %v2310_v10 = vadd.f32 %v2309_v38, %v2237_v32  ;;  %v3663_v7 = vadd.f32 %v3662_v35, %v3661_v20 }
 0x39d   : > { %v2377_v46 = vmul.f32 %v4854_v15, %v2368_v53  ;;  %v2352_v54 = vmax.f32 %v4771_v44, %v2336_v63  ;;  %v3881_v61 = vpop.f32.mrf.mxu0  ;;  %v2410_v62 = vld [vmem:[#allocation2 + $0x9] sm:$0xff]  ;;  %v2172_v44 = vadd.f32 %v3611_v8, %v4841_v41 }
 0x39e   : > { %v2429_v48 = vld [vmem:[#allocation2 + $0x3] sm:$0xff]  ;;  %v2430_v24 = vld [vmem:[#allocation2 + $0xb] sm:$0xff]  ;;  %v2353_v58 = vmax.f32 %v4774_v16, %v2310_v10  ;;  %v2450_v0 = vpack.c.bf16 %v2410_v62, %v2409_v37  ;;  %v3657_v16 = vadd.f32 %v3656_v47, %v4863_v3  ;;  %v3660_v47 = vadd.f32 %v3659_v59, %v3658_v42 }
 0x39f   : > { %v2452_v43 = vpack.c.bf16 %v2430_v24, %v2429_v48  ;;  %v2400_v29 = vld [vmem:[#allocation2 + $0x8] sm:$0xff]  ;;  %v2385_v33 = vadd.f32 %v2377_v46, %v2360_v22  ;;  %v2369_v31 = vmin.f32 %v2352_v54, 0.0  ;;  %v2314_v12 = vpop.f32.mrf.mxu0  ;;  %v2361_v52 = vmax.f32 %v2352_v54, 0.0  ;;  %v4166_v3 = vld [vmem:[#allocation7 + $0x4f0] sm:$0xff]   ;;  %v4168_v10 = vld [vmem:[#allocation7 + $0x4e0] sm:$0xff]  }
 0x3a0   : > { %v2449_v9 = vpack.c.bf16 %v2400_v29, %v2399_v27  ;;  %v2370_v14 = vmin.f32 %v2353_v58, 0.0  ;;  %v2315_v25 = vadd.f32 %v2314_v12, %v2242_v30  ;;  %2835 = vmatprep.mubr.bf16.mxu1 %v2450_v0  ;;  %v2362_v11 = vmax.f32 %v2353_v58, 0.0 }
 0x3a1   : > { %2908 = vmatprep.mubr.bf16.mxu0 %v2452_v43  ;;  %2393 = vst [vmem:[#allocation2 + $0x16] sm:$0xff] %v2385_v33  ;;  %v2378_v45 = vmul.f32 %v4854_v15, %v2369_v31  ;;  %v3884_v56 = vpop.f32.mrf.mxu0  ;;  %v2245_v51 = vadd.f32 %v3657_v16, %v2172_v44  ;;  %v2250_v19 = vadd.f32 %v3660_v47, %v2177_v17 }
 0x3a2   : > { %2836 = vmatmul.mubr.bf16.vlgmr.msra.gmra.mxu1 %v2449_v9  ;;  %2909 = vmatmul.mubr.bf16.vlgmr.msra.gmra.mxu0 %v2451_v60  ;;  %v2379_v49 = vmul.f32 %v4854_v15, %v2370_v14  ;;  %v2354_v28 = vmax.f32 %v4789_v4, %v2315_v25  ;;  %v2253_v8 = vadd.f32 %v3663_v7, %v2180_v23  ;;  %v4169_v9 = vld [vmem:[#allocation7 + $0x4d8] sm:$0xff]  }
 0x3a3   : > { %3891 = vmatpush3.bf16.msra.mxu1 %v4165_v5  ;;  %v2386_v34 = vadd.f32 %v2378_v45, %v2361_v52  ;;  %v2317_v50 = vpop.f32.mrf.mxu0  ;;  %v4170_v52 = vld [vmem:[#allocation7 + $0x4d0] sm:$0xff]  }
 0x3a4   : > { %3892 = vmatprep.subr.bf16.mxu1 %v4360_v2  ;;  %v4890_v6 = vadd.f32 %v2379_v49, %v2362_v11  ;;  %v2371_v21 = vmin.f32 %v2354_v28, 0.0  ;;  %v2363_v4 = vmax.f32 %v2354_v28, 0.0  ;;  %v2318_v42 = vadd.f32 %v2317_v50, %v2245_v51 }
 0x3a5   : > { %2394 = vst [vmem:[#allocation2 + $0x1e] sm:$0xff] %v2386_v34  ;;  %v3885_v13 = vpop.f32.mrf.mxu0  ;;  %v4171_v34 = vld [vmem:[#allocation7 + $0x4c8] sm:$0xff]  }
 0x3a6   : > { %2395 = vst [vmem:[#allocation2 + $0x2a] sm:$0xff] %v4890_v6  ;;  %v2380_v36 = vmul.f32 %v4854_v15, %v2371_v21  ;;  %v2342_v55 = vrot.slane %v2318_v42, 4  ;;  %v4172_v21 = vld [vmem:[#allocation7 + $0x4c0] sm:$0xff]  }
 0x3a7   : > { %3893 = vmatpush3.bf16.msra.mxu1 %v4166_v3  ;;  %v2322_v18 = vpop.f32.mrf.mxu0 }
 0x3a8   : > { %3894 = vmatprep.subr.bf16.mxu1 %v4360_v2  ;;  %v4896_v32 = vadd.f32 %v2380_v36, %v2363_v4  ;;  %v2323_v53 = vadd.f32 %v2322_v18, %v2250_v19  ;;  %v2411_v63 = vld [vmem:[#allocation2 + $0x11] sm:$0xff] }
 0x3a9   : > { %v3888_v38 = vpop.f32.mrf.mxu0  ;;  %v2431_v57 = vld [vmem:[#allocation2 + $0x13] sm:$0xff] }
 0x3aa   : > { %2396 = vst [vmem:[#allocation2 + $0x32] sm:$0xff] %v4896_v32  ;;  %v2343_v41 = vrot.slane %v2323_v53, 4  ;;  %v2401_v59 = vld [vmem:[#allocation2 + $0x10] sm:$0xff] }
 0x3ab   : > { %3895 = vmatpush3.bf16.msra.mxu1 %v4167_v40  ;;  %v2325_v37 = vpop.f32.mrf.mxu0  ;;  %v2421_v22 = vld [vmem:[#allocation2 + $0x12] sm:$0xff] }
 0x3ac   : > { %3896 = vmatprep.subr.bf16.mxu1 %v4360_v2  ;;  %v2344_v46 = vsel %vm945_vm1, %v2342_v55, %v2343_v41  ;;  %v2326_v54 = vadd.f32 %v2325_v37, %v2253_v8  ;;  %v2412_v61 = vld [vmem:[#allocation2 + $0x19] sm:$0xff]  ;;  %v2413_v29 = vld [vmem:[#allocation2 + $0x21] sm:$0xff] }
 0x3ad   : > { %v2432_v62 = vld [vmem:[#allocation2 + $0x1b] sm:$0xff]  ;;  %v2355_v24 = vmax.f32 %v4806_v1, %v2344_v46  ;;  %v3889_v58 = vpop.f32.mrf.mxu0  ;;  %v2455_v30 = vpack.c.bf16 %v2412_v61, %v2411_v63  ;;  %v2414_v5 = vld [vmem:[#allocation2 + $0x29] sm:$0xff] }
 0x3ae   : > { %v2402_v48 = vld [vmem:[#allocation2 + $0x18] sm:$0xff]  ;;  %v2457_v0 = vpack.c.bf16 %v2432_v62, %v2431_v57  ;;  %v2345_v33 = vrot.slane %v2326_v54, 4  ;;  %v2460_v12 = vpack.c.bf16 %v2414_v5, %v2413_v29  ;;  %v2433_v16 = vld [vmem:[#allocation2 + $0x23] sm:$0xff] }
 0x3af   : > { %v2454_v43 = vpack.c.bf16 %v2402_v48, %v2401_v59  ;;  %v2422_v27 = vld [vmem:[#allocation2 + $0x1a] sm:$0xff]  ;;  %3897 = vmatpush3.bf16.msra.mxu1 %v4168_v10  ;;  %v2372_v60 = vmin.f32 %v2355_v24, 0.0  ;;  %2843 = vmatprep.mubr.bf16.mxu1 %v2455_v30  ;;  %v2364_v1 = vmax.f32 %v2355_v24, 0.0  ;;  %v2404_v11 = vld [vmem:[#allocation2 + $0x28] sm:$0xff] }
 0x3b0   : > { %v2456_v31 = vpack.c.bf16 %v2422_v27, %v2421_v22  ;;  %2916 = vmatprep.mubr.bf16.mxu0 %v2457_v0  ;;  %v2346_v44 = vsel %vm945_vm1, %v2343_v41, %v2345_v33  ;;  %3898 = vmatprep.subr.bf16.mxu1 %v4360_v2  ;;  %v2403_v26 = vld [vmem:[#allocation2 + $0x20] sm:$0xff]  ;;  %v2440_v22 = vld [vmem:[#allocation2 + $0xc] sm:$0xff]  ;;  %v2441_v61 = vld [vmem:[#allocation2 + $0x14] sm:$0xff] }
 0x3b1   : > { %2844 = vmatmul.mubr.bf16.gmra.mxu1 %v2454_v43  ;;  %v2381_v14 = vmul.f32 %v4854_v15, %v2372_v60  ;;  %v2356_v25 = vmax.f32 %v4813_v39, %v2346_v44  ;;  %v2434_v17 = vld [vmem:[#allocation2 + $0x2b] sm:$0xff]  ;;  %v2423_v49 = vld [vmem:[#allocation2 + $0x22] sm:$0xff]  ;;  %v2459_v3 = vpack.c.bf16 %v2404_v11, %v2403_v26  ;;  %v2435_v35 = vld [vmem:[#allocation2 + $0x33] sm:$0xff] }
 0x3b2   : > { %2917 = vmatmul.mubr.bf16.gmra.mxu0 %v2456_v31  ;;  %2851 = vmatprep.mubr.bf16.mxu1 %v2460_v12  ;;  %v2462_v20 = vpack.c.bf16 %v2434_v17, %v2433_v16  ;;  %v2461_v47 = vpack.c.bf16 %v4890_v6, %v2423_v49  ;;  %v2415_v51 = vld [vmem:[#allocation2 + $0x31] sm:$0xff]  ;;  %v2442_v54 = vld [vmem:[#allocation2 + $0x1c] sm:$0xff]  ;;  %v2443_v24 = vld [vmem:[#allocation2 + $0x24] sm:$0xff] }
 0x3b3   : > { %3899 = vmatpush3.bf16.msra.mxu1 %v4169_v9  ;;  %v2389_v45 = vadd.f32 %v2381_v14, %v2364_v1  ;;  %v2373_v56 = vmin.f32 %v2356_v25, 0.0  ;;  %v2365_v28 = vmax.f32 %v2356_v25, 0.0  ;;  %v2405_v13 = vld [vmem:[#allocation2 + $0x30] sm:$0xff]  ;;  %v2458_v62 = vpack.c.bf16 %v2442_v54, %v2441_v61 }
 0x3b4   : > { %3900 = vmatprep.subr.bf16.mxu1 %v4360_v2  ;;  %2924 = vmatprep.mubr.bf16.mxu0 %v2462_v20  ;;  %v2444_v48 = vld [vmem:[#allocation2 + $0x2c] sm:$0xff]  ;;  %v2445_v0 = vld [vmem:[#allocation2 + $0x34] sm:$0xff] }
 0x3b5   : > { %2397 = vst [vmem:[#allocation2 + $0x3e] sm:$0xff] %v2389_v45  ;;  %v2382_v39 = vmul.f32 %v4854_v15, %v2373_v56  ;;  %v2463_v58 = vpack.c.bf16 %v2444_v48, %v2443_v24 }
 0x3b7   : > { %3901 = vmatpush3.bf16.msra.mxu1 %v4170_v52  ;;  %v2390_v50 = vadd.f32 %v2382_v39, %v2365_v28 }
 0x3b8   : > { %3902 = vmatprep.subr.bf16.mxu1 %v4360_v2 }
 0x3b9   : > { %2852 = vmatmul.mubr.bf16.gmra.mxu1 %v2459_v3  ;;  %2398 = vst [vmem:[#allocation2 + $0x46] sm:$0xff] %v2390_v50 }
 0x3ba   : > { %2925 = vmatmul.mubr.bf16.gmra.mxu0 %v2461_v47 }
 0x3bb   : > { %3903 = vmatpush3.bf16.msra.mxu1 %v4171_v34 }
 0x3bc   : > { %3904 = vmatprep.subr.bf16.mxu1 %v4360_v2  ;;  %v2416_v19 = vld [vmem:[#allocation2 + $0x39] sm:$0xff] }
 0x3bd   : > { %v2436_v15 = vld [vmem:[#allocation2 + $0x3b] sm:$0xff]  ;;  %v2465_v4 = vpack.c.bf16 %v2416_v19, %v2415_v51 }
 0x3be   : > { %v2406_v23 = vld [vmem:[#allocation2 + $0x38] sm:$0xff]  ;;  %v2467_v6 = vpack.c.bf16 %v2436_v15, %v2435_v35  ;;  %v4926_v35 = vld [vmem:[#allocation9 + $0x3] ss:$0 sm:$0xff] }
 0x3bf   : > { %v2464_v36 = vpack.c.bf16 %v2406_v23, %v2405_v13  ;;  %v2426_v42 = vld [vmem:[#allocation2 + $0x3a] sm:$0xff]  ;;  %3905 = vmatpush3.bf16.msra.mxu1 %v4172_v21  ;;  %2859 = vmatprep.mubr.bf16.mxu1 %v2465_v4 }
 0x3c0   : > { %v2466_v40 = vpack.c.bf16 %v2426_v42, %v4896_v32  ;;  %2932 = vmatprep.mubr.bf16.mxu0 %v2467_v6  ;;  %v2417_v18 = vld [vmem:[#allocation2 + $0x41] sm:$0xff]  ;;  %v2418_v7 = vld [vmem:[#allocation2 + $0x49] sm:$0xf] }
 0x3c1   : > { %2860 = vmatmul.mubr.bf16.gmra.mxu1 %v2464_v36  ;;  %v2437_v53 = vld [vmem:[#allocation2 + $0x43] sm:$0xff]  ;;  %v2470_v38 = vpack.c.bf16 %v2418_v7, %v2417_v18  ;;  %v2438_v55 = vld [vmem:[#allocation2 + $0x4b] sm:$0xf] }
 0x3c2   : > { %2933 = vmatmul.mubr.bf16.gmra.mxu0 %v2466_v40  ;;  %v2472_v41 = vpack.c.bf16 %v2438_v55, %v2437_v53  ;;  %v2407_v8 = vld [vmem:[#allocation2 + $0x40] sm:$0xff]  ;;  %v2408_v63 = vld [vmem:[#allocation2 + $0x48] sm:$0xf]  ;;  %v2448_v29 = vld [vmem:[#allocation2 + $0x4c] sm:$0xf] }
 0x3c3   : > { %2867 = vmatprep.mubr.bf16.mxu1 %v2470_v38  ;;  %v2427_v10 = vld [vmem:[#allocation2 + $0x42] sm:$0xff]  ;;  %v2428_v37 = vld [vmem:[#allocation2 + $0x4a] sm:$0xf]  ;;  %v2469_v57 = vpack.c.bf16 %v2408_v63, %v2407_v8 }
 0x3c4   : > { %2940 = vmatprep.mubr.bf16.mxu0 %v2472_v41  ;;  %v2471_v59 = vpack.c.bf16 %v2428_v37, %v2427_v10  ;;  %v2439_v32 = vld [vmem:[#allocation2 + $0x4] sm:$0xff]  ;;  %v2446_v30 = vld [vmem:[#allocation2 + $0x3c] sm:$0xff] }
 0x3c5   : > { %v2453_v46 = vpack.c.bf16 %v2440_v22, %v2439_v32  ;;  %v2468_v43 = vpack.c.bf16 %v2446_v30, %v2445_v0  ;;  %v2447_v27 = vld [vmem:[#allocation2 + $0x44] sm:$0xff] }
 0x3c6   : > { %v2473_v5 = vpack.c.bf16 %v2448_v29, %v2447_v27 }
 0x3c9   : > { %2868 = vmatmul.mubr.bf16.gmra.mxu1 %v2469_v57 }
 0x3ca   : > { %2941 = vmatmul.mubr.bf16.gmra.mxu0 %v2471_v59  ;;  %3906 = vmatprep.mubr.msk.bf16.mxu1 %vm4361_vm0, %v4360_v2 }
 0x3d1   : > { %3907 = vmatmul.mubr.bf16.vlgmr.msra.gmra.mxu1 %v2453_v46 }
 0x3d2   : > { %3910 = vmatprep.mubr.msk.bf16.mxu1 %vm4361_vm0, %v4360_v2 }
 0x3d9   : > { %3911 = vmatmul.mubr.bf16.gmra.mxu1 %v2458_v62 }
 0x3da   : > { %3914 = vmatprep.mubr.msk.bf16.mxu1 %vm4361_vm0, %v4360_v2 }
 0x3e1   : > { %3915 = vmatmul.mubr.bf16.gmra.mxu1 %v2463_v58 }
 0x3e2   : > { %3918 = vmatprep.mubr.msk.bf16.mxu1 %vm4361_vm0, %v4360_v2 }
 0x3e9   : > { %3919 = vmatmul.mubr.bf16.gmra.mxu1 %v2468_v43 }
 0x3ea   : > { %3922 = vmatprep.mubr.msk.bf16.mxu1 %vm4361_vm0, %v4360_v2 }
 0x3f1   : > { %3923 = vmatmul.mubr.bf16.gmra.mxu1 %v2473_v5 }
 0x462   : > { %v3693_v33 = vpop.f32.mrf.mxu1  ;;  %v3739_v31 = vpop.f32.mrf.mxu0 }
 0x464   : > { %v3694_v12 = vpop.f32.mrf.mxu1  ;;  %v3740_v9 = vpop.f32.mrf.mxu0 }
 0x465   : > { %v3695_v51 = vadd.f32 %v3694_v12, %v3693_v33  ;;  %v3741_v36 = vadd.f32 %v3740_v9, %v3739_v31 }
 0x466   : > { %v3696_v60 = vpop.f32.mrf.mxu1  ;;  %v3742_v44 = vpop.f32.mrf.mxu0 }
 0x467   : > { %v2838_v23 = vadd.f32 %v3695_v51, %v4926_v35 }
 0x468   : > { %v3697_v1 = vpop.f32.mrf.mxu1  ;;  %v3743_v14 = vpop.f32.mrf.mxu0 }
 0x469   : > { %v3698_v4 = vadd.f32 %v3697_v1, %v3696_v60  ;;  %v2911_v7 = vadd.f32 %v3741_v36, %v2838_v23  ;;  %v3744_v38 = vadd.f32 %v3743_v14, %v3742_v44 }
 0x46b   : > { %v2841_v18 = vadd.f32 %v3698_v4, %v4926_v35 }
 0x46d   : > { %v2914_v37 = vadd.f32 %v3744_v38, %v2841_v18 }
 0x471   : > { %v3699_v25 = vpop.f32.mrf.mxu1 }
 0x472   : > { %v3745_v16 = vpop.f32.mrf.mxu0 }
 0x473   : > { %v3700_v17 = vpop.f32.mrf.mxu1 }
 0x474   : > { %v3746_v52 = vpop.f32.mrf.mxu0  ;;  %v3701_v55 = vadd.f32 %v3700_v17, %v3699_v25 }
 0x475   : > { %v3702_v20 = vpop.f32.mrf.mxu1  ;;  %v3747_v61 = vadd.f32 %v3746_v52, %v3745_v16 }
 0x476   : > { %v3748_v2 = vpop.f32.mrf.mxu0  ;;  %v2846_v59 = vadd.f32 %v3701_v55, %v4926_v35 }
 0x477   : > { %v3703_v45 = vpop.f32.mrf.mxu1 }
 0x478   : > { %v3749_v49 = vpop.f32.mrf.mxu0  ;;  %v3704_v10 = vadd.f32 %v3703_v45, %v3702_v20  ;;  %v2919_v58 = vadd.f32 %v3747_v61, %v2846_v59 }
 0x479   : > { %v3705_v56 = vpop.f32.mrf.mxu1  ;;  %v3750_v24 = vadd.f32 %v3749_v49, %v3748_v2 }
 0x47a   : > { %v3751_v3 = vpop.f32.mrf.mxu0  ;;  %v2849_v62 = vadd.f32 %v3704_v10, %v4926_v35 }
 0x47b   : > { %v3706_v26 = vpop.f32.mrf.mxu1 }
 0x47c   : > { %v3752_v50 = vpop.f32.mrf.mxu0  ;;  %v3707_v22 = vadd.f32 %v3706_v26, %v3705_v56  ;;  %v2922_v5 = vadd.f32 %v3750_v24, %v2849_v62 }
 0x47d   : > { %v3708_v11 = vpop.f32.mrf.mxu1  ;;  %v3753_v33 = vadd.f32 %v3752_v50, %v3751_v3 }
 0x47e   : > { %v3754_v19 = vpop.f32.mrf.mxu0  ;;  %v2854_v30 = vadd.f32 %v3707_v22, %v4926_v35 }
 0x47f   : > { %v3709_v28 = vpop.f32.mrf.mxu1 }
 0x480   : > { %v3755_v42 = vpop.f32.mrf.mxu0  ;;  %v3710_v27 = vadd.f32 %v3709_v28, %v3708_v11  ;;  %v2927_v44 = vadd.f32 %v3753_v33, %v2854_v30 }
 0x481   : > { %v3711_v39 = vpop.f32.mrf.mxu1  ;;  %v3756_v20 = vadd.f32 %v3755_v42, %v3754_v19 }
 0x482   : > { %v3757_v8 = vpop.f32.mrf.mxu0  ;;  %v2857_v1 = vadd.f32 %v3710_v27, %v4926_v35 }
 0x483   : > { %v3712_v47 = vpop.f32.mrf.mxu1 }
 0x484   : > { %v3758_v46 = vpop.f32.mrf.mxu0  ;;  %v3713_v14 = vadd.f32 %v3712_v47, %v3711_v39  ;;  %v2930_v49 = vadd.f32 %v3756_v20, %v2857_v1 }
 0x485   : > { %v4922_v34 = vpop.f32.mrf.mxu1  ;;  %v3759_v3 = vadd.f32 %v3758_v46, %v3757_v8 }
 0x486   : > { %v3760_v0 = vpop.f32.mrf.mxu0  ;;  %v2862_v26 = vadd.f32 %v3713_v14, %v4926_v35 }
 0x487   : > { %v4924_v21 = vpop.f32.mrf.mxu1 }
 0x488   : > { %v3761_v9 = vpop.f32.mrf.mxu0  ;;  %v3716_v39 = vadd.f32 %v4924_v21, %v4922_v34  ;;  %v2935_v4 = vadd.f32 %v3759_v3, %v2862_v26 }
 0x489   : > { %v4928_v13 = vpop.f32.mrf.mxu1  ;;  %v3762_v38 = vadd.f32 %v3761_v9, %v3760_v0 }
 0x48a   : > { %v3763_v56 = vpop.f32.mrf.mxu0  ;;  %v2865_v42 = vadd.f32 %v3716_v39, %v4926_v35 }
 0x48b   : > { %v4930_v15 = vpop.f32.mrf.mxu1 }
 0x48c   : > { %v3764_v51 = vpop.f32.mrf.mxu0  ;;  %v3719_v23 = vadd.f32 %v4930_v15, %v4928_v13  ;;  %v2938_v13 = vadd.f32 %v3762_v38, %v2865_v42 }
 0x48d   : > { %v4933_v6 = vpop.f32.mrf.mxu1 }
 0x48e   : > { %v2870_v34 = vadd.f32 %v3719_v23, %v4926_v35 }
 0x48f   : > { %v4935_v40 = vpop.f32.mrf.mxu1 }
 0x490   : > { %v3722_v21 = vadd.f32 %v4935_v40, %v4933_v6 }
 0x491   : > { %v2983_v53 = vpop.f32.mrf.mxu1 }
 0x492   : > { %v2984_v41 = vadd.f32 %v2983_v53, %v2911_v7  ;;  %v3766_v7 = vpop.f32.mrf.mxu0 }
 0x493   : > { %v3908_v63 = vpop.f32.mrf.mxu1 }
 0x494   : > { %3042 = vst [vmem:[%s4940_s13] sm:$0xff] %v2984_v41  ;;  %v3765_v41 = vadd.f32 %v3764_v51, %v3763_v56  ;;  %v3767_v15 = vpop.f32.mrf.mxu0  ;;  %v2873_v63 = vadd.f32 %v3722_v21, %v4926_v35 }
 0x495   : > { %v2986_v57 = vpop.f32.mrf.mxu1  ;;  %v3768_v59 = vadd.f32 %v3767_v15, %v3766_v7 }
 0x496   : > { %v2987_v32 = vadd.f32 %v2986_v57, %v2914_v37  ;;  %v2943_v37 = vadd.f32 %v3765_v41, %v2870_v34 }
 0x497   : > { %v3909_v54 = vpop.f32.mrf.mxu1  ;;  %v2946_v46 = vadd.f32 %v3768_v59, %v2873_v63 }
 0x498   : > { %3043 = vst [vmem:[%s4940_s13 + $0x8] sm:$0xff] %v2987_v32 }
 0x499   : > { %v2991_v48 = vpop.f32.mrf.mxu1 }
 0x49a   : > { %v2992_v29 = vadd.f32 %v2991_v48, %v2919_v58 }
 0x49b   : > { %v3912_v43 = vpop.f32.mrf.mxu1 }
 0x49c   : > { %v3025_v25 = vrot.slane %v2992_v29, 4 }
 0x49d   : > { %v2994_v31 = vpop.f32.mrf.mxu1 }
 0x49e   : > { %v2995_v12 = vadd.f32 %v2994_v31, %v2922_v5 }
 0x49f   : > { %v3913_v60 = vpop.f32.mrf.mxu1 }
 0x4a0   : > { %v3026_v16 = vrot.slane %v2995_v12, 4 }
 0x4a1   : > { %v2999_v17 = vpop.f32.mrf.mxu1 }
 0x4a2   : > { %v3027_v52 = vsel %vm945_vm1, %v3025_v25, %v3026_v16  ;;  %v3000_v45 = vadd.f32 %v2999_v17, %v2927_v44 }
 0x4a3   : > { %3044 = vst [vmem:[%s4940_s13 + $0x10] sm:$0xff] %v3027_v52  ;;  %v3916_v2 = vpop.f32.mrf.mxu1 }
 0x4a4   : > { %v3028_v11 = vrot.slane %v3000_v45, 4 }
 0x4a5   : > { %v3002_v28 = vpop.f32.mrf.mxu1 }
 0x4a6   : > { %v3029_v47 = vsel %vm945_vm1, %v3026_v16, %v3028_v11  ;;  %v3003_v50 = vadd.f32 %v3002_v28, %v2930_v49 }
 0x4a7   : > { %3045 = vst [vmem:[%s4940_s13 + $0x18] sm:$0xff] %v3029_v47  ;;  %v3917_v19 = vpop.f32.mrf.mxu1 }
 0x4a8   : > { %3046 = vst [vmem:[%s4940_s13 + $0x20] sm:$0xff] %v3003_v50 }
 0x4a9   : > { %v3007_v36 = vpop.f32.mrf.mxu1 }
 0x4aa   : > { %v3008_v18 = vadd.f32 %v3007_v36, %v2935_v4 }
 0x4ab   : > { %v3920_v53 = vpop.f32.mrf.mxu1 }
 0x4ac   : > { %3047 = vst [vmem:[%s4940_s13 + $0x28] sm:$0xff] %v3008_v18 }
 0x4ad   : > { %v3010_v55 = vpop.f32.mrf.mxu1 }
 0x4ae   : > { %v3011_v10 = vadd.f32 %v3010_v55, %v2938_v13 }
 0x4af   : > { %v3921_v8 = vpop.f32.mrf.mxu1 }
 0x4b0   : > { %v3035_v6 = vrot.slane %v3011_v10, 4 }
 0x4b1   : > { %v3015_v57 = vpop.f32.mrf.mxu1 }
 0x4b2   : > { %v3016_v32 = vadd.f32 %v3015_v57, %v2943_v37 }
 0x4b3   : > { %v3924_v22 = vpop.f32.mrf.mxu1 }
 0x4b4   : > { %v3036_v40 = vrot.slane %v3016_v32, 4 }
 0x4b5   : > { %v3018_v54 = vpop.f32.mrf.mxu1 }
 0x4b6   : > { %v3037_v61 = vsel %vm945_vm1, %v3035_v6, %v3036_v40  ;;  %v3019_v62 = vadd.f32 %v3018_v54, %v2946_v46 }
 0x4b7   : > { %3048 = vst [vmem:[%s4940_s13 + $0x30] sm:$0xff] %v3037_v61  ;;  %v3925_v35 = vpop.f32.mrf.mxu1 }
 0x4b8   : > { %v3038_v48 = vrot.slane %v3019_v62, 4 }
 0x4ba   : > { %v3039_v24 = vsel %vm945_vm1, %v3036_v40, %v3038_v48 }
 0x4bb   : > { %3049 = vst [vmem:[%s4940_s13 + $0x38] sm:$0xff] %v3039_v24 }
 0x4bc   : > { %4289 = shalt.err (!%p4286_p9)
}
 0x4bd   : > { %s4290_s28 = scalar_lea.hbm %s4971_s8, 1024  ;;  %s4294_s23 = scalar_lea.hbm %s5022_s4, 2048 }
 0x4be   : > { %p4291_p7 = scmp.ne.s32.totalorder %s4971_s8, %s4290_s28  ;;  %p4295_p6 = scmp.lt.s32.totalorder %s4971_s8, %s5022_s4 }
 0x4bf   : > { %p4296_p11 = scmp.lt.s32.totalorder %s4294_s23, %s4290_s28 }
 0x4c0   : > { %p4292_p4 = pnand %p4291_p7, %p5040_p0 }
 0x4c1   : > { %p4297_p13 = por %p4296_p11, %p4295_p6 }
 0x4c2   : > { %p4293_p8 = pneg %p4292_p4 }
 0x4c4   : > { %p4298_p12 = pnand %p4297_p13, %p4293_p8 }
 0x4c6   : > { %4301 = shalt.err (!%p4298_p12)
}
 0x4c7   : > { %s4363_s13 = smov 128   ;;  %s4364_s14 = smov 8  }
 0x4c8   : > { %3940 = dma.vmem_to_hbm [thread:$0]  (%p5040_p0), %s4973_s6, 1024, %s4971_s8, %s3051_s19, %s4363_s13, %s4363_s13, %s4364_s14  }
 0x4c9 PF: > { %s3080_s5 = sand.u32 1, %s4336_s15   ;;  %p5041_p5 = scmp.ne.s32.totalorder %s5028_s22, 0 }
 0x4ca   : > { %p5042_p10 = scmp.ge.s32.totalorder %s4348_s18, 2  ;;  %s3081_s7 = scalar_lea.sflag [#allocation5], %s3080_s5 }
 0x4cc   : > { %p3957_p1 = pnand %p5042_p10, %p5041_p5 }
 0x4ce   : > { %p3958_p2 = pneg %p3957_p1 }
 0x4d0   : > { %4331 = dma.done.wait (%p3958_p2), %s3081_s7, 1024  }
 0x4d1   : > { %4333 = vsyncadd (%p3958_p2), %s3081_s7, 4294966272  ;;  %p19_p3 = scmp.ge.s32.totalorder %s4470_s27, 4   ;;  %s5043_s15 = smov %s4340_s16 }
 0x4d2   : > { %s5044_s16 = smov %s4344_s17  ;;  %s5045_s17 = smov %s4480_s26 }
 0x4d3   : > { %s5046_s18 = smov %s4470_s27  ;;  %21 = sbr.rel (!%p19_p3) target bundleno = 7 (0x7), region = 100 }
 0x4d8   :  { %3086 = vsyncpa [#allocation4], 1 }
 0x4d9   :  { %3088 = vsyncpa [#allocation4 + $0x1], 1 }
 0x4da   :  { %3089 = vsyncpa [#allocation8], 1 }
 0x4db   :  { %3090 = vsyncpa [#allocation5], 1 }
 0x4dc   :  { %3092 = vsyncpa [#allocation5 + $0x1], 1 }
 0x4dd   :  { %3093 = vsyncpa [#allocation6], 1 }
 0x4de   :  { %3095 = vsyncpa [#allocation6 + $0x1], 1 }

</bundles_post_ra>
